<compile_context>
chip_gen: v6e
topology: v6e:2x2x1
jax: 0.10.0
libtpu: 0.0.40
codegen_flags: <defaults>
</compile_context>

<pallas_src>
import jax
import jax.numpy as jnp
import numpy as np
from jax.experimental import pallas as pl
from jax.experimental.pallas import tpu as pltpu

BN_EPS = 1e-5
_PAD = 8   # zero halo rows before the first image (sublane aligned)
_GAP = 8   # zero halo rows after each image (sublane aligned)


# ------------------------------ Pallas kernel -------------------------------

def _basic_block_kernel(x_ref, w1_ref, w2_ref, o_ref, xpad_ref):
    """Fused conv2x3+LC+BN1+ReLU -> conv2x3+LC+BN2 -> +identity -> ReLU.

    x_ref   : (N, W, 2C)   channels-last, lanes = [I-channels | Q-channels]
    w1_ref  : (3*2C, 2C)   fused (conv1 + LC) tap-block weights, tap-major rows
    w2_ref  : (3*2C, 2C)   fused (conv2 + LC) tap-block weights
    o_ref   : (N, W, 2C)   output (same layout as x_ref; HBM-aliased to x)
    xpad_ref: (_PAD + N*(W+_GAP), 2C) VMEM scratch; image n's rows live at
              [_PAD + n*(W+_GAP), ... + W); all other rows stay zero (halos).
    """
    N, W, C2 = x_ref.shape
    C = C2 // 2
    S = W + _GAP
    cnt = 2.0 * N * W          # BN sample count per real channel (N * H=2 * W)

    # ---- zero ONLY the halo rows (top pad + per-image gaps), not the scratch
    xpad_ref[0:_PAD, :] = jnp.zeros((_PAD, C2), jnp.float32)
    for n in range(N):
        g0 = _PAD + n * S + W
        xpad_ref[g0:g0 + _GAP, :] = jnp.zeros((_GAP, C2), jnp.float32)

    def store_interior(n, val):
        xpad_ref[pl.ds(_PAD + n * S, W), :] = val

    def conv(w_ref):
        # 3-tap conv along W as 3 accumulating (W,2C)x(2C,2C) MXU dots per
        # image. Tap t reads x[w + t - 1]; the left/right neighbours come from
        # the zeroed halo rows, so no masking and no materialized copies.
        wts = [w_ref[t * C2:(t + 1) * C2, :] for t in range(3)]   # 3 x (2C,2C)
        outs = []
        for n in range(N):
            base = _PAD + n * S
            acc = None
            for t in range(3):
                lhs = xpad_ref[pl.ds(base - 1 + t, W), :]          # (W, 2C)
                p = jnp.dot(lhs, wts[t], preferred_element_type=jnp.float32)
                acc = p if acc is None else acc + p
            outs.append(acc)                                        # (W,2C) f32
        return outs

    def bn_stats(ys):
        # Train-mode BatchNorm2d: per real channel c the statistics combine
        # lane c (the "i" half) and lane C + c (the "q" half) over all N*W
        # rows. The halves are combined with a free XLU lane roll, which also
        # leaves the result duplicated across both halves for broadcasting.
        s = jnp.zeros((1, C2), jnp.float32)
        ss = jnp.zeros((1, C2), jnp.float32)
        for y in ys:
            s = s + jnp.sum(y, axis=0, keepdims=True)
            ss = ss + jnp.sum(y * y, axis=0, keepdims=True)
        mean = (s + pltpu.roll(s, shift=C, axis=1)) / cnt
        ex2 = (ss + pltpu.roll(ss, shift=C, axis=1)) / cnt
        var = ex2 - mean * mean
        inv = jax.lax.rsqrt(var + BN_EPS)
        return mean, inv                       # gamma = 1, beta = 0

    # stage the input into the scratch interiors (halos stay zero)
    for n in range(N):
        store_interior(n, x_ref[n])

    # conv1 (+LC) -> BN1 -> ReLU -> restage for conv2
    y1 = conv(w1_ref)
    m1, inv1 = bn_stats(y1)
    for n in range(N):
        store_interior(n, jnp.maximum((y1[n] - m1) * inv1, 0.0))

    # conv2 (+LC) -> BN2 -> residual add (downsample=None) -> ReLU
    y2 = conv(w2_ref)
    m2, inv2 = bn_stats(y2)
    for n in range(N):
        out_n = jnp.maximum((y2[n] - m2) * inv2 + x_ref[n], 0.0)
        o_ref[n] = out_n.astype(o_ref.dtype)   # 2C = 128 lanes, unmasked stores


# ------------------------------ JAX wrappers ---------------------------------

def _fuse_conv_lc_weights(w):
    """PyTorch conv2x3 weight (Cout, Cin, 2, 3) -> fused (conv+LC) matmul weight
    of shape (3*2*Cin, 2*Cout), tap-major along rows.

    With input rows (I, Q) and H padding 1, conv2x3 then LC gives
        i' = w[:, :, 1, :] (*) I - w[:, :, 0, :] (*) Q
        q' = w[:, :, 0, :] (*) I + w[:, :, 1, :] (*) Q
    i.e. per W-tap t the block matrix [[A_t, B_t], [-B_t, A_t]] applied to the
    lane-concatenated [I | Q] channels, with A_t = w[:,:,1,t]^T, B_t = w[:,:,0,t]^T.
    """
    A = jnp.transpose(w[:, :, 1, :], (2, 1, 0))        # (3, Cin, Cout)
    B = jnp.transpose(w[:, :, 0, :], (2, 1, 0))        # (3, Cin, Cout)
    top = jnp.concatenate([A, B], axis=2)              # (3, Cin, 2*Cout)
    bot = jnp.concatenate([-B, A], axis=2)             # (3, Cin, 2*Cout)
    blk = jnp.concatenate([top, bot], axis=1)          # (3, 2*Cin, 2*Cout)
    return blk.reshape(-1, blk.shape[-1])              # (3*2*Cin, 2*Cout)


@jax.jit
def basic_block_forward(x_nchw, w1, w2):
    """BasicBlock_c.forward (stride=1, downsample=None) on NCHW input (N, C, 2, W)."""
    N, C, H, W = x_nchw.shape
    if H != 2:
        raise ValueError("BasicBlock_c requires input height 2 (I/Q rows).")
    if w1.shape[0] != C:
        raise ValueError("downsample=None requires inplanes == planes.")
    C2 = 2 * C

    # Single fused layout op: (N,C,2,W) -> (N,W,2,C) -> (N,W,2C) lanes=[I | Q].
    x_cat = jnp.transpose(x_nchw, (0, 3, 2, 1)).reshape(N, W, C2)

    w1_f = _fuse_conv_lc_weights(w1)                   # (6C, 2C)
    w2_f = _fuse_conv_lc_weights(w2)

    rows = _PAD + N * (W + _GAP)                       # halo-padded scratch rows

    out_cat = pl.pallas_call(
        _basic_block_kernel,
        out_shape=jax.ShapeDtypeStruct((N, W, C2), jnp.float32),
        grid=(1,),
        in_specs=[
            pl.BlockSpec((N, W, C2), lambda i: (0, 0, 0)),
            pl.BlockSpec((3 * C2, C2), lambda i: (0, 0)),
            pl.BlockSpec((3 * C2, C2), lambda i: (0, 0)),
        ],
        out_specs=pl.BlockSpec((N, W, C2), lambda i: (0, 0, 0)),
        scratch_shapes=[pltpu.VMEM((rows, C2), jnp.float32)],
        input_output_aliases={0: 0},                   # out reuses x_cat's HBM
        compiler_params=pltpu.CompilerParams(
            dimension_semantics=("arbitrary",)),
    )(x_cat, w1_f, w2_f)

    # back to NCHW (N, C, 2, W) with a single fused layout op
    return jnp.transpose(out_cat.reshape(N, W, 2, C), (0, 3, 2, 1))


# --------------------------- Pure-JAX reference ------------------------------

@jax.jit
def ref_forward(x, w1, w2):
    """Op-for-op XLA mirror of the PyTorch module (train-mode BatchNorm)."""

    def conv2x3(a, w):
        return jax.lax.conv_general_dilated(
            a, w, window_strides=(1, 1), padding=((1, 1), (1, 1)),
            dimension_numbers=("NCHW", "OIHW", "NCHW"),
            precision=jax.lax.Precision.HIGHEST)

    def lc(a):
        i = a[:, :, 0:1, :] - a[:, :, 2:3, :]
        q = a[:, :, 1:2, :]
        return jnp.concatenate([i, q], axis=2)

    def bn_train(a):
        mean = jnp.mean(a, axis=(0, 2, 3), keepdims=True)
        var = jnp.mean(jnp.square(a - mean), axis=(0, 2, 3), keepdims=True)
        return (a - mean) * jax.lax.rsqrt(var + BN_EPS)

    out = jnp.maximum(bn_train(lc(conv2x3(x, w1))), 0.0)
    out = bn_train(lc(conv2x3(out, w2)))
    return jnp.maximum(out + x, 0.0)


# ---------------------------------- Main -------------------------------------

if __name__ == "__main__":
    key = jax.random.PRNGKey(0)
    kx, k1, k2 = jax.random.split(key, 3)

    # Small but lane-friendly shapes: inplanes = planes = 64, H = 2 (I/Q), W = 128.
    N, C, H, W = 2, 64, 2, 128
    x = jax.random.normal(kx, (N, C, H, W), jnp.float32)
    std = (2.0 / (C * 2 * 3)) ** 0.5
    w1 = jax.random.normal(k1, (C, C, 2, 3), jnp.float32) * std  # conv1.weight
    w2 = jax.random.normal(k2, (C, C, 2, 3), jnp.float32) * std  # conv2.weight

    out = jax.block_until_ready(basic_block_forward(x, w1, w2))
    assert out.shape == (N, C, 2, W), out.shape

    ref = jax.block_until_ready(ref_forward(x, w1, w2))
    np.testing.assert_allclose(np.asarray(out), np.asarray(ref), rtol=2e-2, atol=2e-2)

    print("KERNEL_OK")
</pallas_src>

<mosaic_0001>
module attributes {stable_mosaic.version = 11 : i64} {
  func.func @_basic_block_kernel(%arg0: i32, %arg1: memref<2x128x128xf32, #tpu.memory_space<vmem>>, %arg2: memref<384x128xf32, #tpu.memory_space<vmem>>, %arg3: memref<384x128xf32, #tpu.memory_space<vmem>>, %arg4: memref<2x128x128xf32, #tpu.memory_space<vmem>>, %arg5: memref<280x128xf32, #tpu.memory_space<vmem>>) attributes {dimension_semantics = [#tpu.dimension_semantics<arbitrary>], iteration_bounds = array<i64: 1>, scalar_prefetch = 0 : i64, scratch_operands = 1 : i64, tpu.core_type = #tpu.core_type<tc>, window_params = [{pipeline_mode = #tpu.pipeline_mode<synchronous>, transform_indices = @transform_0, window_bounds = array<i64: 2, 128, 128>}, {pipeline_mode = #tpu.pipeline_mode<synchronous>, transform_indices = @transform_1, window_bounds = array<i64: 384, 128>}, {pipeline_mode = #tpu.pipeline_mode<synchronous>, transform_indices = @transform_2, window_bounds = array<i64: 384, 128>}, {pipeline_mode = #tpu.pipeline_mode<synchronous>, transform_indices = @transform_3, window_bounds = array<i64: 2, 128, 128>}]} {
    %cst = arith.constant 0.000000e+00 : f32
    %0 = vector.broadcast %cst : f32 to vector<8x128xf32>
    %c0 = arith.constant 0 : index
    %c0_0 = arith.constant 0 : index
    %1 = vector.load %arg5[%c0, %c0_0] : memref<280x128xf32, #tpu.memory_space<vmem>>, vector<8x128xf32>
    tpu.vector_store %arg5[%c0, %c0_0], %0 {strides = array<i32>} : memref<280x128xf32, #tpu.memory_space<vmem>>, vector<8x128xf32>,
    %cst_1 = arith.constant 0.000000e+00 : f32
    %2 = vector.broadcast %cst_1 : f32 to vector<8x128xf32>
    %c136 = arith.constant 136 : index
    %c0_2 = arith.constant 0 : index
    %3 = vector.load %arg5[%c136, %c0_2] : memref<280x128xf32, #tpu.memory_space<vmem>>, vector<8x128xf32>
    tpu.vector_store %arg5[%c136, %c0_2], %2 {strides = array<i32>} : memref<280x128xf32, #tpu.memory_space<vmem>>, vector<8x128xf32>,
    %cst_3 = arith.constant 0.000000e+00 : f32
    %4 = vector.broadcast %cst_3 : f32 to vector<8x128xf32>
    %c272 = arith.constant 272 : index
    %c0_4 = arith.constant 0 : index
    %5 = vector.load %arg5[%c272, %c0_4] : memref<280x128xf32, #tpu.memory_space<vmem>>, vector<8x128xf32>
    tpu.vector_store %arg5[%c272, %c0_4], %4 {strides = array<i32>} : memref<280x128xf32, #tpu.memory_space<vmem>>, vector<8x128xf32>,
    %c0_5 = arith.constant 0 : index
    %c0_6 = arith.constant 0 : index
    %c0_7 = arith.constant 0 : index
    %6 = vector.load %arg1[%c0_5, %c0_6, %c0_7] : memref<2x128x128xf32, #tpu.memory_space<vmem>>, vector<1x128x128xf32>
    %7 = vector.shape_cast %6 : vector<1x128x128xf32> to vector<128x128xf32>
    %c8 = arith.constant 8 : index
    %c0_8 = arith.constant 0 : index
    %8 = vector.load %arg5[%c8, %c0_8] : memref<280x128xf32, #tpu.memory_space<vmem>>, vector<128x128xf32>
    tpu.vector_store %arg5[%c8, %c0_8], %7 {strides = array<i32>} : memref<280x128xf32, #tpu.memory_space<vmem>>, vector<128x128xf32>,
    %c1 = arith.constant 1 : index
    %c0_9 = arith.constant 0 : index
    %c0_10 = arith.constant 0 : index
    %9 = vector.load %arg1[%c1, %c0_9, %c0_10] : memref<2x128x128xf32, #tpu.memory_space<vmem>>, vector<1x128x128xf32>
    %10 = vector.shape_cast %9 : vector<1x128x128xf32> to vector<128x128xf32>
    %c144 = arith.constant 144 : index
    %c0_11 = arith.constant 0 : index
    %11 = vector.load %arg5[%c144, %c0_11] : memref<280x128xf32, #tpu.memory_space<vmem>>, vector<128x128xf32>
    tpu.vector_store %arg5[%c144, %c0_11], %10 {strides = array<i32>} : memref<280x128xf32, #tpu.memory_space<vmem>>, vector<128x128xf32>,
    %c0_12 = arith.constant 0 : index
    %c0_13 = arith.constant 0 : index
    %12 = vector.load %arg2[%c0_12, %c0_13] : memref<384x128xf32, #tpu.memory_space<vmem>>, vector<128x128xf32>
    %c128 = arith.constant 128 : index
    %c0_14 = arith.constant 0 : index
    %13 = vector.load %arg2[%c128, %c0_14] : memref<384x128xf32, #tpu.memory_space<vmem>>, vector<128x128xf32>
    %c256 = arith.constant 256 : index
    %c0_15 = arith.constant 0 : index
    %14 = vector.load %arg2[%c256, %c0_15] : memref<384x128xf32, #tpu.memory_space<vmem>>, vector<128x128xf32>
    %c7 = arith.constant 7 : index
    %c0_16 = arith.constant 0 : index
    %15 = vector.load %arg5[%c7, %c0_16] : memref<280x128xf32, #tpu.memory_space<vmem>>, vector<128x128xf32>
    %cst_17 = arith.constant dense<0.000000e+00> : vector<128x128xf32>
    %16 = tpu.matmul %15, %12, %cst_17 {dimension_numbers = #tpu.dot_dimension_numbers<[1], [0], [0], [1], [0, 0, 1, 1], [], []>} : vector<128x128xf32>, vector<128x128xf32>, vector<128x128xf32> -> vector<128x128xf32>
    %c8_18 = arith.constant 8 : index
    %c0_19 = arith.constant 0 : index
    %17 = vector.load %arg5[%c8_18, %c0_19] : memref<280x128xf32, #tpu.memory_space<vmem>>, vector<128x128xf32>
    %cst_20 = arith.constant dense<0.000000e+00> : vector<128x128xf32>
    %18 = tpu.matmul %17, %13, %cst_20 {dimension_numbers = #tpu.dot_dimension_numbers<[1], [0], [0], [1], [0, 0, 1, 1], [], []>} : vector<128x128xf32>, vector<128x128xf32>, vector<128x128xf32> -> vector<128x128xf32>
    %19 = arith.addf %16, %18 : vector<128x128xf32>
    %c9 = arith.constant 9 : index
    %c0_21 = arith.constant 0 : index
    %20 = vector.load %arg5[%c9, %c0_21] : memref<280x128xf32, #tpu.memory_space<vmem>>, vector<128x128xf32>
    %cst_22 = arith.constant dense<0.000000e+00> : vector<128x128xf32>
    %21 = tpu.matmul %20, %14, %cst_22 {dimension_numbers = #tpu.dot_dimension_numbers<[1], [0], [0], [1], [0, 0, 1, 1], [], []>} : vector<128x128xf32>, vector<128x128xf32>, vector<128x128xf32> -> vector<128x128xf32>
    %22 = arith.addf %19, %21 : vector<128x128xf32>
    %c143 = arith.constant 143 : index
    %c0_23 = arith.constant 0 : index
    %23 = vector.load %arg5[%c143, %c0_23] : memref<280x128xf32, #tpu.memory_space<vmem>>, vector<128x128xf32>
    %cst_24 = arith.constant dense<0.000000e+00> : vector<128x128xf32>
    %24 = tpu.matmul %23, %12, %cst_24 {dimension_numbers = #tpu.dot_dimension_numbers<[1], [0], [0], [1], [0, 0, 1, 1], [], []>} : vector<128x128xf32>, vector<128x128xf32>, vector<128x128xf32> -> vector<128x128xf32>
    %c144_25 = arith.constant 144 : index
    %c0_26 = arith.constant 0 : index
    %25 = vector.load %arg5[%c144_25, %c0_26] : memref<280x128xf32, #tpu.memory_space<vmem>>, vector<128x128xf32>
    %cst_27 = arith.constant dense<0.000000e+00> : vector<128x128xf32>
    %26 = tpu.matmul %25, %13, %cst_27 {dimension_numbers = #tpu.dot_dimension_numbers<[1], [0], [0], [1], [0, 0, 1, 1], [], []>} : vector<128x128xf32>, vector<128x128xf32>, vector<128x128xf32> -> vector<128x128xf32>
    %27 = arith.addf %24, %26 : vector<128x128xf32>
    %c145 = arith.constant 145 : index
    %c0_28 = arith.constant 0 : index
    %28 = vector.load %arg5[%c145, %c0_28] : memref<280x128xf32, #tpu.memory_space<vmem>>, vector<128x128xf32>
    %cst_29 = arith.constant dense<0.000000e+00> : vector<128x128xf32>
    %29 = tpu.matmul %28, %14, %cst_29 {dimension_numbers = #tpu.dot_dimension_numbers<[1], [0], [0], [1], [0, 0, 1, 1], [], []>} : vector<128x128xf32>, vector<128x128xf32>, vector<128x128xf32> -> vector<128x128xf32>
    %30 = arith.addf %27, %29 : vector<128x128xf32>
    %cst_30 = arith.constant 0.000000e+00 : f32
    %31 = vector.broadcast %cst_30 : f32 to vector<1x128xf32>
    %cst_31 = arith.constant 0.000000e+00 : f32
    %32 = vector.broadcast %cst_31 : f32 to vector<1x128xf32>
    %cst_32 = arith.constant dense<0.000000e+00> : vector<128xf32>
    %33 = vector.multi_reduction <add>, %22, %cst_32 [0] : vector<128x128xf32> to vector<128xf32>
    %34 = vector.shape_cast %33 : vector<128xf32> to vector<1x128xf32>
    %35 = arith.addf %31, %34 : vector<1x128xf32>
    %36 = arith.mulf %22, %22 : vector<128x128xf32>
    %cst_33 = arith.constant dense<0.000000e+00> : vector<128xf32>
    %37 = vector.multi_reduction <add>, %36, %cst_33 [0] : vector<128x128xf32> to vector<128xf32>
    %38 = vector.shape_cast %37 : vector<128xf32> to vector<1x128xf32>
    %39 = arith.addf %32, %38 : vector<1x128xf32>
    %cst_34 = arith.constant dense<0.000000e+00> : vector<128xf32>
    %40 = vector.multi_reduction <add>, %30, %cst_34 [0] : vector<128x128xf32> to vector<128xf32>
    %41 = vector.shape_cast %40 : vector<128xf32> to vector<1x128xf32>
    %42 = arith.addf %35, %41 : vector<1x128xf32>
    %43 = arith.mulf %30, %30 : vector<128x128xf32>
    %cst_35 = arith.constant dense<0.000000e+00> : vector<128xf32>
    %44 = vector.multi_reduction <add>, %43, %cst_35 [0] : vector<128x128xf32> to vector<128xf32>
    %45 = vector.shape_cast %44 : vector<128xf32> to vector<1x128xf32>
    %46 = arith.addf %39, %45 : vector<1x128xf32>
    %c64_i32 = arith.constant 64 : i32
    %47 = tpu.dynamic_rotate %42 by %c64_i32 dim 1 : vector<1x128xf32>, i32 -> vector<1x128xf32>
    %48 = arith.addf %42, %47 : vector<1x128xf32>
    %cst_36 = arith.constant 5.120000e+02 : f32
    %49 = vector.broadcast %cst_36 : f32 to vector<1x128xf32>
    %50 = arith.divf %48, %49 : vector<1x128xf32>
    %c64_i32_37 = arith.constant 64 : i32
    %51 = tpu.dynamic_rotate %46 by %c64_i32_37 dim 1 : vector<1x128xf32>, i32 -> vector<1x128xf32>
    %52 = arith.addf %46, %51 : vector<1x128xf32>
    %cst_38 = arith.constant 5.120000e+02 : f32
    %53 = vector.broadcast %cst_38 : f32 to vector<1x128xf32>
    %54 = arith.divf %52, %53 : vector<1x128xf32>
    %55 = arith.mulf %50, %50 : vector<1x128xf32>
    %56 = arith.subf %54, %55 : vector<1x128xf32>
    %cst_39 = arith.constant 9.99999974E-6 : f32
    %57 = vector.broadcast %cst_39 : f32 to vector<1x128xf32>
    %58 = arith.addf %56, %57 : vector<1x128xf32>
    %59 = math.rsqrt %58 : vector<1x128xf32>
    %60 = vector.broadcast %50 : vector<1x128xf32> to vector<128x128xf32>
    %61 = arith.subf %22, %60 : vector<128x128xf32>
    %62 = vector.broadcast %59 : vector<1x128xf32> to vector<128x128xf32>
    %63 = arith.mulf %61, %62 : vector<128x128xf32>
    %cst_40 = arith.constant 0.000000e+00 : f32
    %64 = vector.broadcast %cst_40 : f32 to vector<128x128xf32>
    %65 = arith.maximumf %63, %64 : vector<128x128xf32>
    %c8_41 = arith.constant 8 : index
    %c0_42 = arith.constant 0 : index
    %66 = vector.load %arg5[%c8_41, %c0_42] : memref<280x128xf32, #tpu.memory_space<vmem>>, vector<128x128xf32>
    tpu.vector_store %arg5[%c8_41, %c0_42], %65 {strides = array<i32>} : memref<280x128xf32, #tpu.memory_space<vmem>>, vector<128x128xf32>,
    %67 = vector.broadcast %50 : vector<1x128xf32> to vector<128x128xf32>
    %68 = arith.subf %30, %67 : vector<128x128xf32>
    %69 = vector.broadcast %59 : vector<1x128xf32> to vector<128x128xf32>
    %70 = arith.mulf %68, %69 : vector<128x128xf32>
    %cst_43 = arith.constant 0.000000e+00 : f32
    %71 = vector.broadcast %cst_43 : f32 to vector<128x128xf32>
    %72 = arith.maximumf %70, %71 : vector<128x128xf32>
    %c144_44 = arith.constant 144 : index
    %c0_45 = arith.constant 0 : index
    %73 = vector.load %arg5[%c144_44, %c0_45] : memref<280x128xf32, #tpu.memory_space<vmem>>, vector<128x128xf32>
    tpu.vector_store %arg5[%c144_44, %c0_45], %72 {strides = array<i32>} : memref<280x128xf32, #tpu.memory_space<vmem>>, vector<128x128xf32>,
    %c0_46 = arith.constant 0 : index
    %c0_47 = arith.constant 0 : index
    %74 = vector.load %arg3[%c0_46, %c0_47] : memref<384x128xf32, #tpu.memory_space<vmem>>, vector<128x128xf32>
    %c128_48 = arith.constant 128 : index
    %c0_49 = arith.constant 0 : index
    %75 = vector.load %arg3[%c128_48, %c0_49] : memref<384x128xf32, #tpu.memory_space<vmem>>, vector<128x128xf32>
    %c256_50 = arith.constant 256 : index
    %c0_51 = arith.constant 0 : index
    %76 = vector.load %arg3[%c256_50, %c0_51] : memref<384x128xf32, #tpu.memory_space<vmem>>, vector<128x128xf32>
    %c7_52 = arith.constant 7 : index
    %c0_53 = arith.constant 0 : index
    %77 = vector.load %arg5[%c7_52, %c0_53] : memref<280x128xf32, #tpu.memory_space<vmem>>, vector<128x128xf32>
    %cst_54 = arith.constant dense<0.000000e+00> : vector<128x128xf32>
    %78 = tpu.matmul %77, %74, %cst_54 {dimension_numbers = #tpu.dot_dimension_numbers<[1], [0], [0], [1], [0, 0, 1, 1], [], []>} : vector<128x128xf32>, vector<128x128xf32>, vector<128x128xf32> -> vector<128x128xf32>
    %c8_55 = arith.constant 8 : index
    %c0_56 = arith.constant 0 : index
    %79 = vector.load %arg5[%c8_55, %c0_56] : memref<280x128xf32, #tpu.memory_space<vmem>>, vector<128x128xf32>
    %cst_57 = arith.constant dense<0.000000e+00> : vector<128x128xf32>
    %80 = tpu.matmul %79, %75, %cst_57 {dimension_numbers = #tpu.dot_dimension_numbers<[1], [0], [0], [1], [0, 0, 1, 1], [], []>} : vector<128x128xf32>, vector<128x128xf32>, vector<128x128xf32> -> vector<128x128xf32>
    %81 = arith.addf %78, %80 : vector<128x128xf32>
    %c9_58 = arith.constant 9 : index
    %c0_59 = arith.constant 0 : index
    %82 = vector.load %arg5[%c9_58, %c0_59] : memref<280x128xf32, #tpu.memory_space<vmem>>, vector<128x128xf32>
    %cst_60 = arith.constant dense<0.000000e+00> : vector<128x128xf32>
    %83 = tpu.matmul %82, %76, %cst_60 {dimension_numbers = #tpu.dot_dimension_numbers<[1], [0], [0], [1], [0, 0, 1, 1], [], []>} : vector<128x128xf32>, vector<128x128xf32>, vector<128x128xf32> -> vector<128x128xf32>
    %84 = arith.addf %81, %83 : vector<128x128xf32>
    %c143_61 = arith.constant 143 : index
    %c0_62 = arith.constant 0 : index
    %85 = vector.load %arg5[%c143_61, %c0_62] : memref<280x128xf32, #tpu.memory_space<vmem>>, vector<128x128xf32>
    %cst_63 = arith.constant dense<0.000000e+00> : vector<128x128xf32>
    %86 = tpu.matmul %85, %74, %cst_63 {dimension_numbers = #tpu.dot_dimension_numbers<[1], [0], [0], [1], [0, 0, 1, 1], [], []>} : vector<128x128xf32>, vector<128x128xf32>, vector<128x128xf32> -> vector<128x128xf32>
    %c144_64 = arith.constant 144 : index
    %c0_65 = arith.constant 0 : index
    %87 = vector.load %arg5[%c144_64, %c0_65] : memref<280x128xf32, #tpu.memory_space<vmem>>, vector<128x128xf32>
    %cst_66 = arith.constant dense<0.000000e+00> : vector<128x128xf32>
    %88 = tpu.matmul %87, %75, %cst_66 {dimension_numbers = #tpu.dot_dimension_numbers<[1], [0], [0], [1], [0, 0, 1, 1], [], []>} : vector<128x128xf32>, vector<128x128xf32>, vector<128x128xf32> -> vector<128x128xf32>
    %89 = arith.addf %86, %88 : vector<128x128xf32>
    %c145_67 = arith.constant 145 : index
    %c0_68 = arith.constant 0 : index
    %90 = vector.load %arg5[%c145_67, %c0_68] : memref<280x128xf32, #tpu.memory_space<vmem>>, vector<128x128xf32>
    %cst_69 = arith.constant dense<0.000000e+00> : vector<128x128xf32>
    %91 = tpu.matmul %90, %76, %cst_69 {dimension_numbers = #tpu.dot_dimension_numbers<[1], [0], [0], [1], [0, 0, 1, 1], [], []>} : vector<128x128xf32>, vector<128x128xf32>, vector<128x128xf32> -> vector<128x128xf32>
    %92 = arith.addf %89, %91 : vector<128x128xf32>
    %cst_70 = arith.constant 0.000000e+00 : f32
    %93 = vector.broadcast %cst_70 : f32 to vector<1x128xf32>
    %cst_71 = arith.constant 0.000000e+00 : f32
    %94 = vector.broadcast %cst_71 : f32 to vector<1x128xf32>
    %cst_72 = arith.constant dense<0.000000e+00> : vector<128xf32>
    %95 = vector.multi_reduction <add>, %84, %cst_72 [0] : vector<128x128xf32> to vector<128xf32>
    %96 = vector.shape_cast %95 : vector<128xf32> to vector<1x128xf32>
    %97 = arith.addf %93, %96 : vector<1x128xf32>
    %98 = arith.mulf %84, %84 : vector<128x128xf32>
    %cst_73 = arith.constant dense<0.000000e+00> : vector<128xf32>
    %99 = vector.multi_reduction <add>, %98, %cst_73 [0] : vector<128x128xf32> to vector<128xf32>
    %100 = vector.shape_cast %99 : vector<128xf32> to vector<1x128xf32>
    %101 = arith.addf %94, %100 : vector<1x128xf32>
    %cst_74 = arith.constant dense<0.000000e+00> : vector<128xf32>
    %102 = vector.multi_reduction <add>, %92, %cst_74 [0] : vector<128x128xf32> to vector<128xf32>
    %103 = vector.shape_cast %102 : vector<128xf32> to vector<1x128xf32>
    %104 = arith.addf %97, %103 : vector<1x128xf32>
    %105 = arith.mulf %92, %92 : vector<128x128xf32>
    %cst_75 = arith.constant dense<0.000000e+00> : vector<128xf32>
    %106 = vector.multi_reduction <add>, %105, %cst_75 [0] : vector<128x128xf32> to vector<128xf32>
    %107 = vector.shape_cast %106 : vector<128xf32> to vector<1x128xf32>
    %108 = arith.addf %101, %107 : vector<1x128xf32>
    %c64_i32_76 = arith.constant 64 : i32
    %109 = tpu.dynamic_rotate %104 by %c64_i32_76 dim 1 : vector<1x128xf32>, i32 -> vector<1x128xf32>
    %110 = arith.addf %104, %109 : vector<1x128xf32>
    %cst_77 = arith.constant 5.120000e+02 : f32
    %111 = vector.broadcast %cst_77 : f32 to vector<1x128xf32>
    %112 = arith.divf %110, %111 : vector<1x128xf32>
    %c64_i32_78 = arith.constant 64 : i32
    %113 = tpu.dynamic_rotate %108 by %c64_i32_78 dim 1 : vector<1x128xf32>, i32 -> vector<1x128xf32>
    %114 = arith.addf %108, %113 : vector<1x128xf32>
    %cst_79 = arith.constant 5.120000e+02 : f32
    %115 = vector.broadcast %cst_79 : f32 to vector<1x128xf32>
    %116 = arith.divf %114, %115 : vector<1x128xf32>
    %117 = arith.mulf %112, %112 : vector<1x128xf32>
    %118 = arith.subf %116, %117 : vector<1x128xf32>
    %cst_80 = arith.constant 9.99999974E-6 : f32
    %119 = vector.broadcast %cst_80 : f32 to vector<1x128xf32>
    %120 = arith.addf %118, %119 : vector<1x128xf32>
    %121 = math.rsqrt %120 : vector<1x128xf32>
    %122 = vector.broadcast %112 : vector<1x128xf32> to vector<128x128xf32>
    %123 = arith.subf %84, %122 : vector<128x128xf32>
    %124 = vector.broadcast %121 : vector<1x128xf32> to vector<128x128xf32>
    %125 = arith.mulf %123, %124 : vector<128x128xf32>
    %c0_81 = arith.constant 0 : index
    %c0_82 = arith.constant 0 : index
    %c0_83 = arith.constant 0 : index
    %126 = vector.load %arg1[%c0_81, %c0_82, %c0_83] : memref<2x128x128xf32, #tpu.memory_space<vmem>>, vector<1x128x128xf32>
    %127 = vector.shape_cast %126 : vector<1x128x128xf32> to vector<128x128xf32>
    %128 = arith.addf %125, %127 : vector<128x128xf32>
    %cst_84 = arith.constant 0.000000e+00 : f32
    %129 = vector.broadcast %cst_84 : f32 to vector<128x128xf32>
    %130 = arith.maximumf %128, %129 : vector<128x128xf32>
    %c0_85 = arith.constant 0 : index
    %c0_86 = arith.constant 0 : index
    %c0_87 = arith.constant 0 : index
    %131 = vector.load %arg4[%c0_85, %c0_86, %c0_87] : memref<2x128x128xf32, #tpu.memory_space<vmem>>, vector<1x128x128xf32>
    %132 = vector.shape_cast %131 : vector<1x128x128xf32> to vector<128x128xf32>
    %133 = vector.shape_cast %130 : vector<128x128xf32> to vector<1x128x128xf32>
    tpu.vector_store %arg4[%c0_85, %c0_86, %c0_87], %133 {strides = array<i32>} : memref<2x128x128xf32, #tpu.memory_space<vmem>>, vector<1x128x128xf32>,
    %134 = vector.broadcast %112 : vector<1x128xf32> to vector<128x128xf32>
    %135 = arith.subf %92, %134 : vector<128x128xf32>
    %136 = vector.broadcast %121 : vector<1x128xf32> to vector<128x128xf32>
    %137 = arith.mulf %135, %136 : vector<128x128xf32>
    %c1_88 = arith.constant 1 : index
    %c0_89 = arith.constant 0 : index
    %c0_90 = arith.constant 0 : index
    %138 = vector.load %arg1[%c1_88, %c0_89, %c0_90] : memref<2x128x128xf32, #tpu.memory_space<vmem>>, vector<1x128x128xf32>
    %139 = vector.shape_cast %138 : vector<1x128x128xf32> to vector<128x128xf32>
    %140 = arith.addf %137, %139 : vector<128x128xf32>
    %cst_91 = arith.constant 0.000000e+00 : f32
    %141 = vector.broadcast %cst_91 : f32 to vector<128x128xf32>
    %142 = arith.maximumf %140, %141 : vector<128x128xf32>
    %c1_92 = arith.constant 1 : index
    %c0_93 = arith.constant 0 : index
    %c0_94 = arith.constant 0 : index
    %143 = vector.load %arg4[%c1_92, %c0_93, %c0_94] : memref<2x128x128xf32, #tpu.memory_space<vmem>>, vector<1x128x128xf32>
    %144 = vector.shape_cast %143 : vector<1x128x128xf32> to vector<128x128xf32>
    %145 = vector.shape_cast %142 : vector<128x128xf32> to vector<1x128x128xf32>
    tpu.vector_store %arg4[%c1_92, %c0_93, %c0_94], %145 {strides = array<i32>} : memref<2x128x128xf32, #tpu.memory_space<vmem>>, vector<1x128x128xf32>,
    return
  }
  func.func @transform_0(%arg0: i32) -> (i32, i32, i32) {
    %c0_i32 = arith.constant 0 : i32
    %c0_i32_0 = arith.constant 0 : i32
    %c0_i32_1 = arith.constant 0 : i32
    %c0_i32_2 = arith.constant 0 : i32
    return %c0_i32, %c0_i32_0, %c0_i32_1 : i32, i32, i32
  }
  func.func @transform_1(%arg0: i32) -> (i32, i32) {
    %c0_i32 = arith.constant 0 : i32
    %c0_i32_0 = arith.constant 0 : i32
    %c0_i32_1 = arith.constant 0 : i32
    return %c0_i32, %c0_i32_0 : i32, i32
  }
  func.func @transform_2(%arg0: i32) -> (i32, i32) {
    %c0_i32 = arith.constant 0 : i32
    %c0_i32_0 = arith.constant 0 : i32
    %c0_i32_1 = arith.constant 0 : i32
    return %c0_i32, %c0_i32_0 : i32, i32
  }
  func.func @transform_3(%arg0: i32) -> (i32, i32, i32) {
    %c0_i32 = arith.constant 0 : i32
    %c0_i32_0 = arith.constant 0 : i32
    %c0_i32_1 = arith.constant 0 : i32
    %c0_i32_2 = arith.constant 0 : i32
    return %c0_i32, %c0_i32_0, %c0_i32_1 : i32, i32, i32
  }
}

</mosaic_0001>

<bundles_post_ra>
// kernel: basic_block_forward.1
= control target key start
LH: loop header
LB: loop body
LE: loop exit
PB: predicated region body
PF: predicated region fallthrough
CT: control target
= control target key end

     0   :  { %v3890_v3 = vmov 0.0   ;;  %s6144_s1 = inlined_call_operand.vmem [shape: f32[384,128], index: 1, kind: input, shape index: {}]   ;;  %s6145_s0 = inlined_call_operand.vmem [shape: f32[2,128,128], index: 0, kind: input, shape index: {}, may-alias: {0,3}]   ;;  %s6146_s2 = inlined_call_operand.vmem [shape: f32[384,128], index: 2, kind: input, shape index: {}]   ;;  %s6147_s3 = inlined_call_operand.vmem [shape: f32[2,128,128], index: 3, kind: output, shape index: {}, may-alias: {0,3}]  }
   0x1   :  { %v3915_v0 = vld [vmem:[%s6144_s1 + $0xf8] sm:$0xff]  ;;  %v3925_v2 = vld [vmem:[%s6144_s1 + $0xf0] sm:$0xff]  ;;  %14 = vst [vmem:[#allocation2] sm:$0xff] %v3890_v3  ;;  %15 = vst [vmem:[#allocation2 + $0x88] sm:$0xff] %v3890_v3 }
   0x2   :  { %v3920_v1 = vld [vmem:[%s6144_s1 + $0x78] sm:$0xff]  ;;  %16 = vst [vmem:[#allocation2 + $0x110] sm:$0xff] %v3890_v3  ;;  %3212 = vmatprep.subr.mxu0 %v3915_v0  ;;  %v3932_v4 = vld [vmem:[%s6144_s1 + $0x70] sm:$0xff]  ;;  %v3939_v5 = vld [vmem:[%s6144_s1 + $0xe8] sm:$0xff] }
   0x3   :  { %3268 = vmatprep.subr.mxu1 %v3920_v1  ;;  %3213 = vmatpush3.msra.mxu0 %v3915_v0  ;;  %v3944_v6 = vld [vmem:[%s6144_s1 + $0x68] sm:$0xff]  ;;  %v3953_v7 = vld [vmem:[%s6144_s1 + $0xe0] sm:$0xff]  ;;  %v3967_v9 = vld [vmem:[%s6144_s1 + $0xd8] sm:$0xff] }
   0x4   :  { %3269 = vmatpush3.msra.mxu1 %v3920_v1  ;;  %3214 = vmatprep.subr.mxu0 %v3925_v2  ;;  %v3958_v8 = vld [vmem:[%s6144_s1 + $0x60] sm:$0xff]  ;;  %v3972_v10 = vld [vmem:[%s6144_s1 + $0x58] sm:$0xff]  ;;  %v3981_v11 = vld [vmem:[%s6144_s1 + $0xd0] sm:$0xff] }
   0x5   :  { %3270 = vmatprep.subr.mxu1 %v3932_v4  ;;  %3215 = vmatpush3.msra.mxu0 %v3925_v2  ;;  %v3986_v12 = vld [vmem:[%s6144_s1 + $0x50] sm:$0xff]  ;;  %v3995_v13 = vld [vmem:[%s6144_s1 + $0xc8] sm:$0xff]  ;;  %v4005_v15 = vld [vmem:[%s6145_s0] sm:$0xff] }
   0x6   :  { %3271 = vmatpush3.msra.mxu1 %v3932_v4  ;;  %3216 = vmatprep.subr.mxu0 %v3939_v5  ;;  %v4000_v14 = vld [vmem:[%s6144_s1 + $0x48] sm:$0xff]  ;;  %v4012_v16 = vld [vmem:[%s6144_s1 + $0xc0] sm:$0xff]  ;;  %33 = vst [vmem:[#allocation2 + $0x8] sm:$0xff] %v4005_v15  ;;  %v4031_v19 = vld [vmem:[%s6145_s0 + $0x10] sm:$0xff] }
   0x7   :  { %3272 = vmatprep.subr.mxu1 %v3944_v6  ;;  %3217 = vmatpush3.msra.mxu0 %v3939_v5  ;;  %v4018_v17 = vld [vmem:[%s6145_s0 + $0x8] sm:$0xff]  ;;  %v4025_v18 = vld [vmem:[%s6144_s1 + $0x40] sm:$0xff]  ;;  %v4036_v20 = vld [vmem:[%s6145_s0 + $0x18] sm:$0xff]  ;;  %35 = vst [vmem:[#allocation2 + $0x18] sm:$0xff] %v4031_v19 }
   0x8   :  { %3273 = vmatpush3.msra.mxu1 %v3944_v6  ;;  %3218 = vmatprep.subr.mxu0 %v3953_v7  ;;  %34 = vst [vmem:[#allocation2 + $0x10] sm:$0xff] %v4018_v17  ;;  %36 = vst [vmem:[#allocation2 + $0x20] sm:$0xff] %v4036_v20  ;;  %v4045_v21 = vld [vmem:[%s6145_s0 + $0x20] sm:$0xff]  ;;  %v4050_v22 = vld [vmem:[%s6145_s0 + $0x28] sm:$0xff] }
   0x9   :  { %3274 = vmatprep.subr.mxu1 %v3958_v8  ;;  %3219 = vmatpush3.msra.mxu0 %v3953_v7  ;;  %v4057_v23 = vld [vmem:[%s6144_s1 + $0xb8] sm:$0xff]  ;;  %37 = vst [vmem:[#allocation2 + $0x28] sm:$0xff] %v4045_v21  ;;  %38 = vst [vmem:[#allocation2 + $0x30] sm:$0xff] %v4050_v22  ;;  %v4069_v25 = vld [vmem:[%s6145_s0 + $0x30] sm:$0xff] }
   0xa   :  { %3275 = vmatpush3.msra.mxu1 %v3958_v8  ;;  %3220 = vmatprep.subr.mxu0 %v3967_v9  ;;  %v4062_v24 = vld [vmem:[%s6144_s1 + $0x38] sm:$0xff]  ;;  %v4076_v26 = vld [vmem:[%s6144_s1 + $0xb0] sm:$0xff]  ;;  %39 = vst [vmem:[#allocation2 + $0x38] sm:$0xff] %v4069_v25  ;;  %v4095_v29 = vld [vmem:[%s6145_s0 + $0x40] sm:$0xff] }
   0xb   :  { %3276 = vmatprep.subr.mxu1 %v3972_v10  ;;  %3221 = vmatpush3.msra.mxu0 %v3967_v9  ;;  %v4082_v27 = vld [vmem:[%s6145_s0 + $0x38] sm:$0xff]  ;;  %v4089_v28 = vld [vmem:[%s6144_s1 + $0x30] sm:$0xff]  ;;  %v4100_v30 = vld [vmem:[%s6145_s0 + $0x48] sm:$0xff]  ;;  %41 = vst [vmem:[#allocation2 + $0x48] sm:$0xff] %v4095_v29 }
   0xc   :  { %3277 = vmatpush3.msra.mxu1 %v3972_v10  ;;  %3222 = vmatprep.subr.mxu0 %v3981_v11  ;;  %40 = vst [vmem:[#allocation2 + $0x40] sm:$0xff] %v4082_v27  ;;  %42 = vst [vmem:[#allocation2 + $0x50] sm:$0xff] %v4100_v30  ;;  %v4109_v31 = vld [vmem:[%s6145_s0 + $0x50] sm:$0xff]  ;;  %v4114_v32 = vld [vmem:[%s6145_s0 + $0x58] sm:$0xff] }
   0xd   :  { %3278 = vmatprep.subr.mxu1 %v3986_v12  ;;  %3223 = vmatpush3.msra.mxu0 %v3981_v11  ;;  %v4121_v33 = vld [vmem:[%s6144_s1 + $0xa8] sm:$0xff]  ;;  %43 = vst [vmem:[#allocation2 + $0x58] sm:$0xff] %v4109_v31  ;;  %44 = vst [vmem:[#allocation2 + $0x60] sm:$0xff] %v4114_v32  ;;  %v4135_v35 = vld [vmem:[%s6145_s0 + $0x60] sm:$0xff] }
   0xe   :  { %3279 = vmatpush3.msra.mxu1 %v3986_v12  ;;  %3224 = vmatprep.subr.mxu0 %v3995_v13  ;;  %v4126_v34 = vld [vmem:[%s6144_s1 + $0x28] sm:$0xff]  ;;  %v4147_v37 = vld [vmem:[%s6144_s1 + $0xa0] sm:$0xff]  ;;  %45 = vst [vmem:[#allocation2 + $0x68] sm:$0xff] %v4135_v35  ;;  %v4161_v39 = vld [vmem:[%s6144_s1 + $0x98] sm:$0xff] }
   0xf   :  { %3280 = vmatprep.subr.mxu1 %v4000_v14  ;;  %3225 = vmatpush3.msra.mxu0 %v3995_v13  ;;  %v4140_v36 = vld [vmem:[%s6145_s0 + $0x68] sm:$0xff]  ;;  %v4152_v38 = vld [vmem:[%s6144_s1 + $0x20] sm:$0xff]  ;;  %v4168_v40 = vld [vmem:[%s6144_s1 + $0x18] sm:$0xff] }
  0x10   :  { %3281 = vmatpush3.msra.mxu1 %v4000_v14  ;;  %3226 = vmatprep.subr.mxu0 %v4012_v16  ;;  %46 = vst [vmem:[#allocation2 + $0x70] sm:$0xff] %v4140_v36  ;;  %v4173_v41 = vld [vmem:[%s6145_s0 + $0x70] sm:$0xff]  ;;  %v4178_v42 = vld [vmem:[%s6145_s0 + $0x78] sm:$0xff]  ;;  %v4201_v45 = vld [vmem:[%s6144_s1 + $0x88] sm:$0xff] }
  0x11   :  { %3282 = vmatprep.subr.mxu1 %v4025_v18  ;;  %3227 = vmatpush3.msra.mxu0 %v4012_v16  ;;  %47 = vst [vmem:[#allocation2 + $0x78] sm:$0xff] %v4173_v41  ;;  %48 = vst [vmem:[#allocation2 + $0x80] sm:$0xff] %v4178_v42  ;;  %v4189_v43 = vld [vmem:[%s6144_s1 + $0x90] sm:$0xff]  ;;  %v4208_v46 = vld [vmem:[%s6144_s1 + $0x8] sm:$0xff] }
  0x12   :  { %3283 = vmatpush3.msra.mxu1 %v4025_v18  ;;  %3228 = vmatprep.subr.mxu0 %v4057_v23  ;;  %v4194_v44 = vld [vmem:[%s6144_s1 + $0x10] sm:$0xff]  ;;  %6208 = vst [vmem:[#allocation3_spill] sm:$0xff] %v4208_v46  ;;  %v4213_v47 = vld [vmem:[%s6145_s0 + $0x80] sm:$0xff]  ;;  %v4218_v48 = vld [vmem:[%s6145_s0 + $0x88] sm:$0xff] }
  0x13   :  { %3284 = vmatprep.subr.mxu1 %v4062_v24  ;;  %3229 = vmatpush3.msra.mxu0 %v4057_v23  ;;  %v4225_v49 = vld [vmem:[%s6144_s1 + $0x80] sm:$0xff]  ;;  %66 = vst [vmem:[#allocation2 + $0x90] sm:$0xff] %v4213_v47  ;;  %67 = vst [vmem:[#allocation2 + $0x98] sm:$0xff] %v4218_v48  ;;  %v4239_v51 = vld [vmem:[%s6145_s0 + $0x90] sm:$0xff] }
  0x14   :  { %3285 = vmatpush3.msra.mxu1 %v4062_v24  ;;  %3230 = vmatprep.subr.mxu0 %v4076_v26  ;;  %v4234_v50 = vld [vmem:[%s6144_s1] sm:$0xff]  ;;  %v4244_v52 = vld [vmem:[%s6145_s0 + $0x98] sm:$0xff]  ;;  %68 = vst [vmem:[#allocation2 + $0xa0] sm:$0xff] %v4239_v51  ;;  %v4258_v54 = vld [vmem:[%s6145_s0 + $0xa8] sm:$0xff] }
  0x15   :  { %3286 = vmatprep.subr.mxu1 %v4089_v28  ;;  %3231 = vmatpush3.msra.mxu0 %v4076_v26  ;;  %6209 = vst [vmem:[#allocation4_spill] sm:$0xff] %v4234_v50  ;;  %69 = vst [vmem:[#allocation2 + $0xa8] sm:$0xff] %v4244_v52  ;;  %v4253_v53 = vld [vmem:[%s6145_s0 + $0xa0] sm:$0xff]  ;;  %v131_v56 = vld [vmem:[#allocation2 + $0xf] sm:$0xff] }
  0x16   :  { %3287 = vmatpush3.msra.mxu1 %v4089_v28  ;;  %3232 = vmatprep.subr.mxu0 %v4121_v33  ;;  %v130_v55 = vld [vmem:[#allocation2 + $0x7] sm:$0xff]  ;;  %70 = vst [vmem:[#allocation2 + $0xb0] sm:$0xff] %v4253_v53  ;;  %71 = vst [vmem:[#allocation2 + $0xb8] sm:$0xff] %v4258_v54  ;;  %v4269_v57 = vld [vmem:[%s6145_s0 + $0xb0] sm:$0xff] }
  0x17   :  { %3288 = vmatprep.subr.mxu1 %v4126_v34  ;;  %3233 = vmatpush3.msra.mxu0 %v4121_v33  ;;  %v4274_v58 = vld [vmem:[%s6145_s0 + $0xb8] sm:$0xff]  ;;  %72 = vst [vmem:[#allocation2 + $0xc0] sm:$0xff] %v4269_v57  ;;  %v4288_v60 = vld [vmem:[%s6145_s0 + $0xc0] sm:$0xff]  ;;  %v4295_v61 = vld [vmem:[%s6145_s0 + $0xc8] sm:$0xff] }
  0x18   :  { %3289 = vmatpush3.msra.mxu1 %v4126_v34  ;;  %3234 = vmatprep.subr.mxu0 %v4147_v37  ;;  %v4281_v59 = vld [vmem:[%s6144_s1 + $0x178] sm:$0xff]  ;;  %73 = vst [vmem:[#allocation2 + $0xc8] sm:$0xff] %v4274_v58  ;;  %74 = vst [vmem:[#allocation2 + $0xd0] sm:$0xff] %v4288_v60  ;;  %v4301_v62 = vld [vmem:[%s6144_s1 + $0x170] sm:$0xff] }
  0x19   :  { %3290 = vmatprep.subr.mxu1 %v4152_v38  ;;  %3235 = vmatpush3.msra.mxu0 %v4147_v37  ;;  %75 = vst [vmem:[#allocation2 + $0xd8] sm:$0xff] %v4295_v61  ;;  %v4307_v63 = vld [vmem:[%s6145_s0 + $0xd0] sm:$0xff]  ;;  %v4312_v3 = vld [vmem:[%s6145_s0 + $0xd8] sm:$0xff] }
  0x1a   :  { %3291 = vmatpush3.msra.mxu1 %v4152_v38  ;;  %3236 = vmatprep.subr.mxu0 %v4161_v39  ;;  %76 = vst [vmem:[#allocation2 + $0xe0] sm:$0xff] %v4307_v63  ;;  %77 = vst [vmem:[#allocation2 + $0xe8] sm:$0xff] %v4312_v3 }
  0x1b   :  { %3292 = vmatprep.subr.mxu1 %v4168_v40  ;;  %3237 = vmatpush3.msra.mxu0 %v4161_v39 }
  0x1c   :  { %3293 = vmatpush3.msra.mxu1 %v4168_v40  ;;  %3238 = vmatprep.subr.mxu0 %v4189_v43 }
  0x1d   :  { %3294 = vmatprep.subr.mxu1 %v4194_v44  ;;  %3239 = vmatpush3.msra.mxu0 %v4189_v43 }
  0x1e   :  { %3295 = vmatpush3.msra.mxu1 %v4194_v44  ;;  %3240 = vmatprep.subr.mxu0 %v4201_v45 }
  0x1f   :  { %3296 = vmatprep.subr.mxu1 %v4208_v46  ;;  %3241 = vmatpush3.msra.mxu0 %v4201_v45 }
  0x20   :  { %3297 = vmatpush3.msra.mxu1 %v4208_v46  ;;  %3242 = vmatprep.subr.mxu0 %v4225_v49  ;;  %v4342_v46 = vld [vmem:[%s6144_s1 + $0x168] sm:$0xff] }
  0x21   :  { %3298 = vmatprep.subr.mxu1 %v4234_v50  ;;  %3243 = vmatpush3.msra.mxu0 %v4225_v49 }
  0x22   :  { %3244 = vmatprep.mubr.f32.mxu0 %v4005_v15  ;;  %3299 = vmatpush3.msra.mxu1 %v4234_v50  ;;  %v132_v15 = vld [vmem:[#allocation2 + $0x17] sm:$0xff]  ;;  %v133_v50 = vld [vmem:[#allocation2 + $0x1f] sm:$0xff] }
  0x23   :  { %3300 = vmatprep.mubr.f32.mxu1 %v130_v55  ;;  %3245 = vmatmul.mubr.f32.vlgmr.msra.gmra.mxu0 %v4018_v17  ;;  %v4321_v17 = vld [vmem:[%s6145_s0 + $0xe0] sm:$0xff]  ;;  %v4326_v55 = vld [vmem:[%s6145_s0 + $0xe8] sm:$0xff] }
  0x24   :  { %3301 = vmatmul.mubr.f32.vlgmr.msra.gmra.mxu1 %v131_v56  ;;  %3324 = vmatprep.subr.mxu0 %v4281_v59  ;;  %78 = vst [vmem:[#allocation2 + $0xf0] sm:$0xff] %v4321_v17  ;;  %79 = vst [vmem:[#allocation2 + $0xf8] sm:$0xff] %v4326_v55  ;;  %v4335_v56 = vld [vmem:[%s6145_s0 + $0xf0] sm:$0xff] }
  0x25   :  { %3380 = vmatprep.subr.mxu1 %v3915_v0  ;;  %3325 = vmatpush3.msra.mxu0 %v4281_v59  ;;  %80 = vst [vmem:[#allocation2 + $0x100] sm:$0xff] %v4335_v56 }
  0x26   :  { %3381 = vmatpush3.msra.mxu1 %v3915_v0  ;;  %3326 = vmatprep.subr.mxu0 %v4301_v62  ;;  %v4348_v0 = vld [vmem:[%s6145_s0 + $0xf8] sm:$0xff] }
  0x27   :  { %3247 = vmatprep.mubr.f32.mxu0 %v4031_v19  ;;  %3303 = vmatprep.mubr.f32.mxu1 %v132_v15  ;;  %81 = vst [vmem:[#allocation2 + $0x108] sm:$0xff] %v4348_v0  ;;  %v4357_v19 = vld [vmem:[%s6144_s1 + $0x160] sm:$0xff] }
  0x28   :  { %3327 = vmatpush3.msra.mxu0 %v4301_v62  ;;  %3382 = vmatprep.subr.mxu1 %v3925_v2  ;;  %v134_v15 = vld [vmem:[#allocation2 + $0x27] sm:$0xff] }
  0x29   :  { %3248 = vmatmul.mubr.f32.gmra.mxu0 %v4036_v20  ;;  %3304 = vmatmul.mubr.f32.gmra.mxu1 %v133_v50  ;;  %v135_v20 = vld [vmem:[#allocation2 + $0x2f] sm:$0xff]  ;;  %v4369_v50 = vld [vmem:[%s6144_s1 + $0x158] sm:$0xff] }
  0x2a   :  { %3328 = vmatprep.subr.mxu0 %v4342_v46  ;;  %3383 = vmatpush3.msra.mxu1 %v3925_v2  ;;  %v4377_v2 = vld [vmem:[%s6144_s1 + $0x150] sm:$0xff] }
  0x2b   :  { %3329 = vmatpush3.msra.mxu0 %v4342_v46  ;;  %3384 = vmatprep.subr.mxu1 %v3939_v5 }
  0x2c   :  { %3330 = vmatprep.subr.mxu0 %v4357_v19  ;;  %3385 = vmatpush3.msra.mxu1 %v3939_v5  ;;  %v136_v5 = vld [vmem:[#allocation2 + $0x37] sm:$0xff] }
  0x2d   :  { %3250 = vmatprep.mubr.f32.mxu0 %v4045_v21  ;;  %3306 = vmatprep.mubr.f32.mxu1 %v134_v15  ;;  %v137_v21 = vld [vmem:[#allocation2 + $0x3f] sm:$0xff]  ;;  %v640_v15 = vld [vmem:[#allocation2 + $0xe7] sm:$0xff] }
  0x2e   :  { %3331 = vmatpush3.msra.mxu0 %v4357_v19  ;;  %3386 = vmatprep.subr.mxu1 %v3953_v7 }
  0x2f   :  { %3251 = vmatmul.mubr.f32.gmra.mxu0 %v4050_v22  ;;  %3307 = vmatmul.mubr.f32.gmra.mxu1 %v135_v20  ;;  %v4389_v22 = vld [vmem:[%s6144_s1 + $0x148] sm:$0xff] }
  0x30   :  { %3332 = vmatprep.subr.mxu0 %v4369_v50  ;;  %3387 = vmatpush3.msra.mxu1 %v3953_v7  ;;  %v4397_v7 = vld [vmem:[%s6144_s1 + $0x140] sm:$0xff]  ;;  %v641_v20 = vld [vmem:[#allocation2 + $0xef] sm:$0xff] }
  0x31   :  { %3333 = vmatpush3.msra.mxu0 %v4369_v50  ;;  %3388 = vmatprep.subr.mxu1 %v3967_v9 }
  0x32   :  { %3334 = vmatprep.subr.mxu0 %v4377_v2  ;;  %3389 = vmatpush3.msra.mxu1 %v3967_v9  ;;  %v138_v9 = vld [vmem:[#allocation2 + $0x47] sm:$0xff] }
  0x33   :  { %3253 = vmatprep.mubr.f32.mxu0 %v4069_v25  ;;  %3309 = vmatprep.mubr.f32.mxu1 %v136_v5  ;;  %v139_v25 = vld [vmem:[#allocation2 + $0x4f] sm:$0xff]  ;;  %v642_v5 = vld [vmem:[#allocation2 + $0xf7] sm:$0xff] }
  0x34   :  { %3335 = vmatpush3.msra.mxu0 %v4377_v2  ;;  %3390 = vmatprep.subr.mxu1 %v3981_v11 }
  0x35   :  { %3254 = vmatmul.mubr.f32.gmra.mxu0 %v4082_v27  ;;  %3310 = vmatmul.mubr.f32.gmra.mxu1 %v137_v21  ;;  %v4409_v27 = vld [vmem:[%s6144_s1 + $0x138] sm:$0xff] }
  0x36   :  { %3336 = vmatprep.subr.mxu0 %v4389_v22  ;;  %3391 = vmatpush3.msra.mxu1 %v3981_v11  ;;  %v4417_v11 = vld [vmem:[%s6144_s1 + $0x130] sm:$0xff]  ;;  %v643_v21 = vld [vmem:[#allocation2 + $0xff] sm:$0xff] }
  0x37   :  { %3337 = vmatpush3.msra.mxu0 %v4389_v22  ;;  %3392 = vmatprep.subr.mxu1 %v3995_v13 }
  0x38   :  { %3338 = vmatprep.subr.mxu0 %v4397_v7  ;;  %3393 = vmatpush3.msra.mxu1 %v3995_v13  ;;  %v140_v13 = vld [vmem:[#allocation2 + $0x57] sm:$0xff] }
  0x39   :  { %3256 = vmatprep.mubr.f32.mxu0 %v4095_v29  ;;  %3312 = vmatprep.mubr.f32.mxu1 %v138_v9  ;;  %v141_v29 = vld [vmem:[#allocation2 + $0x5f] sm:$0xff]  ;;  %v644_v9 = vld [vmem:[#allocation2 + $0x107] sm:$0xff] }
  0x3a   :  { %3339 = vmatpush3.msra.mxu0 %v4397_v7  ;;  %3394 = vmatprep.subr.mxu1 %v4012_v16 }
  0x3b   :  { %3257 = vmatmul.mubr.f32.gmra.mxu0 %v4100_v30  ;;  %3313 = vmatmul.mubr.f32.gmra.mxu1 %v139_v25  ;;  %v4429_v30 = vld [vmem:[%s6144_s1 + $0x128] sm:$0xff] }
  0x3c   :  { %3340 = vmatprep.subr.mxu0 %v4409_v27  ;;  %3395 = vmatpush3.msra.mxu1 %v4012_v16  ;;  %v4437_v16 = vld [vmem:[%s6144_s1 + $0x120] sm:$0xff]  ;;  %v966_v25 = vld [vmem:[#allocation2 + $0x109] sm:$0xff] }
  0x3d   :  { %3341 = vmatpush3.msra.mxu0 %v4409_v27  ;;  %3396 = vmatprep.subr.mxu1 %v4057_v23 }
  0x3e   :  { %3342 = vmatprep.subr.mxu0 %v4417_v11  ;;  %3397 = vmatpush3.msra.mxu1 %v4057_v23  ;;  %v142_v23 = vld [vmem:[#allocation2 + $0x67] sm:$0xff] }
  0x3f   :  { %3259 = vmatprep.mubr.f32.mxu0 %v4109_v31  ;;  %3315 = vmatprep.mubr.f32.mxu1 %v140_v13  ;;  %v143_v31 = vld [vmem:[#allocation2 + $0x6f] sm:$0xff] }
  0x40   :  { %3343 = vmatpush3.msra.mxu0 %v4417_v11  ;;  %3398 = vmatprep.subr.mxu1 %v4076_v26 }
  0x41   :  { %3260 = vmatmul.mubr.f32.gmra.mxu0 %v4114_v32  ;;  %3316 = vmatmul.mubr.f32.gmra.mxu1 %v141_v29  ;;  %v4449_v32 = vld [vmem:[%s6144_s1 + $0x118] sm:$0xff] }
  0x42   :  { %3344 = vmatprep.subr.mxu0 %v4429_v30  ;;  %3399 = vmatpush3.msra.mxu1 %v4076_v26  ;;  %v4457_v26 = vld [vmem:[%s6144_s1 + $0x110] sm:$0xff] }
  0x43   :  { %3345 = vmatpush3.msra.mxu0 %v4429_v30  ;;  %3400 = vmatprep.subr.mxu1 %v4121_v33 }
  0x44   :  { %3346 = vmatprep.subr.mxu0 %v4437_v16  ;;  %3401 = vmatpush3.msra.mxu1 %v4121_v33  ;;  %v144_v33 = vld [vmem:[#allocation2 + $0x77] sm:$0xff] }
  0x45   :  { %3262 = vmatprep.mubr.f32.mxu0 %v4135_v35  ;;  %3318 = vmatprep.mubr.f32.mxu1 %v142_v23  ;;  %v145_v35 = vld [vmem:[#allocation2 + $0x7f] sm:$0xff] }
  0x46   :  { %3347 = vmatpush3.msra.mxu0 %v4437_v16  ;;  %3402 = vmatprep.subr.mxu1 %v4147_v37 }
  0x47   :  { %3263 = vmatmul.mubr.f32.gmra.mxu0 %v4140_v36  ;;  %3319 = vmatmul.mubr.f32.gmra.mxu1 %v143_v31  ;;  %v4469_v36 = vld [vmem:[%s6144_s1 + $0x108] sm:$0xff] }
  0x48   :  { %3348 = vmatprep.subr.mxu0 %v4449_v32  ;;  %3403 = vmatpush3.msra.mxu1 %v4147_v37  ;;  %v4477_v37 = vld [vmem:[%s6144_s1 + $0x100] sm:$0xff]  ;;  %s3891_s1 = smov 64  }
  0x49   :  { %3349 = vmatpush3.msra.mxu0 %v4449_v32  ;;  %3404 = vmatprep.subr.mxu1 %v4161_v39 }
  0x4a   :  { %3350 = vmatprep.subr.mxu0 %v4457_v26  ;;  %3405 = vmatpush3.msra.mxu1 %v4161_v39  ;;  %v452_v39 = vld [vmem:[#allocation2 + $0x9] sm:$0xff] }
  0x4b   :  { %3265 = vmatprep.mubr.f32.mxu0 %v4173_v41  ;;  %3321 = vmatprep.mubr.f32.mxu1 %v144_v33  ;;  %v453_v41 = vld [vmem:[#allocation2 + $0x11] sm:$0xff] }
  0x4c   :  { %3351 = vmatpush3.msra.mxu0 %v4457_v26  ;;  %3406 = vmatprep.subr.mxu1 %v4189_v43 }
  0x4d   :  { %3266 = vmatmul.mubr.f32.gmra.mxu0 %v4178_v42  ;;  %3322 = vmatmul.mubr.f32.gmra.mxu1 %v145_v35  ;;  %v454_v42 = vld [vmem:[#allocation2 + $0x19] sm:$0xff] }
  0x4e   :  { %3352 = vmatprep.subr.mxu0 %v4469_v36  ;;  %3407 = vmatpush3.msra.mxu1 %v4189_v43  ;;  %v455_v43 = vld [vmem:[#allocation2 + $0x21] sm:$0xff] }
  0x4f   :  { %3353 = vmatpush3.msra.mxu0 %v4469_v36  ;;  %3408 = vmatprep.subr.mxu1 %v4201_v45 }
  0x50   :  { %3354 = vmatprep.subr.mxu0 %v4477_v37  ;;  %3409 = vmatpush3.msra.mxu1 %v4201_v45  ;;  %v457_v45 = vld [vmem:[#allocation2 + $0x31] sm:$0xff] }
  0x51   :  { %3355 = vmatpush3.msra.mxu0 %v4477_v37  ;;  %3356 = vmatprep.mubr.f32.mxu0 %v452_v39 }
  0x52   :  { %3410 = vmatprep.subr.mxu1 %v4225_v49  ;;  %3357 = vmatmul.mubr.f32.vlgmr.msra.gmra.mxu0 %v453_v41 }
  0x53   :  { %3411 = vmatpush3.msra.mxu1 %v4225_v49  ;;  %3412 = vmatprep.mubr.f32.mxu1 %v4213_v47  ;;  %v630_v47 = vld [vmem:[#allocation2 + $0x97] sm:$0xff] }
  0x54   :  { %3436 = vmatprep.subr.mxu0 %v3920_v1  ;;  %3413 = vmatmul.mubr.f32.vlgmr.msra.gmra.mxu1 %v4218_v48  ;;  %v631_v48 = vld [vmem:[#allocation2 + $0x9f] sm:$0xff] }
  0x55   :  { %3437 = vmatpush3.msra.mxu0 %v3920_v1  ;;  %3492 = vmatprep.subr.mxu1 %v4281_v59  ;;  %v456_v1 = vld [vmem:[#allocation2 + $0x29] sm:$0xff]  ;;  %v952_v49 = vld [vmem:[#allocation2 + $0x99] sm:$0xff] }
  0x56   :  { %3438 = vmatprep.subr.mxu0 %v3932_v4  ;;  %3493 = vmatpush3.msra.mxu1 %v4281_v59  ;;  %v635_v59 = vld [vmem:[#allocation2 + $0xbf] sm:$0xff] }
  0x57   :  { %3359 = vmatprep.mubr.f32.mxu0 %v454_v42  ;;  %3439 = vmatpush3.msra.mxu0 %v3932_v4  ;;  %v458_v4 = vld [vmem:[#allocation2 + $0x39] sm:$0xff] }
  0x58   :  { %3494 = vmatprep.subr.mxu1 %v4301_v62  ;;  %3360 = vmatmul.mubr.f32.gmra.mxu0 %v455_v43 }
  0x59   :  { %3415 = vmatprep.mubr.f32.mxu1 %v4239_v51  ;;  %3440 = vmatprep.subr.mxu0 %v3944_v6  ;;  %v953_v51 = vld [vmem:[#allocation2 + $0xa1] sm:$0xff] }
  0x5a   :  { %3495 = vmatpush3.msra.mxu1 %v4301_v62  ;;  %3441 = vmatpush3.msra.mxu0 %v3944_v6  ;;  %v459_v6 = vld [vmem:[#allocation2 + $0x41] sm:$0xff] }
  0x5b   :  { %3416 = vmatmul.mubr.f32.gmra.mxu1 %v4244_v52  ;;  %3496 = vmatprep.subr.mxu1 %v4342_v46  ;;  %v632_v52 = vld [vmem:[#allocation2 + $0xa7] sm:$0xff] }
  0x5c   :  { %3442 = vmatprep.subr.mxu0 %v3958_v8  ;;  %3497 = vmatpush3.msra.mxu1 %v4342_v46  ;;  %v6211_v46 = vld [vmem:[#allocation4_spill] sm:$0xff] }
  0x5d   :  { %3362 = vmatprep.mubr.f32.mxu0 %v456_v1  ;;  %3443 = vmatpush3.msra.mxu0 %v3958_v8  ;;  %v460_v8 = vld [vmem:[#allocation2 + $0x49] sm:$0xff] }
  0x5e   :  { %3498 = vmatprep.subr.mxu1 %v4357_v19  ;;  %3363 = vmatmul.mubr.f32.gmra.mxu0 %v457_v45  ;;  %v636_v62 = vld [vmem:[#allocation2 + $0xc7] sm:$0xff] }
  0x5f   :  { %3418 = vmatprep.mubr.f32.mxu1 %v4253_v53  ;;  %3444 = vmatprep.subr.mxu0 %v3972_v10  ;;  %v633_v53 = vld [vmem:[#allocation2 + $0xaf] sm:$0xff] }
  0x60   :  { %3499 = vmatpush3.msra.mxu1 %v4357_v19  ;;  %3445 = vmatpush3.msra.mxu0 %v3972_v10  ;;  %v461_v10 = vld [vmem:[#allocation2 + $0x51] sm:$0xff]  ;;  %v961_v19 = vld [vmem:[#allocation2 + $0xe1] sm:$0xff] }
  0x61   :  { %3419 = vmatmul.mubr.f32.gmra.mxu1 %v4258_v54  ;;  %3500 = vmatprep.subr.mxu1 %v4369_v50  ;;  %v954_v54 = vld [vmem:[#allocation2 + $0xa9] sm:$0xff] }
  0x62   :  { %3446 = vmatprep.subr.mxu0 %v3986_v12  ;;  %3501 = vmatpush3.msra.mxu1 %v4369_v50  ;;  %v962_v50 = vld [vmem:[#allocation2 + $0xe9] sm:$0xff] }
  0x63   :  { %3365 = vmatprep.mubr.f32.mxu0 %v458_v4  ;;  %3447 = vmatpush3.msra.mxu0 %v3986_v12  ;;  %v462_v12 = vld [vmem:[#allocation2 + $0x59] sm:$0xff] }
  0x64   :  { %3502 = vmatprep.subr.mxu1 %v4377_v2  ;;  %3366 = vmatmul.mubr.f32.gmra.mxu0 %v459_v6 }
  0x65   :  { %3421 = vmatprep.mubr.f32.mxu1 %v4269_v57  ;;  %3448 = vmatprep.subr.mxu0 %v4000_v14  ;;  %v955_v57 = vld [vmem:[#allocation2 + $0xb1] sm:$0xff] }
  0x66   :  { %3503 = vmatpush3.msra.mxu1 %v4377_v2  ;;  %3449 = vmatpush3.msra.mxu0 %v4000_v14  ;;  %v463_v14 = vld [vmem:[#allocation2 + $0x61] sm:$0xff]  ;;  %v963_v2 = vld [vmem:[#allocation2 + $0xf1] sm:$0xff] }
  0x67   :  { %3422 = vmatmul.mubr.f32.gmra.mxu1 %v4274_v58  ;;  %3504 = vmatprep.subr.mxu1 %v4389_v22  ;;  %v634_v58 = vld [vmem:[#allocation2 + $0xb7] sm:$0xff] }
  0x68   :  { %3450 = vmatprep.subr.mxu0 %v4025_v18  ;;  %3505 = vmatpush3.msra.mxu1 %v4389_v22  ;;  %v964_v22 = vld [vmem:[#allocation2 + $0xf9] sm:$0xff] }
  0x69   :  { %3368 = vmatprep.mubr.f32.mxu0 %v460_v8  ;;  %3451 = vmatpush3.msra.mxu0 %v4025_v18  ;;  %v464_v18 = vld [vmem:[#allocation2 + $0x69] sm:$0xff] }
  0x6a   :  { %3506 = vmatprep.subr.mxu1 %v4397_v7  ;;  %3369 = vmatmul.mubr.f32.gmra.mxu0 %v461_v10 }
  0x6b   :  { %3424 = vmatprep.mubr.f32.mxu1 %v4288_v60  ;;  %3452 = vmatprep.subr.mxu0 %v4062_v24  ;;  %v956_v60 = vld [vmem:[#allocation2 + $0xb9] sm:$0xff] }
  0x6c   :  { %3507 = vmatpush3.msra.mxu1 %v4397_v7  ;;  %3453 = vmatpush3.msra.mxu0 %v4062_v24  ;;  %v465_v24 = vld [vmem:[#allocation2 + $0x71] sm:$0xff]  ;;  %v965_v7 = vld [vmem:[#allocation2 + $0x101] sm:$0xff] }
  0x6d   :  { %3425 = vmatmul.mubr.f32.gmra.mxu1 %v4295_v61  ;;  %3508 = vmatprep.subr.mxu1 %v4409_v27  ;;  %v957_v61 = vld [vmem:[#allocation2 + $0xc1] sm:$0xff] }
  0x6e   :  { %3454 = vmatprep.subr.mxu0 %v4089_v28  ;;  %3509 = vmatpush3.msra.mxu1 %v4409_v27 }
  0x6f   :  { %3371 = vmatprep.mubr.f32.mxu0 %v462_v12  ;;  %3455 = vmatpush3.msra.mxu0 %v4089_v28  ;;  %v466_v28 = vld [vmem:[#allocation2 + $0x79] sm:$0xff] }
  0x70   :  { %3510 = vmatprep.subr.mxu1 %v4417_v11  ;;  %3372 = vmatmul.mubr.f32.gmra.mxu0 %v463_v14 }
  0x71   :  { %3427 = vmatprep.mubr.f32.mxu1 %v4307_v63  ;;  %3456 = vmatprep.subr.mxu0 %v4126_v34  ;;  %v637_v63 = vld [vmem:[#allocation2 + $0xcf] sm:$0xff] }
  0x72   :  { %3511 = vmatpush3.msra.mxu1 %v4417_v11  ;;  %3457 = vmatpush3.msra.mxu0 %v4126_v34  ;;  %v467_v34 = vld [vmem:[#allocation2 + $0x81] sm:$0xff] }
  0x73   :  { %3428 = vmatmul.mubr.f32.gmra.mxu1 %v4312_v3  ;;  %3512 = vmatprep.subr.mxu1 %v4429_v30  ;;  %v958_v3 = vld [vmem:[#allocation2 + $0xc9] sm:$0xff] }
  0x74   :  { %3458 = vmatprep.subr.mxu0 %v4152_v38  ;;  %3513 = vmatpush3.msra.mxu1 %v4429_v30 }
  0x75   :  { %3374 = vmatprep.mubr.f32.mxu0 %v464_v18  ;;  %3459 = vmatpush3.msra.mxu0 %v4152_v38  ;;  %v6210_v38 = vld [vmem:[#allocation3_spill] sm:$0xff] }
  0x76   :  { %3514 = vmatprep.subr.mxu1 %v4437_v16  ;;  %3375 = vmatmul.mubr.f32.gmra.mxu0 %v465_v24 }
  0x77   :  { %3430 = vmatprep.mubr.f32.mxu1 %v4321_v17  ;;  %3460 = vmatprep.subr.mxu0 %v4168_v40  ;;  %v959_v17 = vld [vmem:[#allocation2 + $0xd1] sm:$0xff] }
  0x78   :  { %3515 = vmatpush3.msra.mxu1 %v4437_v16  ;;  %3461 = vmatpush3.msra.mxu0 %v4168_v40  ;;  %v629_v40 = vld [vmem:[#allocation2 + $0x8f] sm:$0xff] }
  0x79   :  { %3431 = vmatmul.mubr.f32.gmra.mxu1 %v4326_v55  ;;  %3516 = vmatprep.subr.mxu1 %v4449_v32  ;;  %v638_v55 = vld [vmem:[#allocation2 + $0xd7] sm:$0xff] }
  0x7a   :  { %3462 = vmatprep.subr.mxu0 %v4194_v44  ;;  %3517 = vmatpush3.msra.mxu1 %v4449_v32 }
  0x7b   :  { %3377 = vmatprep.mubr.f32.mxu0 %v466_v28  ;;  %3463 = vmatpush3.msra.mxu0 %v4194_v44  ;;  %v951_v44 = vld [vmem:[#allocation2 + $0x91] sm:$0xff] }
  0x7c   :  { %3518 = vmatprep.subr.mxu1 %v4457_v26  ;;  %3378 = vmatmul.mubr.f32.gmra.mxu0 %v467_v34 }
  0x7d   :  { %3433 = vmatprep.mubr.f32.mxu1 %v4335_v56  ;;  %3464 = vmatprep.subr.mxu0 %v6210_v38  ;;  %v639_v56 = vld [vmem:[#allocation2 + $0xdf] sm:$0xff] }
  0x7e   :  { %3519 = vmatpush3.msra.mxu1 %v4457_v26  ;;  %3465 = vmatpush3.msra.mxu0 %v6210_v38 }
  0x7f   :  { %3434 = vmatmul.mubr.f32.gmra.mxu1 %v4348_v0  ;;  %3520 = vmatprep.subr.mxu1 %v4469_v36  ;;  %v960_v0 = vld [vmem:[#allocation2 + $0xd9] sm:$0xff] }
  0x80   :  { %3466 = vmatprep.subr.mxu0 %v6211_v46  ;;  %3521 = vmatpush3.msra.mxu1 %v4469_v36 }
  0x81   :  { %3467 = vmatpush3.msra.mxu0 %v6211_v46  ;;  %3468 = vmatprep.mubr.f32.mxu0 %v629_v40 }
  0x82   :  { %3522 = vmatprep.subr.mxu1 %v4477_v37  ;;  %3469 = vmatmul.mubr.f32.vlgmr.msra.gmra.mxu0 %v630_v47 }
  0x83   :  { %3523 = vmatpush3.msra.mxu1 %v4477_v37  ;;  %3524 = vmatprep.mubr.f32.mxu1 %v951_v44 }
  0x84   :  { %3471 = vmatprep.mubr.f32.mxu0 %v631_v48  ;;  %3525 = vmatmul.mubr.f32.vlgmr.msra.gmra.mxu1 %v952_v49 }
  0x85   :  { %3527 = vmatprep.mubr.f32.mxu1 %v953_v51 }
  0x86   :  { %3472 = vmatmul.mubr.f32.gmra.mxu0 %v632_v52 }
  0x87   :  { %3474 = vmatprep.mubr.f32.mxu0 %v633_v53 }
  0x88   :  { %3528 = vmatmul.mubr.f32.gmra.mxu1 %v954_v54 }
  0x89   :  { %3530 = vmatprep.mubr.f32.mxu1 %v955_v57 }
  0x8a   :  { %3475 = vmatmul.mubr.f32.gmra.mxu0 %v634_v58 }
  0x8b   :  { %3477 = vmatprep.mubr.f32.mxu0 %v635_v59 }
  0x8c   :  { %3531 = vmatmul.mubr.f32.gmra.mxu1 %v956_v60 }
  0x8d   :  { %3533 = vmatprep.mubr.f32.mxu1 %v957_v61 }
  0x8e   :  { %3478 = vmatmul.mubr.f32.gmra.mxu0 %v636_v62 }
  0x8f   :  { %3480 = vmatprep.mubr.f32.mxu0 %v637_v63 }
  0x90   :  { %3534 = vmatmul.mubr.f32.gmra.mxu1 %v958_v3 }
  0x91   :  { %3536 = vmatprep.mubr.f32.mxu1 %v959_v17 }
  0x92   :  { %3481 = vmatmul.mubr.f32.gmra.mxu0 %v638_v55 }
  0x93   :  { %3483 = vmatprep.mubr.f32.mxu0 %v639_v56 }
  0x94   :  { %3537 = vmatmul.mubr.f32.gmra.mxu1 %v960_v0 }
  0x95   :  { %3539 = vmatprep.mubr.f32.mxu1 %v961_v19 }
  0x96   :  { %3484 = vmatmul.mubr.f32.gmra.mxu0 %v640_v15 }
  0x97   :  { %3486 = vmatprep.mubr.f32.mxu0 %v641_v20 }
  0x98   :  { %3540 = vmatmul.mubr.f32.gmra.mxu1 %v962_v50 }
  0x99   :  { %3542 = vmatprep.mubr.f32.mxu1 %v963_v2 }
  0x9a   :  { %3487 = vmatmul.mubr.f32.gmra.mxu0 %v642_v5 }
  0x9b   :  { %3489 = vmatprep.mubr.f32.mxu0 %v643_v21 }
  0x9c   :  { %3543 = vmatmul.mubr.f32.gmra.mxu1 %v964_v22 }
  0x9d   :  { %3545 = vmatprep.mubr.f32.mxu1 %v965_v7 }
  0x9e   :  { %3490 = vmatmul.mubr.f32.gmra.mxu0 %v644_v9 }
  0xa0   :  { %3546 = vmatmul.mubr.f32.gmra.mxu1 %v966_v25 }
  0xe3   :  { %v3246_v27 = vpop.f32.mrf.mxu0 }
  0xe4   :  { %v3302_v11 = vpop.f32.mrf.mxu1 }
  0xe5   :  { %v379_v13 = vadd.f32 %v3302_v11, %v3246_v27  ;;  %v228_v29 = vpop.f32.mrf.mxu0 }
  0xe6   :  { %v373_v30 = vpop.f32.mrf.mxu1 }
  0xe7   :  { %v374_v16 = vadd.f32 %v373_v30, %v228_v29 }
  0xe9   :  { %v3249_v23 = vpop.f32.mrf.mxu0  ;;  %v3305_v31 = vpop.f32.mrf.mxu1 }
  0xea   :  { %v389_v32 = vadd.f32 %v3305_v31, %v3249_v23 }
  0xeb   :  { %v238_v26 = vpop.f32.mrf.mxu0  ;;  %v383_v33 = vpop.f32.mrf.mxu1 }
  0xec   :  { %v384_v55 = vadd.f32 %v383_v33, %v238_v26 }
  0xef   :  { %v3252_v35 = vpop.f32.mrf.mxu0  ;;  %v3308_v36 = vpop.f32.mrf.mxu1 }
  0xf0   :  { %v4568_v37 = vadd.f32 %v3308_v36, %v3252_v35 }
  0xf1   :  { %v248_v39 = vpop.f32.mrf.mxu0  ;;  %v393_v41 = vpop.f32.mrf.mxu1 }
  0xf2   :  { %v394_v11 = vadd.f32 %v393_v41, %v248_v39 }
  0xf5   :  { %v3255_v42 = vpop.f32.mrf.mxu0  ;;  %v3311_v43 = vpop.f32.mrf.mxu1 }
  0xf6   :  { %v4570_v1 = vadd.f32 %v3311_v43, %v3255_v42 }
  0xf7   :  { %v258_v45 = vpop.f32.mrf.mxu0  ;;  %v403_v4 = vpop.f32.mrf.mxu1 }
  0xf8   :  { %v404_v43 = vadd.f32 %v403_v4, %v258_v45 }
  0xfb   :  { %v3258_v6 = vpop.f32.mrf.mxu0  ;;  %v3314_v8 = vpop.f32.mrf.mxu1 }
  0xfc   :  { %v4572_v10 = vadd.f32 %v3314_v8, %v3258_v6 }
  0xfd   :  { %v4574_v12 = vpop.f32.mrf.mxu0  ;;  %v4576_v14 = vpop.f32.mrf.mxu1 }
 0x101   :  { %v3261_v18 = vpop.f32.mrf.mxu0  ;;  %v3317_v24 = vpop.f32.mrf.mxu1 }
 0x102   :  { %v4578_v28 = vadd.f32 %v3317_v24, %v3261_v18 }
 0x103   :  { %v4580_v34 = vpop.f32.mrf.mxu0  ;;  %v4582_v38 = vpop.f32.mrf.mxu1 }
 0x107   :  { %v3264_v40 = vpop.f32.mrf.mxu0  ;;  %v3320_v46 = vpop.f32.mrf.mxu1 }
 0x108   :  { %v4584_v47 = vadd.f32 %v3320_v46, %v3264_v40 }
 0x109   :  { %v4586_v44 = vpop.f32.mrf.mxu0  ;;  %v4588_v48 = vpop.f32.mrf.mxu1 }
 0x10d   :  { %v3267_v49 = vpop.f32.mrf.mxu0  ;;  %v3323_v51 = vpop.f32.mrf.mxu1 }
 0x10e   :  { %v4590_v52 = vadd.f32 %v3323_v51, %v3267_v49 }
 0x10f   :  { %v4592_v53 = vpop.f32.mrf.mxu0  ;;  %v4594_v54 = vpop.f32.mrf.mxu1 }
 0x112   :  { %v3358_v57 = vpop.f32.mrf.mxu0 }
 0x113   :  { %v4608_v15 = vadd.f32 %v3358_v57, %v379_v13 }
 0x114   :  { %v4596_v58 = vpop.f32.mrf.mxu1  ;;  %v534_v59 = vpop.f32.mrf.mxu0 }
 0x115   :  { %v4604_v56 = vadd.f32 %v534_v59, %v374_v16  ;;  %v1151_v22 = vmul.f32 %v4608_v15, %v4608_v15 }
 0x116   :  { %v4598_v60 = vpop.f32.mrf.mxu1 }
 0x117   :  { %v1128_v2 = vadd.f32 %v4608_v15, %v4604_v56  ;;  %v1150_v5 = vmul.f32 %v4604_v56, %v4604_v56 }
 0x118   :  { %v3361_v61 = vpop.f32.mrf.mxu0 }
 0x119   :  { %v1166_v13 = vadd.f32 %v1151_v22, %v1150_v5  ;;  %v4625_v29 = vadd.f32 %v3361_v61, %v389_v32  ;;  %v414_v61 = vadd.f32 %v4576_v14, %v4574_v12 }
 0x11a   :  { %v544_v63 = vpop.f32.mrf.mxu0 }
 0x11b   :  { %v4600_v62 = vpop.f32.mrf.mxu1  ;;  %v4610_v20 = vadd.f32 %v544_v63, %v384_v55  ;;  %v1153_v33 = vmul.f32 %v4625_v29, %v4625_v29 }
 0x11d   :  { %v4602_v3 = vpop.f32.mrf.mxu1  ;;  %v1129_v7 = vadd.f32 %v1128_v2, %v4610_v20  ;;  %v1152_v9 = vmul.f32 %v4610_v20, %v4610_v20 }
 0x11e   :  { %v3364_v17 = vpop.f32.mrf.mxu0 }
 0x11f   :  { %v1167_v16 = vadd.f32 %v1166_v13, %v1152_v9  ;;  %v1130_v31 = vadd.f32 %v1129_v7, %v4625_v29  ;;  %v4642_v6 = vadd.f32 %v3364_v17, %v4568_v37 }
 0x120   :  { %v554_v19 = vpop.f32.mrf.mxu0 }
 0x121   :  { %v4606_v0 = vpop.f32.mrf.mxu1  ;;  %v4629_v23 = vadd.f32 %v554_v19, %v394_v11  ;;  %v1168_v39 = vadd.f32 %v1167_v16, %v1153_v33  ;;  %v1155_v51 = vmul.f32 %v4642_v6, %v4642_v6  ;;  %v424_v11 = vadd.f32 %v4582_v38, %v4580_v34 }
 0x123   :  { %v4612_v50 = vpop.f32.mrf.mxu1  ;;  %v1131_v42 = vadd.f32 %v1130_v31, %v4629_v23  ;;  %v1154_v32 = vmul.f32 %v4629_v23, %v4629_v23 }
 0x124   :  { %v3367_v21 = vpop.f32.mrf.mxu0 }
 0x125   :  { %v1169_v18 = vadd.f32 %v1168_v39, %v1154_v32  ;;  %v1132_v40 = vadd.f32 %v1131_v42, %v4642_v6  ;;  %v4661_v63 = vadd.f32 %v3367_v21, %v4570_v1 }
 0x126   :  { %v564_v27 = vpop.f32.mrf.mxu0 }
 0x127   :  { %v4623_v25 = vpop.f32.mrf.mxu1  ;;  %v4644_v24 = vadd.f32 %v564_v27, %v404_v43  ;;  %v1170_v45 = vadd.f32 %v1169_v18, %v1155_v51  ;;  %v1157_v7 = vmul.f32 %v4661_v63, %v4661_v63 }
 0x129   :  { %v4627_v30 = vpop.f32.mrf.mxu1  ;;  %v1133_v59 = vadd.f32 %v1132_v40, %v4644_v24  ;;  %v1156_v37 = vmul.f32 %v4644_v24, %v4644_v24 }
 0x12a   :  { %v3370_v26 = vpop.f32.mrf.mxu0 }
 0x12b   :  { %v1171_v19 = vadd.f32 %v1170_v45, %v1156_v37  ;;  %v1134_v5 = vadd.f32 %v1133_v59, %v4661_v63  ;;  %v4684_v13 = vadd.f32 %v3370_v26, %v4572_v10  ;;  %v434_v37 = vadd.f32 %v4588_v48, %v4586_v44 }
 0x12c   :  { %v574_v36 = vpop.f32.mrf.mxu0 }
 0x12d   :  { %v4634_v35 = vpop.f32.mrf.mxu1  ;;  %v4665_v2 = vadd.f32 %v574_v36, %v414_v61  ;;  %v1172_v14 = vadd.f32 %v1171_v19, %v1157_v7  ;;  %v1159_v39 = vmul.f32 %v4684_v13, %v4684_v13 }
 0x12f   :  { %v4639_v41 = vpop.f32.mrf.mxu1  ;;  %v1135_v12 = vadd.f32 %v1134_v5, %v4665_v2  ;;  %v1158_v1 = vmul.f32 %v4665_v2, %v4665_v2 }
 0x130   :  { %v3373_v8 = vpop.f32.mrf.mxu0 }
 0x131   :  { %v1173_v31 = vadd.f32 %v1172_v14, %v1158_v1  ;;  %v1136_v36 = vadd.f32 %v1135_v12, %v4684_v13  ;;  %v4706_v45 = vadd.f32 %v3373_v8, %v4578_v28 }
 0x132   :  { %v584_v49 = vpop.f32.mrf.mxu0 }
 0x133   :  { %v4647_v46 = vpop.f32.mrf.mxu1  ;;  %v4688_v33 = vadd.f32 %v584_v49, %v424_v11  ;;  %v1174_v26 = vadd.f32 %v1173_v31, %v1159_v39 }
 0x135   :  { %v4651_v57 = vpop.f32.mrf.mxu1  ;;  %v1137_v10 = vadd.f32 %v1136_v36, %v4688_v33  ;;  %v1160_v38 = vmul.f32 %v4688_v33, %v4688_v33 }
 0x136   :  { %v4656_v4 = vpop.f32.mrf.mxu0 }
 0x137   :  { %v1175_v7 = vadd.f32 %v1174_v26, %v1160_v38  ;;  %v1138_v1 = vadd.f32 %v1137_v10, %v4706_v45 }
 0x138   :  { %v594_v55 = vpop.f32.mrf.mxu0 }
 0x139   :  { %v4663_v17 = vpop.f32.mrf.mxu1  ;;  %v4711_v12 = vadd.f32 %v594_v55, %v434_v37  ;;  %v4743_v37 = vadd.f32 %v4656_v4, %v4584_v47 }
 0x13b   :  { %v4668_v22 = vpop.f32.mrf.mxu1 }
 0x13c   :  { %v4672_v9 = vpop.f32.mrf.mxu0 }
 0x13e   :  { %v4679_v27 = vpop.f32.mrf.mxu0 }
 0x13f   :  { %v4677_v21 = vpop.f32.mrf.mxu1 }
 0x141   :  { %v4686_v16 = vpop.f32.mrf.mxu1 }
 0x142   :  { %v3470_v42 = vpop.f32.mrf.mxu0 }
 0x143   :  { %v878_v32 = vadd.f32 %v3470_v42, %v4596_v58 }
 0x144   :  { %v3526_v43 = vpop.f32.mrf.mxu1  ;;  %v872_v18 = vpop.f32.mrf.mxu0 }
 0x145   :  { %v873_v34 = vadd.f32 %v872_v18, %v4598_v60  ;;  %v4698_v40 = vadd.f32 %v3526_v43, %v878_v32  ;;  %v1139_v43 = vadd.f32 %v1138_v1, %v4711_v12  ;;  %v1162_v18 = vmul.f32 %v4711_v12, %v4711_v12 }
 0x146   :  { %v1033_v49 = vpop.f32.mrf.mxu1  ;;  %v3473_v51 = vpop.f32.mrf.mxu0 }
 0x147   :  { %v4700_v59 = vadd.f32 %v1033_v49, %v873_v34  ;;  %v888_v58 = vadd.f32 %v3473_v51, %v4600_v62  ;;  %v1211_v62 = vmul.f32 %v4698_v40, %v4698_v40 }
 0x148   :  { %v3529_v60 = vpop.f32.mrf.mxu1  ;;  %v882_v61 = vpop.f32.mrf.mxu0 }
 0x149   :  { %v1210_v19 = vmul.f32 %v4700_v59, %v4700_v59  ;;  %v883_v5 = vadd.f32 %v882_v61, %v4602_v3  ;;  %v1188_v28 = vadd.f32 %v4698_v40, %v4700_v59  ;;  %v4718_v48 = vadd.f32 %v3529_v60, %v888_v58 }
 0x14a   :  { %v1043_v14 = vpop.f32.mrf.mxu1  ;;  %v3476_v44 = vpop.f32.mrf.mxu0  ;;  %v1161_v3 = vmul.f32 %v4706_v45, %v4706_v45 }
 0x14b   :  { %v4720_v8 = vadd.f32 %v1043_v14, %v883_v5  ;;  %v898_v11 = vadd.f32 %v3476_v44, %v4606_v0  ;;  %v1226_v36 = vadd.f32 %v1211_v62, %v1210_v19  ;;  %v1213_v26 = vmul.f32 %v4718_v48, %v4718_v48 }
 0x14c   :  { %v3532_v55 = vpop.f32.mrf.mxu1  ;;  %v892_v31 = vpop.f32.mrf.mxu0  ;;  %v1176_v34 = vadd.f32 %v1175_v7, %v1161_v3 }
 0x14d   :  { %v1189_v42 = vadd.f32 %v1188_v28, %v4720_v8  ;;  %v1212_v32 = vmul.f32 %v4720_v8, %v4720_v8  ;;  %v893_v39 = vadd.f32 %v892_v31, %v4612_v50  ;;  %v4732_v0 = vadd.f32 %v3532_v55, %v898_v11 }
 0x14e   :  { %v1053_v10 = vpop.f32.mrf.mxu1  ;;  %v3479_v38 = vpop.f32.mrf.mxu0  ;;  %v444_v50 = vadd.f32 %v4594_v54, %v4592_v53  ;;  %v1177_v14 = vadd.f32 %v1176_v34, %v1162_v18  ;;  %v1140_v53 = vadd.f32 %v1139_v43, %v4743_v37 }
 0x14f   :  { %v1227_v49 = vadd.f32 %v1226_v36, %v1212_v32  ;;  %v4736_v51 = vadd.f32 %v1053_v10, %v893_v39  ;;  %v1190_v58 = vadd.f32 %v1189_v42, %v4718_v48  ;;  %v908_v60 = vadd.f32 %v3479_v38, %v4623_v25 }
 0x150   :  { %v3535_v61 = vpop.f32.mrf.mxu1  ;;  %v902_v19 = vpop.f32.mrf.mxu0  ;;  %v4751_v44 = vadd.f32 %v4679_v27, %v444_v50  ;;  %v1215_v47 = vmul.f32 %v4732_v0, %v4732_v0 }
 0x151   :  { %v1191_v5 = vadd.f32 %v1190_v58, %v4736_v51  ;;  %v1214_v7 = vmul.f32 %v4736_v51, %v4736_v51  ;;  %v1228_v1 = vadd.f32 %v1227_v49, %v1213_v26  ;;  %v903_v62 = vadd.f32 %v902_v19, %v4627_v30 }
 0x152   :  { %v1063_v54 = vpop.f32.mrf.mxu1  ;;  %v3482_v25 = vpop.f32.mrf.mxu0  ;;  %v4756_v28 = vadd.f32 %v3535_v61, %v908_v60  ;;  %v1163_v30 = vmul.f32 %v4743_v37, %v4743_v37  ;;  %v1141_v39 = vadd.f32 %v1140_v53, %v4751_v44  ;;  %v1164_v43 = vmul.f32 %v4751_v44, %v4751_v44 }
 0x153   :  { %v1229_v4 = vadd.f32 %v1228_v1, %v1214_v7  ;;  %v4758_v11 = vadd.f32 %v1063_v54, %v903_v62  ;;  %v1192_v3 = vadd.f32 %v1191_v5, %v4732_v0  ;;  %v918_v27 = vadd.f32 %v3482_v25, %v4634_v35 }
 0x154   :  { %v3538_v55 = vpop.f32.mrf.mxu1  ;;  %v912_v31 = vpop.f32.mrf.mxu0  ;;  %v1178_v18 = vadd.f32 %v1177_v14, %v1163_v30  ;;  %v1217_v35 = vmul.f32 %v4756_v28, %v4756_v28  ;;  %v4781_v5 = vadd.f32 %v4672_v9, %v4590_v52 }
 0x155   :  { %v1193_v36 = vadd.f32 %v1192_v3, %v4758_v11  ;;  %v1216_v42 = vmul.f32 %v4758_v11, %v4758_v11  ;;  %v1230_v32 = vadd.f32 %v1229_v4, %v1215_v47  ;;  %v913_v34 = vadd.f32 %v912_v31, %v4639_v41 }
 0x156   :  { %v1073_v10 = vpop.f32.mrf.mxu1  ;;  %v3485_v38 = vpop.f32.mrf.mxu0  ;;  %v4775_v50 = vadd.f32 %v3538_v55, %v918_v27  ;;  %v1142_v53 = vadd.f32 %v1141_v39, %v4781_v5  ;;  %v1179_v47 = vadd.f32 %v1178_v18, %v1164_v43  ;;  %v1165_v27 = vmul.f32 %v4781_v5, %v4781_v5 }
 0x157   :  { %v1231_v26 = vadd.f32 %v1230_v32, %v1216_v42  ;;  %v1194_v49 = vadd.f32 %v1193_v36, %v4756_v28  ;;  %v928_v58 = vadd.f32 %v3485_v38, %v4647_v46  ;;  %v4777_v60 = vadd.f32 %v1073_v10, %v913_v34 }
 0x158   :  { %v3541_v61 = vpop.f32.mrf.mxu1  ;;  %v922_v19 = vpop.f32.mrf.mxu0  ;;  %v1219_v52 = vmul.f32 %v4775_v50, %v4775_v50  ;;  %v1143_v43 = vrot.slane %v1142_v53, 4  ;;  %v1180_v18 = vadd.f32 %v1179_v47, %v1165_v27 }
 0x159   :  { %v1232_v41 = vadd.f32 %v1231_v26, %v1217_v35  ;;  %v923_v7 = vadd.f32 %v922_v19, %v4651_v57  ;;  %v1195_v1 = vadd.f32 %v1194_v49, %v4777_v60  ;;  %v1218_v62 = vmul.f32 %v4777_v60, %v4777_v60 }
 0x15a   :  { %v1083_v14 = vpop.f32.mrf.mxu1  ;;  %v3488_v46 = vpop.f32.mrf.mxu0  ;;  %v4788_v54 = vadd.f32 %v3541_v61, %v928_v58 }
 0x15b   :  { %v4790_v25 = vadd.f32 %v1083_v14, %v923_v7  ;;  %v1233_v9 = vadd.f32 %v1232_v41, %v1218_v62  ;;  %v1196_v57 = vadd.f32 %v1195_v1, %v4775_v50  ;;  %v938_v4 = vadd.f32 %v3488_v46, %v4663_v17 }
 0x15c   :  { %v3544_v3 = vpop.f32.mrf.mxu1  ;;  %v932_v30 = vpop.f32.mrf.mxu0  ;;  %v1221_v17 = vmul.f32 %v4788_v54, %v4788_v54  ;;  %v1181_v1 = vrot.slane %v1180_v18, 4  ;;  %v1144_v14 = vadd.f32 %v1143_v43, %v1142_v53 }
 0x15d   :  { %v1220_v55 = vmul.f32 %v4790_v25, %v4790_v25  ;;  %v933_v31 = vadd.f32 %v932_v30, %v4668_v22  ;;  %v1197_v36 = vadd.f32 %v1196_v57, %v4790_v25  ;;  %v1234_v42 = vadd.f32 %v1233_v9, %v1219_v52 }
 0x15e   :  { %v1093_v32 = vpop.f32.mrf.mxu1  ;;  %v3491_v39 = vpop.f32.mrf.mxu0  ;;  %v4806_v38 = vadd.f32 %v3544_v3, %v938_v4  ;;  %v1145_v4 = vrot.slane %v1144_v14, 2  ;;  %v1182_v27 = vadd.f32 %v1181_v1, %v1180_v18 }
 0x15f   :  { %v4804_v34 = vadd.f32 %v1093_v32, %v933_v31  ;;  %v1235_v10 = vadd.f32 %v1234_v42, %v1220_v55  ;;  %v1198_v35 = vadd.f32 %v1197_v36, %v4788_v54  ;;  %v948_v26 = vadd.f32 %v3491_v39, %v4677_v21 }
 0x160   :  { %v3547_v22 = vpop.f32.mrf.mxu1  ;;  %v942_v49 = vpop.f32.mrf.mxu0  ;;  %v1223_v46 = vmul.f32 %v4806_v38, %v4806_v38  ;;  %v1146_v42 = vadd.f32 %v1145_v4, %v1144_v14  ;;  %v1183_v39 = vrot.slane %v1182_v27, 2  ;;  %v4871_v4 = vld [vmem:[%s6146_s2 + $0xd8] sm:$0xff] }
 0x161   :  { %v1222_v58 = vmul.f32 %v4804_v34, %v4804_v34  ;;  %v943_v61 = vadd.f32 %v942_v49, %v4686_v16  ;;  %v1199_v19 = vadd.f32 %v1198_v35, %v4804_v34  ;;  %v1236_v41 = vadd.f32 %v1235_v10, %v1221_v17 }
 0x162   :  { %v1103_v7 = vpop.f32.mrf.mxu1  ;;  %v4818_v21 = vadd.f32 %v3547_v22, %v948_v26  ;;  %v1147_v10 = vrot.slane %v1146_v42, 1  ;;  %v1184_v26 = vadd.f32 %v1183_v39, %v1182_v27  ;;  %v4899_v27 = vld [vmem:[%s6146_s2 + $0xc8] sm:$0xff]  ;;  %v4941_v39 = vld [vmem:[%s6146_s2 + $0xb0] sm:$0xff] }
 0x163   :  { %v4814_v62 = vadd.f32 %v1103_v7, %v943_v61  ;;  %v1237_v47 = vadd.f32 %v1236_v41, %v1222_v58  ;;  %v1200_v52 = vadd.f32 %v1199_v19, %v4806_v38 }
 0x164   :  { %v1225_v3 = vmul.f32 %v4818_v21, %v4818_v21  ;;  %v1148_v61 = vadd.f32 %v1147_v10, %v1146_v42  ;;  %v1185_v41 = vrot.slane %v1184_v26, 1  ;;  %v4927_v42 = vld [vmem:[%s6146_s2 + $0xb8] sm:$0xff]  ;;  %v4963_v10 = vld [vmem:[%s6146_s2 + $0x40] sm:$0xff] }
 0x165   :  { %v1224_v9 = vmul.f32 %v4814_v62, %v4814_v62  ;;  %v1201_v16 = vadd.f32 %v1200_v52, %v4814_v62  ;;  %v1238_v57 = vadd.f32 %v1237_v47, %v1223_v46  ;;  %v4838_v47 = vld [vmem:[%s6146_s2 + $0xf8] sm:$0xff]  ;;  %v4845_v52 = vld [vmem:[%s6146_s2 + $0xf0] sm:$0xff]  ;;  %6219 = vst [vmem:[#allocation10_spill] sm:$0xff] %v4963_v10 }
 0x166   :  { %v1186_v1 = vadd.f32 %v1185_v41, %v1184_v26  ;;  %3548 = vmatprep.subr.mxu0 %v4838_v47  ;;  %v4977_v26 = vld [vmem:[%s6146_s2 + $0x38] sm:$0xff]  ;;  %v5019_v41 = vld [vmem:[%s6146_s2 + $0x20] sm:$0xff] }
 0x167   :  { %v1202_v53 = vadd.f32 %v1201_v16, %v4818_v21  ;;  %v1239_v30 = vadd.f32 %v1238_v57, %v1224_v9  ;;  %3549 = vmatpush3.msra.mxu0 %v4838_v47  ;;  %v4852_v9 = vld [vmem:[%s6146_s2 + $0xe8] sm:$0xff]  ;;  %v4859_v16 = vld [vmem:[%s6146_s2 + $0xe0] sm:$0xff]  ;;  %v4865_v57 = vld [vmem:[%s6146_s2 + $0x78] sm:$0xff]  ;;  %6220 = vst [vmem:[#allocation11_spill] sm:$0xff] %v4977_v26 }
 0x168   :  { %3550 = vmatprep.subr.mxu0 %v4845_v52  ;;  %6212 = vst [vmem:[#allocation3_spill] sm:$0xff] %v4865_v57  ;;  %3604 = vmatprep.subr.mxu1 %v4865_v57  ;;  %6223 = vst [vmem:[#allocation14_spill] sm:$0xff] %v5019_v41 }
 0x169   :  { %v1203_v55 = vrot.slane %v1202_v53, 4  ;;  %v1240_v31 = vadd.f32 %v1239_v30, %v1225_v3  ;;  %3551 = vmatpush3.msra.mxu0 %v4845_v52  ;;  %3605 = vmatpush3.msra.mxu1 %v4865_v57  ;;  %v4879_v3 = vld [vmem:[%s6146_s2 + $0x70] sm:$0xff]  ;;  %v4893_v30 = vld [vmem:[%s6146_s2 + $0x68] sm:$0xff] }
 0x16a   :  { %3552 = vmatprep.subr.mxu0 %v4852_v9  ;;  %6213 = vst [vmem:[#allocation4_spill] sm:$0xff] %v4879_v3  ;;  %3606 = vmatprep.subr.mxu1 %v4879_v3  ;;  %6214 = vst [vmem:[#allocation5_spill] sm:$0xff] %v4893_v30 }
 0x16b   :  { %v1241_v36 = vrot.slane %v1240_v31, 4  ;;  %v1204_v32 = vadd.f32 %v1203_v55, %v1202_v53  ;;  %3553 = vmatpush3.msra.mxu0 %v4852_v9  ;;  %v4885_v53 = vld [vmem:[%s6146_s2 + $0xd0] sm:$0xff]  ;;  %3607 = vmatpush3.msra.mxu1 %v4879_v3  ;;  %v4907_v55 = vld [vmem:[%s6146_s2 + $0x60] sm:$0xff] }
 0x16c   :  { %3554 = vmatprep.subr.mxu0 %v4859_v16  ;;  %3608 = vmatprep.subr.mxu1 %v4893_v30  ;;  %6215 = vst [vmem:[#allocation6_spill] sm:$0xff] %v4907_v55 }
 0x16d   :  { %v1205_v43 = vrot.slane %v1204_v32, 2  ;;  %v1242_v17 = vadd.f32 %v1241_v36, %v1240_v31  ;;  %3555 = vmatpush3.msra.mxu0 %v4859_v16  ;;  %3609 = vmatpush3.msra.mxu1 %v4893_v30  ;;  %v4913_v31 = vld [vmem:[%s6146_s2 + $0xc0] sm:$0xff]  ;;  %v4921_v36 = vld [vmem:[%s6146_s2 + $0x58] sm:$0xff] }
 0x16e   :  { %3556 = vmatprep.subr.mxu0 %v4871_v4  ;;  %3610 = vmatprep.subr.mxu1 %v4907_v55  ;;  %6216 = vst [vmem:[#allocation7_spill] sm:$0xff] %v4921_v36 }
 0x16f   :  { %v1206_v35 = vadd.f32 %v1205_v43, %v1204_v32  ;;  %v1243_v22 = vrot.slane %v1242_v17, 2  ;;  %3557 = vmatpush3.msra.mxu0 %v4871_v4  ;;  %3611 = vmatpush3.msra.mxu1 %v4907_v55  ;;  %v4935_v32 = vld [vmem:[%s6146_s2 + $0x50] sm:$0xff]  ;;  %v4949_v43 = vld [vmem:[%s6146_s2 + $0x48] sm:$0xff] }
 0x170   :  { %3558 = vmatprep.subr.mxu0 %v4885_v53  ;;  %3612 = vmatprep.subr.mxu1 %v4921_v36  ;;  %6217 = vst [vmem:[#allocation8_spill] sm:$0xff] %v4935_v32  ;;  %6218 = vst [vmem:[#allocation9_spill] sm:$0xff] %v4949_v43 }
 0x171   :  { %v1207_v49 = vrot.slane %v1206_v35, 1  ;;  %v1244_v58 = vadd.f32 %v1243_v22, %v1242_v17  ;;  %3559 = vmatpush3.msra.mxu0 %v4885_v53  ;;  %3613 = vmatpush3.msra.mxu1 %v4921_v36  ;;  %v4955_v17 = vld [vmem:[%s6146_s2 + $0xa8] sm:$0xff]  ;;  %v4983_v22 = vld [vmem:[%s6146_s2 + $0x98] sm:$0xff] }
 0x172   :  { %3560 = vmatprep.subr.mxu0 %v4899_v27  ;;  %3614 = vmatprep.subr.mxu1 %v4935_v32 }
 0x173   :  { %v1208_v19 = vadd.f32 %v1207_v49, %v1206_v35  ;;  %v1245_v7 = vrot.slane %v1244_v58, 1  ;;  %3561 = vmatpush3.msra.mxu0 %v4899_v27  ;;  %3615 = vmatpush3.msra.mxu1 %v4935_v32  ;;  %v4969_v35 = vld [vmem:[%s6146_s2 + $0xa0] sm:$0xff]  ;;  %v4991_v49 = vld [vmem:[%s6146_s2 + $0x30] sm:$0xff]  ;;  %v1261_v32 = vlaneseq }
 0x174   :  { %3562 = vmatprep.subr.mxu0 %v4913_v31  ;;  %3616 = vmatprep.subr.mxu1 %v4949_v43  ;;  %6221 = vst [vmem:[#allocation12_spill] sm:$0xff] %v4991_v49 }
 0x175   :  { %v4827_v46 = vadd.f32 %v1208_v19, %v1148_v61  ;;  %v1246_v18 = vadd.f32 %v1245_v7, %v1244_v58  ;;  %3563 = vmatpush3.msra.mxu0 %v4913_v31  ;;  %3617 = vmatpush3.msra.mxu1 %v4949_v43  ;;  %v4997_v58 = vld [vmem:[%s6146_s2 + $0x90] sm:$0xff]  ;;  %v5005_v61 = vld [vmem:[%s6146_s2 + $0x28] sm:$0xff]  ;;  %v5025_v7 = vld [vmem:[%s6146_s2 + $0x80] sm:$0xff]  ;;  %v1262_v30 = vshrl.u32 %v1261_v32, 7 }
 0x176   :  { %3564 = vmatprep.subr.mxu0 %v4927_v42  ;;  %3618 = vmatprep.subr.mxu1 %v4963_v10  ;;  %6222 = vst [vmem:[#allocation13_spill] sm:$0xff] %v5005_v61  ;;  %v5011_v19 = vld [vmem:[%s6146_s2 + $0x88] sm:$0xff]  ;;  %6224 = vst [vmem:[#allocation15_spill] sm:$0xff] %v5025_v7 }
 0x177   :  { %1248 = vrot.lane.b32.xlu0 %v4827_v46, %s3891_s1  ;;  %v4831_v14 = vadd.f32 %v1246_v18, %v1186_v1  ;;  %3565 = vmatpush3.msra.mxu0 %v4927_v42  ;;  %v5033_v18 = vld [vmem:[%s6146_s2 + $0x18] sm:$0xff]  ;;  %v5038_v1 = vld [vmem:[%s6146_s2 + $0x10] sm:$0xff] }
 0x178   :  { %3566 = vmatprep.subr.mxu0 %v4941_v39  ;;  %3619 = vmatpush3.msra.mxu1 %v4963_v10  ;;  %6225 = vst [vmem:[#allocation16_spill] sm:$0xff] %v5033_v18  ;;  %6226 = vst [vmem:[#allocation17_spill] sm:$0xff] %v5038_v1 }
 0x179   :  { %3567 = vmatpush3.msra.mxu0 %v4941_v39  ;;  %3620 = vmatprep.subr.mxu1 %v4977_v26 }
 0x17a   :  { %3568 = vmatprep.subr.mxu0 %v4955_v17  ;;  %3621 = vmatpush3.msra.mxu1 %v4977_v26 }
 0x17b   :  { %1253 = vrot.lane.b32.xlu0 %v4831_v14, %s3891_s1  ;;  %3569 = vmatpush3.msra.mxu0 %v4955_v17 }
 0x17c   :  { %3570 = vmatprep.subr.mxu0 %v4969_v35  ;;  %3622 = vmatprep.subr.mxu1 %v4991_v49 }
 0x17d   :  { %3571 = vmatpush3.msra.mxu0 %v4969_v35  ;;  %3623 = vmatpush3.msra.mxu1 %v4991_v49  ;;  %v5059_v49 = vld [vmem:[%s6146_s2] sm:$0xff] }
 0x17e   :  { %3572 = vmatprep.subr.mxu0 %v4983_v22  ;;  %3624 = vmatprep.subr.mxu1 %v5005_v61  ;;  %6228 = vst [vmem:[#allocation19_spill] sm:$0xff] %v5059_v49 }
 0x17f   :  { %3573 = vmatpush3.msra.mxu0 %v4983_v22  ;;  %3625 = vmatpush3.msra.mxu1 %v5005_v61  ;;  %v5045_v61 = vld [vmem:[%s6146_s2 + $0x178] sm:$0xff] }
 0x180   :  { %3574 = vmatprep.subr.mxu0 %v4997_v58  ;;  %3626 = vmatprep.subr.mxu1 %v5019_v41 }
 0x181   :  { %3575 = vmatpush3.msra.mxu0 %v4997_v58  ;;  %3627 = vmatpush3.msra.mxu1 %v5019_v41  ;;  %v5051_v41 = vld [vmem:[%s6146_s2 + $0x8] sm:$0xff] }
 0x182   :  { %3576 = vmatprep.subr.mxu0 %v5011_v19  ;;  %3628 = vmatprep.subr.mxu1 %v5033_v18  ;;  %6227 = vst [vmem:[#allocation18_spill] sm:$0xff] %v5051_v41 }
 0x183   :  { %3577 = vmatpush3.msra.mxu0 %v5011_v19  ;;  %3629 = vmatpush3.msra.mxu1 %v5033_v18 }
 0x184   :  { %3578 = vmatprep.subr.mxu0 %v5025_v7  ;;  %3630 = vmatprep.subr.mxu1 %v5038_v1 }
 0x185   :  { %3579 = vmatpush3.msra.mxu0 %v5025_v7  ;;  %3631 = vmatpush3.msra.mxu1 %v5038_v1 }
 0x186   :  { %3660 = vmatprep.subr.mxu0 %v5045_v61  ;;  %3632 = vmatprep.subr.mxu1 %v5051_v41 }
 0x187   :  { %3633 = vmatpush3.msra.mxu1 %v5051_v41  ;;  %v5068_v41 = vsub.s32 0, %v1262_v30 }
 0x188   :  { %3634 = vmatprep.subr.mxu1 %v5059_v49 }
 0x189   :  { %3635 = vmatpush3.msra.mxu1 %v5059_v49 }
 0x18a   :  { %3716 = vmatprep.subr.mxu1 %v4838_v47 }
 0x1e9   :  { %v1249_v18 = vpop.permute.xlu0 %1248 }
 0x1ea   :  { %v1250_v26 = vadd.f32 %v1249_v18, %v4827_v46 }
 0x1ec   :  { %v1252_v1 = vmul.f32 0.001953125, %v1250_v26 }
 0x1ed   :  { %v1254_v10 = vpop.permute.xlu0 %1253 }
 0x1ee   :  { %v1255_v43 = vadd.f32 %v1254_v10, %v4831_v14  ;;  %v1257_v36 = vmul.f32 %v1252_v1, %v1252_v1  ;;  %v5071_v49 = vrot.slane %v1252_v1, %v5068_v41 }
 0x1f0   :  { %v1256_v55 = vmul.f32 0.001953125, %v1255_v43  ;;  %v1265_v7 = vsub.f32 %v4604_v56, %v5071_v49  ;;  %v1266_v46 = vsub.f32 %v4608_v15, %v5071_v49  ;;  %v1267_v14 = vsub.f32 %v4610_v20, %v5071_v49 }
 0x1f1   :  { %v1268_v32 = vsub.f32 %v4625_v29, %v5071_v49  ;;  %v1271_v30 = vsub.f32 %v4644_v24, %v5071_v49  ;;  %v1272_v56 = vsub.f32 %v4661_v63, %v5071_v49  ;;  %v1273_v15 = vsub.f32 %v4665_v2, %v5071_v49 }
 0x1f2   :  { %v1258_v3 = vsub.f32 %v1256_v55, %v1257_v36  ;;  %v1274_v20 = vsub.f32 %v4684_v13, %v5071_v49  ;;  %v1275_v29 = vsub.f32 %v4688_v33, %v5071_v49  ;;  %v1278_v24 = vsub.f32 %v4743_v37, %v5071_v49 }
 0x1f3   :  { %v1279_v63 = vsub.f32 %v4751_v44, %v5071_v49  ;;  %v1280_v2 = vsub.f32 %v4781_v5, %v5071_v49  ;;  %v1333_v13 = vsub.f32 %v4700_v59, %v5071_v49  ;;  %v1334_v33 = vsub.f32 %v4698_v40, %v5071_v49 }
 0x1f4   :  { %v1259_v57 = vadd.f32 1e-05, %v1258_v3  ;;  %v1269_v3 = vsub.f32 %v4629_v23, %v5071_v49  ;;  %v1276_v23 = vsub.f32 %v4706_v45, %v5071_v49  ;;  %v1335_v45 = vsub.f32 %v4720_v8, %v5071_v49 }
 0x1f5   :  { %v1337_v37 = vsub.f32 %v4736_v51, %v5071_v49  ;;  %v1338_v44 = vsub.f32 %v4732_v0, %v5071_v49  ;;  %v1339_v5 = vsub.f32 %v4758_v11, %v5071_v49  ;;  %v1340_v59 = vsub.f32 %v4756_v28, %v5071_v49 }
 0x1f6   :  { %3886 = vrsqrt.f32 %v1259_v57  ;;  %v1270_v57 = vsub.f32 %v4642_v6, %v5071_v49  ;;  %v1277_v6 = vsub.f32 %v4711_v12, %v5071_v49  ;;  %v1336_v12 = vsub.f32 %v4718_v48, %v5071_v49 }
 0x1f7   :  { %v1341_v40 = vsub.f32 %v4777_v60, %v5071_v49  ;;  %v1342_v8 = vsub.f32 %v4775_v50, %v5071_v49  ;;  %v1343_v48 = vsub.f32 %v4790_v25, %v5071_v49  ;;  %v1344_v51 = vsub.f32 %v4788_v54, %v5071_v49 }
 0x1f8   :  { %v1345_v11 = vsub.f32 %v4804_v34, %v5071_v49  ;;  %v1346_v28 = vsub.f32 %v4806_v38, %v5071_v49  ;;  %v1347_v60 = vsub.f32 %v4814_v62, %v5071_v49  ;;  %v1348_v50 = vsub.f32 %v4818_v21, %v5071_v49 }
 0x203   :  { %v3887_v55 = vpop.eup %3886 }
 0x204   :  { %v1284_v0 = vrot.slane %v3887_v55, %v5068_v41 }
 0x206   :  { %v1285_v36 = vmul.f32 %v1284_v0, %v1265_v7  ;;  %v1286_v43 = vmul.f32 %v1284_v0, %v1266_v46  ;;  %v5138_v25 = vmul.f32 %v1284_v0, %v1267_v14  ;;  %v5140_v10 = vmul.f32 %v1284_v0, %v1268_v32 }
 0x207   :  { %v5142_v54 = vmul.f32 %v1284_v0, %v1269_v3  ;;  %v5144_v26 = vmul.f32 %v1284_v0, %v1270_v57  ;;  %v5146_v34 = vmul.f32 %v1284_v0, %v1271_v30  ;;  %v5148_v18 = vmul.f32 %v1284_v0, %v1272_v56 }
 0x208   :  { %v5150_v38 = vmul.f32 %v1284_v0, %v1273_v15  ;;  %v5152_v62 = vmul.f32 %v1284_v0, %v1274_v20  ;;  %v5154_v1 = vmul.f32 %v1284_v0, %v1275_v29  ;;  %v5156_v21 = vmul.f32 %v1284_v0, %v1276_v23 }
 0x209   :  { %v5158_v49 = vmul.f32 %v1284_v0, %v1277_v6  ;;  %v5160_v7 = vmul.f32 %v1284_v0, %v1278_v24  ;;  %v5162_v46 = vmul.f32 %v1284_v0, %v1279_v63  ;;  %v5164_v14 = vmul.f32 %v1284_v0, %v1280_v2 }
 0x20a   :  { %v5166_v32 = vmul.f32 %v1333_v13, %v1284_v0  ;;  %v5168_v3 = vmul.f32 %v1334_v33, %v1284_v0  ;;  %v5170_v57 = vmul.f32 %v1335_v45, %v1284_v0  ;;  %v5172_v30 = vmul.f32 %v1336_v12, %v1284_v0 }
 0x20b   :  { %v5174_v56 = vmul.f32 %v1337_v37, %v1284_v0  ;;  %v5176_v15 = vmul.f32 %v1338_v44, %v1284_v0  ;;  %v5178_v20 = vmul.f32 %v1339_v5, %v1284_v0  ;;  %v5180_v29 = vmul.f32 %v1340_v59, %v1284_v0 }
 0x20c   :  { %v5182_v23 = vmul.f32 %v1341_v40, %v1284_v0  ;;  %v5184_v6 = vmul.f32 %v1342_v8, %v1284_v0  ;;  %v5186_v24 = vmul.f32 %v1343_v48, %v1284_v0  ;;  %v5188_v63 = vmul.f32 %v1344_v51, %v1284_v0 }
 0x20d   :  { %v5190_v2 = vmul.f32 %v1345_v11, %v1284_v0  ;;  %v5192_v13 = vmul.f32 %v1346_v28, %v1284_v0  ;;  %v5194_v33 = vmul.f32 %v1347_v60, %v1284_v0  ;;  %v5196_v45 = vmul.f32 %v1348_v50, %v1284_v0  ;;  %v5211_v28 = vld [vmem:[%s6146_s2 + $0x170] sm:$0xff] }
 0x20e   :  { %v1301_v12 = vmax.f32 %v1285_v36, 0.0  ;;  %v1302_v37 = vmax.f32 %v1286_v43, 0.0  ;;  %v1303_v55 = vmax.f32 %v5138_v25, 0.0  ;;  %v1304_v44 = vmax.f32 %v5140_v10, 0.0 }
 0x20f   :  { %v1305_v5 = vmax.f32 %v5142_v54, 0.0  ;;  %v6197_v59 = vmax.f32 %v5144_v26, 0.0  ;;  %v6195_v40 = vmax.f32 %v5146_v34, 0.0  ;;  %v6192_v8 = vmax.f32 %v5148_v18, 0.0  ;;  %v5311_v54 = vld [vmem:[%s6146_s2 + $0x158] sm:$0xff] }
 0x210   :  { %v6189_v48 = vmax.f32 %v5150_v38, 0.0  ;;  %v6186_v51 = vmax.f32 %v5152_v62, 0.0  ;;  %v6188_v0 = vmax.f32 %v5154_v1, 0.0  ;;  %v6187_v11 = vmax.f32 %v5156_v21, 0.0  ;;  %1317 = vst [vmem:[#allocation2 + $0x8] sm:$0xff] %v1301_v12  ;;  %1318 = vst [vmem:[#allocation2 + $0x10] sm:$0xff] %v1302_v37  ;;  %3580 = vmatprep.mubr.f32.mxu0 %v1301_v12 }
 0x211   :  { %1319 = vst [vmem:[#allocation2 + $0x18] sm:$0xff] %v1303_v55  ;;  %1320 = vst [vmem:[#allocation2 + $0x20] sm:$0xff] %v1304_v44  ;;  %v6190_v60 = vmax.f32 %v5158_v49, 0.0  ;;  %v6191_v50 = vmax.f32 %v5160_v7, 0.0  ;;  %v6193_v36 = vmax.f32 %v5162_v46, 0.0  ;;  %v6194_v43 = vmax.f32 %v5164_v14, 0.0  ;;  %3581 = vmatmul.mubr.f32.vlgmr.msra.gmra.mxu0 %v1302_v37 }
 0x212   :  { %1321 = vst [vmem:[#allocation2 + $0x28] sm:$0xff] %v1305_v5  ;;  %1322 = vst [vmem:[#allocation2 + $0x30] sm:$0xff] %v6197_v59  ;;  %v6196_v25 = vmax.f32 %v5166_v32, 0.0  ;;  %v6198_v10 = vmax.f32 %v5168_v3, 0.0  ;;  %v1367_v12 = vmax.f32 %v5170_v57, 0.0  ;;  %v1368_v37 = vmax.f32 %v5172_v30, 0.0  ;;  %3583 = vmatprep.mubr.f32.mxu0 %v1303_v55  ;;  %3661 = vmatpush3.msra.mxu0 %v5045_v61 }
 0x213   :  { %1323 = vst [vmem:[#allocation2 + $0x38] sm:$0xff] %v6195_v40  ;;  %1324 = vst [vmem:[#allocation2 + $0x40] sm:$0xff] %v6192_v8  ;;  %v1369_v55 = vmax.f32 %v5174_v56, 0.0  ;;  %3662 = vmatprep.subr.mxu0 %v5211_v28  ;;  %v6199_v8 = vmax.f32 %v5186_v24, 0.0  ;;  %v1377_v40 = vmax.f32 %v5190_v2, 0.0  ;;  %v1379_v59 = vmax.f32 %v5194_v33, 0.0 }
 0x214   :  { %1325 = vst [vmem:[#allocation2 + $0x48] sm:$0xff] %v6189_v48  ;;  %1326 = vst [vmem:[#allocation2 + $0x50] sm:$0xff] %v6186_v51  ;;  %v5241_v51 = vld [vmem:[%s6146_s2 + $0x168] sm:$0xff]  ;;  %v1372_v48 = vmax.f32 %v5180_v29, 0.0  ;;  %3663 = vmatpush3.msra.mxu0 %v5211_v28 }
 0x215   :  { %1327 = vst [vmem:[#allocation2 + $0x58] sm:$0xff] %v6188_v0  ;;  %1328 = vst [vmem:[#allocation2 + $0x60] sm:$0xff] %v6187_v11  ;;  %v1370_v11 = vmax.f32 %v5176_v15, 0.0  ;;  %v1371_v0 = vmax.f32 %v5178_v20, 0.0  ;;  %3584 = vmatmul.mubr.f32.gmra.mxu0 %v1304_v44  ;;  %3664 = vmatprep.subr.mxu0 %v5241_v51 }
 0x216   :  { %1329 = vst [vmem:[#allocation2 + $0x68] sm:$0xff] %v6190_v60  ;;  %1330 = vst [vmem:[#allocation2 + $0x70] sm:$0xff] %v6191_v50  ;;  %v1373_v60 = vmax.f32 %v5182_v23, 0.0  ;;  %v1374_v50 = vmax.f32 %v5184_v6, 0.0  ;;  %3586 = vmatprep.mubr.f32.mxu0 %v1305_v5  ;;  %3665 = vmatpush3.msra.mxu0 %v5241_v51 }
 0x217   :  { %1331 = vst [vmem:[#allocation2 + $0x78] sm:$0xff] %v6193_v36  ;;  %1332 = vst [vmem:[#allocation2 + $0x80] sm:$0xff] %v6194_v43  ;;  %v1376_v36 = vmax.f32 %v5188_v63, 0.0  ;;  %v5272_v43 = vld [vmem:[%s6146_s2 + $0x160] sm:$0xff] }
 0x218   :  { %1381 = vst [vmem:[#allocation2 + $0x90] sm:$0xff] %v6196_v25  ;;  %1382 = vst [vmem:[#allocation2 + $0x98] sm:$0xff] %v6198_v10  ;;  %v6200_v25 = vmax.f32 %v5192_v13, 0.0  ;;  %v6201_v10 = vmax.f32 %v5196_v45, 0.0  ;;  %v1445_v44 = vld [vmem:[#allocation2 + $0x7] sm:$0xff]  ;;  %3666 = vmatprep.subr.mxu0 %v5272_v43  ;;  %v1447_v5 = vld [vmem:[#allocation2 + $0x17] sm:$0xff] }
 0x219   :  { %1383 = vst [vmem:[#allocation2 + $0xa0] sm:$0xff] %v1367_v12  ;;  %1384 = vst [vmem:[#allocation2 + $0xa8] sm:$0xff] %v1368_v37  ;;  %3636 = vmatprep.mubr.f32.mxu1 %v1445_v44  ;;  %3667 = vmatpush3.msra.mxu0 %v5272_v43  ;;  %v1448_v44 = vld [vmem:[#allocation2 + $0x1f] sm:$0xff]  ;;  %v1771_v57 = vld [vmem:[#allocation2 + $0x29] sm:$0xff] }
 0x21a   :  { %1385 = vst [vmem:[#allocation2 + $0xb0] sm:$0xff] %v1369_v55  ;;  %1386 = vst [vmem:[#allocation2 + $0xb8] sm:$0xff] %v1370_v11  ;;  %3668 = vmatprep.subr.mxu0 %v5311_v54  ;;  %v1772_v30 = vld [vmem:[#allocation2 + $0x31] sm:$0xff]  ;;  %v1773_v56 = vld [vmem:[#allocation2 + $0x39] sm:$0xff] }
 0x21b   :  { %1387 = vst [vmem:[#allocation2 + $0xc0] sm:$0xff] %v1371_v0  ;;  %1388 = vst [vmem:[#allocation2 + $0xc8] sm:$0xff] %v1372_v48  ;;  %3669 = vmatpush3.msra.mxu0 %v5311_v54  ;;  %v1774_v15 = vld [vmem:[#allocation2 + $0x41] sm:$0xff]  ;;  %v1775_v20 = vld [vmem:[#allocation2 + $0x49] sm:$0xff] }
 0x21c   :  { %1389 = vst [vmem:[#allocation2 + $0xd0] sm:$0xff] %v1373_v60  ;;  %1390 = vst [vmem:[#allocation2 + $0xd8] sm:$0xff] %v1374_v50  ;;  %v1776_v29 = vld [vmem:[#allocation2 + $0x51] sm:$0xff]  ;;  %v1777_v23 = vld [vmem:[#allocation2 + $0x59] sm:$0xff] }
 0x21d   :  { %1391 = vst [vmem:[#allocation2 + $0xe0] sm:$0xff] %v6199_v8  ;;  %1392 = vst [vmem:[#allocation2 + $0xe8] sm:$0xff] %v1376_v36  ;;  %v1446_v8 = vld [vmem:[#allocation2 + $0xf] sm:$0xff]  ;;  %v1778_v6 = vld [vmem:[#allocation2 + $0x61] sm:$0xff] }
 0x21e   :  { %1393 = vst [vmem:[#allocation2 + $0xf0] sm:$0xff] %v1377_v40  ;;  %1394 = vst [vmem:[#allocation2 + $0xf8] sm:$0xff] %v6200_v25  ;;  %3637 = vmatmul.mubr.f32.vlgmr.msra.gmra.mxu1 %v1446_v8  ;;  %v6229_v25 = vmax.f32 %v5144_v26, 0.0  ;;  %v1449_v8 = vld [vmem:[#allocation2 + $0x27] sm:$0xff]  ;;  %v5325_v26 = vld [vmem:[%s6146_s2 + $0x150] sm:$0xff] }
 0x21f   :  { %1395 = vst [vmem:[#allocation2 + $0x100] sm:$0xff] %v1379_v59  ;;  %1396 = vst [vmem:[#allocation2 + $0x108] sm:$0xff] %v6201_v10  ;;  %3639 = vmatprep.mubr.f32.mxu1 %v1447_v5  ;;  %3717 = vmatpush3.msra.mxu1 %v4838_v47  ;;  %v6230_v10 = vmax.f32 %v5146_v34, 0.0  ;;  %v1450_v47 = vld [vmem:[#allocation2 + $0x2f] sm:$0xff]  ;;  %v1452_v34 = vld [vmem:[#allocation2 + $0x3f] sm:$0xff]  ;;  %v6234_v5 = vmax.f32 %v5154_v1, 0.0 }
 0x220   :  { %3587 = vmatmul.mubr.f32.gmra.mxu0 %v6229_v25  ;;  %3718 = vmatprep.subr.mxu1 %v4845_v52  ;;  %v6232_v25 = vmax.f32 %v5150_v38, 0.0  ;;  %v1454_v38 = vld [vmem:[#allocation2 + $0x4f] sm:$0xff]  ;;  %v1456_v1 = vld [vmem:[#allocation2 + $0x5f] sm:$0xff] }
 0x221   :  { %3719 = vmatpush3.msra.mxu1 %v4845_v52  ;;  %3589 = vmatprep.mubr.f32.mxu0 %v6230_v10  ;;  %v1451_v52 = vld [vmem:[#allocation2 + $0x37] sm:$0xff]  ;;  %v1453_v10 = vld [vmem:[#allocation2 + $0x47] sm:$0xff]  ;;  %v1944_v33 = vld [vmem:[#allocation2 + $0x8f] sm:$0xff] }
 0x222   :  { %3640 = vmatmul.mubr.f32.gmra.mxu1 %v1448_v44  ;;  %3720 = vmatprep.subr.mxu1 %v4852_v9  ;;  %v1455_v44 = vld [vmem:[#allocation2 + $0x57] sm:$0xff] }
 0x223   :  { %3642 = vmatprep.mubr.f32.mxu1 %v1449_v8  ;;  %3721 = vmatpush3.msra.mxu1 %v4852_v9  ;;  %v5337_v9 = vld [vmem:[%s6146_s2 + $0x148] sm:$0xff]  ;;  %v6236_v8 = vmax.f32 %v5158_v49, 0.0  ;;  %v1780_v63 = vld [vmem:[#allocation2 + $0x71] sm:$0xff]  ;;  %v1781_v2 = vld [vmem:[#allocation2 + $0x79] sm:$0xff] }
 0x224   :  { %3722 = vmatprep.subr.mxu1 %v4859_v16  ;;  %3670 = vmatprep.subr.mxu0 %v5325_v26  ;;  %v1458_v49 = vld [vmem:[#allocation2 + $0x6f] sm:$0xff] }
 0x225   :  { %3723 = vmatpush3.msra.mxu1 %v4859_v16  ;;  %3671 = vmatpush3.msra.mxu0 %v5325_v26  ;;  %v6231_v16 = vmax.f32 %v5148_v18, 0.0  ;;  %v6233_v18 = vmax.f32 %v5152_v62, 0.0  ;;  %v6235_v62 = vmax.f32 %v5156_v21, 0.0  ;;  %v6237_v21 = vmax.f32 %v5160_v7, 0.0 }
 0x226   :  { %3643 = vmatmul.mubr.f32.gmra.mxu1 %v1450_v47  ;;  %3724 = vmatprep.subr.mxu1 %v4871_v4  ;;  %v1457_v47 = vld [vmem:[#allocation2 + $0x67] sm:$0xff]  ;;  %v6239_v7 = vmax.f32 %v5164_v14, 0.0  ;;  %v6241_v14 = vld [vmem:[#allocation15_spill] sm:$0xff] }
 0x227   :  { %3645 = vmatprep.mubr.f32.mxu1 %v1451_v52  ;;  %3725 = vmatpush3.msra.mxu1 %v4871_v4  ;;  %v5348_v4 = vld [vmem:[%s6146_s2 + $0x140] sm:$0xff]  ;;  %v6238_v52 = vmax.f32 %v5162_v46, 0.0 }
 0x228   :  { %3726 = vmatprep.subr.mxu1 %v4885_v53  ;;  %3590 = vmatmul.mubr.f32.gmra.mxu0 %v6231_v16  ;;  %v1459_v16 = vld [vmem:[#allocation2 + $0x77] sm:$0xff]  ;;  %v1460_v46 = vld [vmem:[#allocation2 + $0x7f] sm:$0xff] }
 0x229   :  { %3727 = vmatpush3.msra.mxu1 %v4885_v53  ;;  %3672 = vmatprep.subr.mxu0 %v5337_v9  ;;  %v5359_v53 = vld [vmem:[%s6146_s2 + $0x138] sm:$0xff] }
 0x22a   :  { %3646 = vmatmul.mubr.f32.gmra.mxu1 %v1452_v34  ;;  %3728 = vmatprep.subr.mxu1 %v4899_v27  ;;  %v1767_v34 = vld [vmem:[#allocation2 + $0x9] sm:$0xff] }
 0x22b   :  { %3592 = vmatprep.mubr.f32.mxu0 %v6232_v25  ;;  %3648 = vmatprep.mubr.f32.mxu1 %v1453_v10  ;;  %v1768_v25 = vld [vmem:[#allocation2 + $0x11] sm:$0xff]  ;;  %v6242_v10 = vmax.f32 %v5168_v3, 0.0  ;;  %v6245_v3 = vld [vmem:[#allocation5_spill] sm:$0xff] }
 0x22c   :  { %3673 = vmatpush3.msra.mxu0 %v5337_v9  ;;  %3729 = vmatpush3.msra.mxu1 %v4899_v27  ;;  %v5370_v27 = vld [vmem:[%s6146_s2 + $0x130] sm:$0xff] }
 0x22d   :  { %3674 = vmatprep.subr.mxu0 %v5348_v4  ;;  %3730 = vmatprep.subr.mxu1 %v4913_v31 }
 0x22e   :  { %3675 = vmatpush3.msra.mxu0 %v5348_v4  ;;  %3731 = vmatpush3.msra.mxu1 %v4913_v31  ;;  %v5381_v31 = vld [vmem:[%s6146_s2 + $0x128] sm:$0xff] }
 0x22f   :  { %3593 = vmatmul.mubr.f32.gmra.mxu0 %v6233_v18  ;;  %3649 = vmatmul.mubr.f32.gmra.mxu1 %v1454_v38  ;;  %v6243_v18 = vld [vmem:[#allocation3_spill] sm:$0xff] }
 0x230   :  { %3676 = vmatprep.subr.mxu0 %v5359_v53  ;;  %3732 = vmatprep.subr.mxu1 %v4927_v42  ;;  %v1769_v38 = vld [vmem:[#allocation2 + $0x19] sm:$0xff] }
 0x231   :  { %3595 = vmatprep.mubr.f32.mxu0 %v6234_v5  ;;  %3651 = vmatprep.mubr.f32.mxu1 %v1455_v44  ;;  %v2269_v5 = vld [vmem:[#allocation2 + $0xa9] sm:$0xff] }
 0x232   :  { %3677 = vmatpush3.msra.mxu0 %v5359_v53  ;;  %3733 = vmatpush3.msra.mxu1 %v4927_v42  ;;  %v5392_v42 = vld [vmem:[%s6146_s2 + $0x120] sm:$0xff]  ;;  %v1948_v44 = vld [vmem:[#allocation2 + $0xaf] sm:$0xff] }
 0x233   :  { %3678 = vmatprep.subr.mxu0 %v5370_v27  ;;  %3734 = vmatprep.subr.mxu1 %v4941_v39 }
 0x234   :  { %3679 = vmatpush3.msra.mxu0 %v5370_v27  ;;  %3735 = vmatpush3.msra.mxu1 %v4941_v39  ;;  %v5403_v39 = vld [vmem:[%s6146_s2 + $0x118] sm:$0xff] }
 0x235   :  { %3596 = vmatmul.mubr.f32.gmra.mxu0 %v6235_v62  ;;  %3652 = vmatmul.mubr.f32.gmra.mxu1 %v1456_v1  ;;  %v1949_v62 = vld [vmem:[#allocation2 + $0xb7] sm:$0xff] }
 0x236   :  { %3680 = vmatprep.subr.mxu0 %v5381_v31  ;;  %3736 = vmatprep.subr.mxu1 %v4955_v17  ;;  %v2271_v1 = vld [vmem:[#allocation2 + $0xb9] sm:$0xff] }
 0x237   :  { %3598 = vmatprep.mubr.f32.mxu0 %v6236_v8  ;;  %3654 = vmatprep.mubr.f32.mxu1 %v1457_v47  ;;  %v2272_v8 = vld [vmem:[#allocation2 + $0xc1] sm:$0xff] }
 0x238   :  { %3681 = vmatpush3.msra.mxu0 %v5381_v31  ;;  %3737 = vmatpush3.msra.mxu1 %v4955_v17  ;;  %v5414_v17 = vld [vmem:[%s6146_s2 + $0x110] sm:$0xff]  ;;  %v1951_v47 = vld [vmem:[#allocation2 + $0xc7] sm:$0xff] }
 0x239   :  { %3682 = vmatprep.subr.mxu0 %v5392_v42  ;;  %3738 = vmatprep.subr.mxu1 %v4969_v35 }
 0x23a   :  { %3683 = vmatpush3.msra.mxu0 %v5392_v42  ;;  %3739 = vmatpush3.msra.mxu1 %v4969_v35  ;;  %v5425_v35 = vld [vmem:[%s6146_s2 + $0x108] sm:$0xff] }
 0x23b   :  { %3599 = vmatmul.mubr.f32.gmra.mxu0 %v6237_v21  ;;  %3655 = vmatmul.mubr.f32.gmra.mxu1 %v1458_v49  ;;  %v1952_v21 = vld [vmem:[#allocation2 + $0xcf] sm:$0xff] }
 0x23c   :  { %3684 = vmatprep.subr.mxu0 %v5403_v39  ;;  %3740 = vmatprep.subr.mxu1 %v4983_v22  ;;  %v2274_v49 = vld [vmem:[#allocation2 + $0xd1] sm:$0xff] }
 0x23d   :  { %3601 = vmatprep.mubr.f32.mxu0 %v6238_v52  ;;  %3657 = vmatprep.mubr.f32.mxu1 %v1459_v16  ;;  %v2275_v52 = vld [vmem:[#allocation2 + $0xd9] sm:$0xff] }
 0x23e   :  { %3685 = vmatpush3.msra.mxu0 %v5403_v39  ;;  %3741 = vmatpush3.msra.mxu1 %v4983_v22  ;;  %v5436_v22 = vld [vmem:[%s6146_s2 + $0x100] sm:$0xff] }
 0x23f   :  { %3686 = vmatprep.subr.mxu0 %v5414_v17  ;;  %3742 = vmatprep.subr.mxu1 %v4997_v58  ;;  %v1954_v16 = vld [vmem:[#allocation2 + $0xdf] sm:$0xff] }
 0x240   :  { %3687 = vmatpush3.msra.mxu0 %v5414_v17  ;;  %3743 = vmatpush3.msra.mxu1 %v4997_v58  ;;  %v6240_v58 = vmax.f32 %v5166_v32, 0.0  ;;  %v1770_v32 = vld [vmem:[#allocation2 + $0x21] sm:$0xff] }
 0x241   :  { %3602 = vmatmul.mubr.f32.gmra.mxu0 %v6239_v7  ;;  %3658 = vmatmul.mubr.f32.gmra.mxu1 %v1460_v46  ;;  %v1955_v7 = vld [vmem:[#allocation2 + $0xe7] sm:$0xff] }
 0x242   :  { %3688 = vmatprep.subr.mxu0 %v5425_v35  ;;  %3744 = vmatprep.subr.mxu1 %v5011_v19  ;;  %v2277_v46 = vld [vmem:[#allocation2 + $0xe9] sm:$0xff] }
 0x243   :  { %3689 = vmatpush3.msra.mxu0 %v5425_v35  ;;  %3692 = vmatprep.mubr.f32.mxu0 %v1767_v34  ;;  %v2278_v34 = vld [vmem:[#allocation2 + $0xf1] sm:$0xff] }
 0x244   :  { %3745 = vmatpush3.msra.mxu1 %v5011_v19  ;;  %3748 = vmatprep.mubr.f32.mxu1 %v6240_v58  ;;  %v6244_v19 = vld [vmem:[#allocation4_spill] sm:$0xff]  ;;  %v1957_v58 = vld [vmem:[#allocation2 + $0xf7] sm:$0xff] }
 0x245   :  { %3690 = vmatprep.subr.mxu0 %v5436_v22  ;;  %3746 = vmatprep.subr.mxu1 %v6241_v14 }
 0x246   :  { %3691 = vmatpush3.msra.mxu0 %v5436_v22  ;;  %3747 = vmatpush3.msra.mxu1 %v6241_v14  ;;  %v2279_v14 = vld [vmem:[#allocation2 + $0xf9] sm:$0xff] }
 0x247   :  { %3693 = vmatmul.mubr.f32.vlgmr.msra.gmra.mxu0 %v1768_v25  ;;  %3749 = vmatmul.mubr.f32.vlgmr.msra.gmra.mxu1 %v6242_v10  ;;  %v1958_v25 = vld [vmem:[#allocation2 + $0xff] sm:$0xff] }
 0x248   :  { %3772 = vmatprep.subr.mxu0 %v6243_v18  ;;  %3828 = vmatprep.subr.mxu1 %v5045_v61  ;;  %v2280_v10 = vld [vmem:[#allocation2 + $0x101] sm:$0xff] }
 0x249   :  { %3695 = vmatprep.mubr.f32.mxu0 %v1769_v38  ;;  %3751 = vmatprep.mubr.f32.mxu1 %v1367_v12  ;;  %v6255_v12 = vld [vmem:[#allocation14_spill] sm:$0xff] }
 0x24a   :  { %3773 = vmatpush3.msra.mxu0 %v6243_v18  ;;  %3829 = vmatpush3.msra.mxu1 %v5045_v61  ;;  %v6246_v61 = vld [vmem:[#allocation6_spill] sm:$0xff]  ;;  %v1959_v18 = vld [vmem:[#allocation2 + $0x107] sm:$0xff] }
 0x24b   :  { %3774 = vmatprep.subr.mxu0 %v6244_v19  ;;  %3830 = vmatprep.subr.mxu1 %v5211_v28  ;;  %v2281_v38 = vld [vmem:[#allocation2 + $0x109] sm:$0xff] }
 0x24c   :  { %3775 = vmatpush3.msra.mxu0 %v6244_v19  ;;  %3831 = vmatpush3.msra.mxu1 %v5211_v28  ;;  %v6247_v28 = vld [vmem:[#allocation7_spill] sm:$0xff] }
 0x24d   :  { %3696 = vmatmul.mubr.f32.gmra.mxu0 %v1770_v32  ;;  %3752 = vmatmul.mubr.f32.gmra.mxu1 %v1368_v37  ;;  %v6257_v37 = vld [vmem:[#allocation16_spill] sm:$0xff] }
 0x24e   :  { %3776 = vmatprep.subr.mxu0 %v6245_v3  ;;  %3832 = vmatprep.subr.mxu1 %v5241_v51 }
 0x24f   :  { %3698 = vmatprep.mubr.f32.mxu0 %v1771_v57  ;;  %3754 = vmatprep.mubr.f32.mxu1 %v1369_v55  ;;  %v6259_v55 = vmax.f32 %v5196_v45, 0.0  ;;  %v1945_v45 = vld [vmem:[#allocation2 + $0x97] sm:$0xff] }
 0x250   :  { %3777 = vmatpush3.msra.mxu0 %v6245_v3  ;;  %3833 = vmatpush3.msra.mxu1 %v5241_v51  ;;  %v6248_v51 = vld [vmem:[#allocation8_spill] sm:$0xff] }
 0x251   :  { %3778 = vmatprep.subr.mxu0 %v6246_v61  ;;  %3834 = vmatprep.subr.mxu1 %v5272_v43 }
 0x252   :  { %3779 = vmatpush3.msra.mxu0 %v6246_v61  ;;  %3835 = vmatpush3.msra.mxu1 %v5272_v43  ;;  %v6253_v43 = vld [vmem:[#allocation12_spill] sm:$0xff] }
 0x253   :  { %3699 = vmatmul.mubr.f32.gmra.mxu0 %v1772_v30  ;;  %3755 = vmatmul.mubr.f32.gmra.mxu1 %v1370_v11  ;;  %v6249_v11 = vld [vmem:[#allocation9_spill] sm:$0xff] }
 0x254   :  { %3780 = vmatprep.subr.mxu0 %v6247_v28  ;;  %3836 = vmatprep.subr.mxu1 %v5311_v54 }
 0x255   :  { %3701 = vmatprep.mubr.f32.mxu0 %v1773_v56  ;;  %3757 = vmatprep.mubr.f32.mxu1 %v1371_v0  ;;  %v6250_v0 = vld [vmem:[#allocation10_spill] sm:$0xff] }
 0x256   :  { %3781 = vmatpush3.msra.mxu0 %v6247_v28  ;;  %3837 = vmatpush3.msra.mxu1 %v5311_v54  ;;  %v6260_v54 = vld [vmem:[#allocation18_spill] sm:$0xff] }
 0x257   :  { %3782 = vmatprep.subr.mxu0 %v6248_v51  ;;  %3838 = vmatprep.subr.mxu1 %v5325_v26 }
 0x258   :  { %3783 = vmatpush3.msra.mxu0 %v6248_v51  ;;  %3839 = vmatpush3.msra.mxu1 %v5325_v26  ;;  %v6261_v26 = vld [vmem:[#allocation19_spill] sm:$0xff] }
 0x259   :  { %3702 = vmatmul.mubr.f32.gmra.mxu0 %v1774_v15  ;;  %3758 = vmatmul.mubr.f32.gmra.mxu1 %v1372_v48  ;;  %v6251_v48 = vld [vmem:[#allocation11_spill] sm:$0xff] }
 0x25a   :  { %3784 = vmatprep.subr.mxu0 %v6249_v11  ;;  %3840 = vmatprep.subr.mxu1 %v5337_v9 }
 0x25b   :  { %3704 = vmatprep.mubr.f32.mxu0 %v1775_v20  ;;  %3760 = vmatprep.mubr.f32.mxu1 %v1373_v60  ;;  %v6252_v60 = vmax.f32 %v5186_v24, 0.0  ;;  %v1779_v24 = vld [vmem:[#allocation2 + $0x69] sm:$0xff] }
 0x25c   :  { %3785 = vmatpush3.msra.mxu0 %v6249_v11  ;;  %3841 = vmatpush3.msra.mxu1 %v5337_v9  ;;  %v2267_v9 = vld [vmem:[#allocation2 + $0x99] sm:$0xff] }
 0x25d   :  { %3786 = vmatprep.subr.mxu0 %v6250_v0  ;;  %3842 = vmatprep.subr.mxu1 %v5348_v4 }
 0x25e   :  { %3787 = vmatpush3.msra.mxu0 %v6250_v0  ;;  %3843 = vmatpush3.msra.mxu1 %v5348_v4  ;;  %v1946_v4 = vld [vmem:[#allocation2 + $0x9f] sm:$0xff] }
 0x25f   :  { %3705 = vmatmul.mubr.f32.gmra.mxu0 %v1776_v29  ;;  %3761 = vmatmul.mubr.f32.gmra.mxu1 %v1374_v50  ;;  %v6254_v50 = vld [vmem:[#allocation13_spill] sm:$0xff] }
 0x260   :  { %3788 = vmatprep.subr.mxu0 %v6251_v48  ;;  %3844 = vmatprep.subr.mxu1 %v5359_v53 }
 0x261   :  { %3707 = vmatprep.mubr.f32.mxu0 %v1777_v23  ;;  %3763 = vmatprep.mubr.f32.mxu1 %v6252_v60 }
 0x262   :  { %3789 = vmatpush3.msra.mxu0 %v6251_v48  ;;  %3845 = vmatpush3.msra.mxu1 %v5359_v53  ;;  %v2268_v53 = vld [vmem:[#allocation2 + $0xa1] sm:$0xff] }
 0x263   :  { %3790 = vmatprep.subr.mxu0 %v6253_v43  ;;  %3846 = vmatprep.subr.mxu1 %v5370_v27 }
 0x264   :  { %3791 = vmatpush3.msra.mxu0 %v6253_v43  ;;  %3847 = vmatpush3.msra.mxu1 %v5370_v27  ;;  %v1947_v27 = vld [vmem:[#allocation2 + $0xa7] sm:$0xff] }
 0x265   :  { %3708 = vmatmul.mubr.f32.gmra.mxu0 %v1778_v6  ;;  %3764 = vmatmul.mubr.f32.gmra.mxu1 %v1376_v36  ;;  %v6256_v36 = vmax.f32 %v5192_v13, 0.0  ;;  %v1782_v13 = vld [vmem:[#allocation2 + $0x81] sm:$0xff] }
 0x266   :  { %3792 = vmatprep.subr.mxu0 %v6254_v50  ;;  %3848 = vmatprep.subr.mxu1 %v5381_v31 }
 0x267   :  { %3710 = vmatprep.mubr.f32.mxu0 %v1779_v24  ;;  %3766 = vmatprep.mubr.f32.mxu1 %v1377_v40  ;;  %v6258_v40 = vld [vmem:[#allocation17_spill] sm:$0xff] }
 0x268   :  { %3793 = vmatpush3.msra.mxu0 %v6254_v50  ;;  %3849 = vmatpush3.msra.mxu1 %v5381_v31  ;;  %v2270_v31 = vld [vmem:[#allocation2 + $0xb1] sm:$0xff] }
 0x269   :  { %3794 = vmatprep.subr.mxu0 %v6255_v12  ;;  %3850 = vmatprep.subr.mxu1 %v5392_v42 }
 0x26a   :  { %3795 = vmatpush3.msra.mxu0 %v6255_v12  ;;  %3851 = vmatpush3.msra.mxu1 %v5392_v42  ;;  %v1950_v42 = vld [vmem:[#allocation2 + $0xbf] sm:$0xff] }
 0x26b   :  { %3711 = vmatmul.mubr.f32.gmra.mxu0 %v1780_v63  ;;  %3767 = vmatmul.mubr.f32.gmra.mxu1 %v6256_v36 }
 0x26c   :  { %3796 = vmatprep.subr.mxu0 %v6257_v37  ;;  %3852 = vmatprep.subr.mxu1 %v5403_v39 }
 0x26d   :  { %3713 = vmatprep.mubr.f32.mxu0 %v1781_v2  ;;  %3769 = vmatprep.mubr.f32.mxu1 %v1379_v59  ;;  %v2266_v59 = vld [vmem:[#allocation2 + $0x91] sm:$0xff] }
 0x26e   :  { %3797 = vmatpush3.msra.mxu0 %v6257_v37  ;;  %3853 = vmatpush3.msra.mxu1 %v5403_v39  ;;  %v2273_v39 = vld [vmem:[#allocation2 + $0xc9] sm:$0xff] }
 0x26f   :  { %3798 = vmatprep.subr.mxu0 %v6258_v40  ;;  %3854 = vmatprep.subr.mxu1 %v5414_v17 }
 0x270   :  { %3799 = vmatpush3.msra.mxu0 %v6258_v40  ;;  %3855 = vmatpush3.msra.mxu1 %v5414_v17  ;;  %v1953_v17 = vld [vmem:[#allocation2 + $0xd7] sm:$0xff] }
 0x271   :  { %3714 = vmatmul.mubr.f32.gmra.mxu0 %v1782_v13  ;;  %3770 = vmatmul.mubr.f32.gmra.mxu1 %v6259_v55 }
 0x272   :  { %3800 = vmatprep.subr.mxu0 %v6260_v54  ;;  %3856 = vmatprep.subr.mxu1 %v5425_v35 }
 0x273   :  { %3801 = vmatpush3.msra.mxu0 %v6260_v54  ;;  %3804 = vmatprep.mubr.f32.mxu0 %v1944_v33 }
 0x274   :  { %3857 = vmatpush3.msra.mxu1 %v5425_v35  ;;  %3860 = vmatprep.mubr.f32.mxu1 %v2266_v59  ;;  %v2276_v35 = vld [vmem:[#allocation2 + $0xe1] sm:$0xff] }
 0x275   :  { %3802 = vmatprep.subr.mxu0 %v6261_v26  ;;  %3858 = vmatprep.subr.mxu1 %v5436_v22 }
 0x276   :  { %3803 = vmatpush3.msra.mxu0 %v6261_v26  ;;  %3859 = vmatpush3.msra.mxu1 %v5436_v22  ;;  %v1956_v22 = vld [vmem:[#allocation2 + $0xef] sm:$0xff] }
 0x277   :  { %3805 = vmatmul.mubr.f32.vlgmr.msra.gmra.mxu0 %v1945_v45  ;;  %3861 = vmatmul.mubr.f32.vlgmr.msra.gmra.mxu1 %v2267_v9 }
 0x278   :  { %3807 = vmatprep.mubr.f32.mxu0 %v1946_v4  ;;  %3863 = vmatprep.mubr.f32.mxu1 %v2268_v53 }
 0x27b   :  { %3808 = vmatmul.mubr.f32.gmra.mxu0 %v1947_v27  ;;  %3864 = vmatmul.mubr.f32.gmra.mxu1 %v2269_v5 }
 0x27c   :  { %3810 = vmatprep.mubr.f32.mxu0 %v1948_v44  ;;  %3866 = vmatprep.mubr.f32.mxu1 %v2270_v31 }
 0x27f   :  { %3811 = vmatmul.mubr.f32.gmra.mxu0 %v1949_v62  ;;  %3867 = vmatmul.mubr.f32.gmra.mxu1 %v2271_v1 }
 0x280   :  { %3813 = vmatprep.mubr.f32.mxu0 %v1950_v42  ;;  %3869 = vmatprep.mubr.f32.mxu1 %v2272_v8 }
 0x283   :  { %3814 = vmatmul.mubr.f32.gmra.mxu0 %v1951_v47  ;;  %3870 = vmatmul.mubr.f32.gmra.mxu1 %v2273_v39 }
 0x284   :  { %3816 = vmatprep.mubr.f32.mxu0 %v1952_v21  ;;  %3872 = vmatprep.mubr.f32.mxu1 %v2274_v49 }
 0x287   :  { %3817 = vmatmul.mubr.f32.gmra.mxu0 %v1953_v17  ;;  %3873 = vmatmul.mubr.f32.gmra.mxu1 %v2275_v52 }
 0x288   :  { %3819 = vmatprep.mubr.f32.mxu0 %v1954_v16  ;;  %3875 = vmatprep.mubr.f32.mxu1 %v2276_v35 }
 0x28b   :  { %3820 = vmatmul.mubr.f32.gmra.mxu0 %v1955_v7  ;;  %3876 = vmatmul.mubr.f32.gmra.mxu1 %v2277_v46 }
 0x28c   :  { %3822 = vmatprep.mubr.f32.mxu0 %v1956_v22  ;;  %3878 = vmatprep.mubr.f32.mxu1 %v2278_v34 }
 0x28f   :  { %3823 = vmatmul.mubr.f32.gmra.mxu0 %v1957_v58  ;;  %3879 = vmatmul.mubr.f32.gmra.mxu1 %v2279_v14 }
 0x290   :  { %3825 = vmatprep.mubr.f32.mxu0 %v1958_v25  ;;  %3881 = vmatprep.mubr.f32.mxu1 %v2280_v10 }
 0x293   :  { %3826 = vmatmul.mubr.f32.gmra.mxu0 %v1959_v18  ;;  %3882 = vmatmul.mubr.f32.gmra.mxu1 %v2281_v38 }
 0x2d1   :  { %v3582_v19 = vpop.f32.mrf.mxu0 }
 0x2d3   :  { %v1543_v32 = vpop.f32.mrf.mxu0 }
 0x2d5   :  { %v3585_v3 = vpop.f32.mrf.mxu0 }
 0x2d7   :  { %v1553_v57 = vpop.f32.mrf.mxu0 }
 0x2de   :  { %v3638_v61 = vpop.f32.mrf.mxu1 }
 0x2df   :  { %v1694_v30 = vadd.f32 %v3638_v61, %v3582_v19 }
 0x2e0   :  { %v1688_v28 = vpop.f32.mrf.mxu1  ;;  %v3588_v51 = vpop.f32.mrf.mxu0 }
 0x2e1   :  { %v1689_v56 = vadd.f32 %v1688_v28, %v1543_v32 }
 0x2e2   :  { %v3641_v15 = vpop.f32.mrf.mxu1  ;;  %v1563_v0 = vpop.f32.mrf.mxu0 }
 0x2e3   :  { %v1704_v11 = vadd.f32 %v3641_v15, %v3585_v3 }
 0x2e4   :  { %v1698_v20 = vpop.f32.mrf.mxu1 }
 0x2e5   :  { %v1699_v16 = vadd.f32 %v1698_v20, %v1553_v57 }
 0x2e6   :  { %v3644_v29 = vpop.f32.mrf.mxu1 }
 0x2e7   :  { %v5541_v48 = vadd.f32 %v3644_v29, %v3588_v51 }
 0x2e8   :  { %v1708_v23 = vpop.f32.mrf.mxu1  ;;  %v3591_v60 = vpop.f32.mrf.mxu0 }
 0x2e9   :  { %v1709_v57 = vadd.f32 %v1708_v23, %v1563_v0 }
 0x2ea   :  { %v3647_v43 = vpop.f32.mrf.mxu1  ;;  %v1573_v50 = vpop.f32.mrf.mxu0 }
 0x2eb   :  { %v5543_v6 = vadd.f32 %v3647_v43, %v3591_v60 }
 0x2ec   :  { %v1718_v24 = vpop.f32.mrf.mxu1 }
 0x2ed   :  { %v1719_v23 = vadd.f32 %v1718_v24, %v1573_v50 }
 0x2ef   :  { %v3594_v12 = vpop.f32.mrf.mxu0  ;;  %v3650_v63 = vpop.f32.mrf.mxu1 }
 0x2f0   :  { %v5545_v36 = vadd.f32 %v3650_v63, %v3594_v12 }
 0x2f1   :  { %v5547_v37 = vpop.f32.mrf.mxu0  ;;  %v5549_v2 = vpop.f32.mrf.mxu1 }
 0x2f5   :  { %v3597_v40 = vpop.f32.mrf.mxu0  ;;  %v3653_v13 = vpop.f32.mrf.mxu1 }
 0x2f6   :  { %v5551_v55 = vadd.f32 %v3653_v13, %v3597_v40 }
 0x2f7   :  { %v5553_v54 = vpop.f32.mrf.mxu0  ;;  %v5555_v33 = vpop.f32.mrf.mxu1 }
 0x2fb   :  { %v3600_v59 = vpop.f32.mrf.mxu0  ;;  %v3656_v26 = vpop.f32.mrf.mxu1 }
 0x2fc   :  { %v5557_v45 = vadd.f32 %v3656_v26, %v3600_v59 }
 0x2fd   :  { %v5559_v9 = vpop.f32.mrf.mxu0  ;;  %v5561_v4 = vpop.f32.mrf.mxu1 }
 0x301   :  { %v3603_v53 = vpop.f32.mrf.mxu0  ;;  %v3659_v27 = vpop.f32.mrf.mxu1 }
 0x302   :  { %v5563_v5 = vadd.f32 %v3659_v27, %v3603_v53 }
 0x303   :  { %v5565_v44 = vpop.f32.mrf.mxu0  ;;  %v5567_v31 = vpop.f32.mrf.mxu1 }
 0x307   :  { %v3694_v62 = vpop.f32.mrf.mxu0  ;;  %v5569_v1 = vpop.f32.mrf.mxu1 }
 0x308   :  { %v5583_v22 = vadd.f32 %v3694_v62, %v1694_v30 }
 0x309   :  { %v1849_v42 = vpop.f32.mrf.mxu0  ;;  %v5571_v8 = vpop.f32.mrf.mxu1 }
 0x30a   :  { %v5579_v35 = vadd.f32 %v1849_v42, %v1689_v56  ;;  %v2466_v18 = vmul.f32 %v5583_v22, %v5583_v22 }
 0x30c   :  { %v2443_v58 = vadd.f32 %v5583_v22, %v5579_v35  ;;  %v2465_v14 = vmul.f32 %v5579_v35, %v5579_v35 }
 0x30d   :  { %v3697_v47 = vpop.f32.mrf.mxu0  ;;  %v5573_v39 = vpop.f32.mrf.mxu1 }
 0x30e   :  { %v2481_v61 = vadd.f32 %v2466_v18, %v2465_v14  ;;  %v5600_v30 = vadd.f32 %v3697_v47, %v1704_v11 }
 0x30f   :  { %v1859_v21 = vpop.f32.mrf.mxu0  ;;  %v5575_v49 = vpop.f32.mrf.mxu1 }
 0x310   :  { %v5585_v34 = vadd.f32 %v1859_v21, %v1699_v16  ;;  %v2468_v29 = vmul.f32 %v5600_v30, %v5600_v30 }
 0x312   :  { %v2444_v38 = vadd.f32 %v2443_v58, %v5585_v34  ;;  %v2467_v19 = vmul.f32 %v5585_v34, %v5585_v34 }
 0x313   :  { %v3700_v17 = vpop.f32.mrf.mxu0  ;;  %v5577_v52 = vpop.f32.mrf.mxu1 }
 0x314   :  { %v2482_v28 = vadd.f32 %v2481_v61, %v2467_v19  ;;  %v2445_v51 = vadd.f32 %v2444_v38, %v5600_v30  ;;  %v5615_v63 = vadd.f32 %v3700_v17, %v5541_v48  ;;  %v1729_v17 = vadd.f32 %v5549_v2, %v5547_v37 }
 0x315   :  { %v1869_v7 = vpop.f32.mrf.mxu0  ;;  %v5581_v46 = vpop.f32.mrf.mxu1 }
 0x316   :  { %v5602_v56 = vadd.f32 %v1869_v7, %v1709_v57  ;;  %v2483_v0 = vadd.f32 %v2482_v28, %v2468_v29  ;;  %v2470_v42 = vmul.f32 %v5615_v63, %v5615_v63  ;;  %v1739_v28 = vadd.f32 %v5555_v33, %v5553_v54 }
 0x318   :  { %v2446_v12 = vadd.f32 %v2445_v51, %v5602_v56  ;;  %v2469_v11 = vmul.f32 %v5602_v56, %v5602_v56 }
 0x319   :  { %v3703_v25 = vpop.f32.mrf.mxu0  ;;  %v5591_v10 = vpop.f32.mrf.mxu1 }
 0x31a   :  { %v2484_v59 = vadd.f32 %v2483_v0, %v2469_v11  ;;  %v2447_v53 = vadd.f32 %v2446_v12, %v5615_v63  ;;  %v5636_v16 = vadd.f32 %v3703_v25, %v5543_v6 }
 0x31b   :  { %v1879_v32 = vpop.f32.mrf.mxu0  ;;  %v5598_v3 = vpop.f32.mrf.mxu1 }
 0x31c   :  { %v5619_v26 = vadd.f32 %v1879_v32, %v1719_v23  ;;  %v2485_v50 = vadd.f32 %v2484_v59, %v2470_v42  ;;  %v2472_v19 = vmul.f32 %v5636_v16, %v5636_v16 }
 0x31e   :  { %v2448_v47 = vadd.f32 %v2447_v53, %v5619_v26  ;;  %v2471_v48 = vmul.f32 %v5619_v26, %v5619_v26 }
 0x31f   :  { %v3706_v15 = vpop.f32.mrf.mxu0  ;;  %v5605_v20 = vpop.f32.mrf.mxu1 }
 0x320   :  { %v2486_v14 = vadd.f32 %v2485_v50, %v2471_v48  ;;  %v2449_v38 = vadd.f32 %v2448_v47, %v5636_v16  ;;  %v5659_v51 = vadd.f32 %v3706_v15, %v5545_v36 }
 0x321   :  { %v1889_v60 = vpop.f32.mrf.mxu0  ;;  %v5609_v43 = vpop.f32.mrf.mxu1 }
 0x322   :  { %v5640_v18 = vadd.f32 %v1889_v60, %v1729_v17  ;;  %v2487_v2 = vadd.f32 %v2486_v14, %v2472_v19  ;;  %v2474_v23 = vmul.f32 %v5659_v51, %v5659_v51  ;;  %v1749_v17 = vadd.f32 %v5561_v4, %v5559_v9 }
 0x324   :  { %v2450_v37 = vadd.f32 %v2449_v38, %v5640_v18  ;;  %v2473_v6 = vmul.f32 %v5640_v18, %v5640_v18 }
 0x325   :  { %v3709_v40 = vpop.f32.mrf.mxu0  ;;  %v5617_v13 = vpop.f32.mrf.mxu1 }
 0x326   :  { %v2488_v29 = vadd.f32 %v2487_v2, %v2473_v6  ;;  %v2451_v12 = vadd.f32 %v2450_v37, %v5659_v51 }
 0x327   :  { %v1899_v27 = vpop.f32.mrf.mxu0  ;;  %v5622_v62 = vpop.f32.mrf.mxu1 }
 0x328   :  { %v5661_v60 = vadd.f32 %v1899_v27, %v1739_v28  ;;  %v2489_v33 = vadd.f32 %v2488_v29, %v2474_v23 }
 0x32a   :  { %v2452_v54 = vadd.f32 %v2451_v12, %v5661_v60  ;;  %v2475_v36 = vmul.f32 %v5661_v60, %v5661_v60 }
 0x32b   :  { %v5629_v24 = vpop.f32.mrf.mxu0  ;;  %v5631_v21 = vpop.f32.mrf.mxu1 }
 0x32c   :  { %v2490_v6 = vadd.f32 %v2489_v33, %v2475_v36 }
 0x32d   :  { %v1909_v7 = vpop.f32.mrf.mxu0  ;;  %v5638_v58 = vpop.f32.mrf.mxu1 }
 0x32e   :  { %v5684_v2 = vadd.f32 %v1909_v7, %v1749_v17 }
 0x331   :  { %v5645_v32 = vpop.f32.mrf.mxu0  ;;  %v5647_v57 = vpop.f32.mrf.mxu1 }
 0x333   :  { %v5652_v25 = vpop.f32.mrf.mxu0  ;;  %v5654_v61 = vpop.f32.mrf.mxu1 }
 0x337   :  { %v3806_v11 = vpop.f32.mrf.mxu0  ;;  %v3862_v0 = vpop.f32.mrf.mxu1 }
 0x338   :  { %v2193_v53 = vadd.f32 %v3806_v11, %v5569_v1  ;;  %v5678_v1 = vadd.f32 %v3709_v40, %v5551_v55 }
 0x339   :  { %v2187_v59 = vpop.f32.mrf.mxu0  ;;  %v2348_v47 = vpop.f32.mrf.mxu1 }
 0x33a   :  { %v2188_v42 = vadd.f32 %v2187_v59, %v5571_v8  ;;  %v5671_v27 = vadd.f32 %v3862_v0, %v2193_v53  ;;  %v2453_v28 = vadd.f32 %v2452_v54, %v5678_v1 }
 0x33b   :  { %v3809_v15 = vpop.f32.mrf.mxu0  ;;  %v3865_v50 = vpop.f32.mrf.mxu1 }
 0x33c   :  { %v5673_v48 = vadd.f32 %v2348_v47, %v2188_v42  ;;  %v2203_v38 = vadd.f32 %v3809_v15, %v5573_v39  ;;  %v2526_v9 = vmul.f32 %v5671_v27, %v5671_v27  ;;  %v2454_v42 = vadd.f32 %v2453_v28, %v5684_v2 }
 0x33d   :  { %v2197_v8 = vpop.f32.mrf.mxu0  ;;  %v2358_v37 = vpop.f32.mrf.mxu1  ;;  %v2477_v47 = vmul.f32 %v5684_v2, %v5684_v2 }
 0x33e   :  { %v2525_v14 = vmul.f32 %v5673_v48, %v5673_v48  ;;  %v2198_v19 = vadd.f32 %v2197_v8, %v5575_v49  ;;  %v2503_v55 = vadd.f32 %v5671_v27, %v5673_v48  ;;  %v5691_v4 = vadd.f32 %v3865_v50, %v2203_v38 }
 0x33f   :  { %v3812_v29 = vpop.f32.mrf.mxu0  ;;  %v3868_v39 = vpop.f32.mrf.mxu1  ;;  %v2476_v49 = vmul.f32 %v5678_v1, %v5678_v1 }
 0x340   :  { %v5693_v40 = vadd.f32 %v2358_v37, %v2198_v19  ;;  %v2213_v7 = vadd.f32 %v3812_v29, %v5577_v52  ;;  %v2541_v11 = vadd.f32 %v2526_v9, %v2525_v14  ;;  %v2528_v52 = vmul.f32 %v5691_v4, %v5691_v4 }
 0x341   :  { %v2207_v12 = vpop.f32.mrf.mxu0  ;;  %v2368_v53 = vpop.f32.mrf.mxu1  ;;  %v2491_v54 = vadd.f32 %v2490_v6, %v2476_v49  ;;  %v5716_v14 = vadd.f32 %v5629_v24, %v5557_v45 }
 0x342   :  { %v2504_v0 = vadd.f32 %v2503_v55, %v5693_v40  ;;  %v2527_v23 = vmul.f32 %v5693_v40, %v5693_v40  ;;  %v2208_v59 = vadd.f32 %v2207_v12, %v5581_v46  ;;  %v5705_v36 = vadd.f32 %v3868_v39, %v2213_v7 }
 0x343   :  { %v3815_v33 = vpop.f32.mrf.mxu0  ;;  %v3871_v8 = vpop.f32.mrf.mxu1  ;;  %v1759_v46 = vadd.f32 %v5567_v31, %v5565_v44  ;;  %v2492_v55 = vadd.f32 %v2491_v54, %v2477_v47  ;;  %v2455_v44 = vadd.f32 %v2454_v42, %v5716_v14 }
 0x344   :  { %v2542_v15 = vadd.f32 %v2541_v11, %v2527_v23  ;;  %v5709_v50 = vadd.f32 %v2368_v53, %v2208_v59  ;;  %v2505_v17 = vadd.f32 %v2504_v0, %v5691_v4  ;;  %v2223_v38 = vadd.f32 %v3815_v33, %v5591_v10 }
 0x345   :  { %v2217_v19 = vpop.f32.mrf.mxu0  ;;  %v2378_v9 = vpop.f32.mrf.mxu1  ;;  %v5724_v39 = vadd.f32 %v5652_v25, %v1759_v46  ;;  %v2530_v45 = vmul.f32 %v5705_v36, %v5705_v36 }
 0x346   :  { %v2506_v37 = vadd.f32 %v2505_v17, %v5709_v50  ;;  %v2529_v6 = vmul.f32 %v5709_v50, %v5709_v50  ;;  %v2543_v28 = vadd.f32 %v2542_v15, %v2528_v52  ;;  %v2218_v29 = vadd.f32 %v2217_v19, %v5598_v3 }
 0x347   :  { %v3818_v31 = vpop.f32.mrf.mxu0  ;;  %v5729_v24 = vadd.f32 %v3871_v8, %v2223_v38  ;;  %v3874_v12 = vpop.f32.mrf.mxu1  ;;  %v2478_v3 = vmul.f32 %v5716_v14, %v5716_v14  ;;  %v2456_v53 = vadd.f32 %v2455_v44, %v5724_v39  ;;  %v2479_v52 = vmul.f32 %v5724_v39, %v5724_v39 }
 0x348   :  { %v2544_v10 = vadd.f32 %v2543_v28, %v2529_v6  ;;  %v5731_v49 = vadd.f32 %v2378_v9, %v2218_v29  ;;  %v2507_v7 = vadd.f32 %v2506_v37, %v5705_v36  ;;  %v2233_v47 = vadd.f32 %v3818_v31, %v5605_v20 }
 0x349   :  { %v2227_v11 = vpop.f32.mrf.mxu0  ;;  %v2388_v59 = vpop.f32.mrf.mxu1  ;;  %v2493_v42 = vadd.f32 %v2492_v55, %v2478_v3  ;;  %v2532_v15 = vmul.f32 %v5729_v24, %v5729_v24  ;;  %v5753_v20 = vadd.f32 %v5645_v32, %v5563_v5 }
 0x34a   :  { %v2508_v25 = vadd.f32 %v2507_v7, %v5731_v49  ;;  %v2531_v0 = vmul.f32 %v5731_v49, %v5731_v49  ;;  %v2545_v23 = vadd.f32 %v2544_v10, %v2530_v45  ;;  %v2228_v54 = vadd.f32 %v2227_v11, %v5609_v43 }
 0x34b   :  { %v3821_v33 = vpop.f32.mrf.mxu0  ;;  %v3877_v46 = vpop.f32.mrf.mxu1  ;;  %v5747_v38 = vadd.f32 %v3874_v12, %v2233_v47  ;;  %v2457_v45 = vadd.f32 %v2456_v53, %v5753_v20  ;;  %v2494_v31 = vadd.f32 %v2493_v42, %v2479_v52  ;;  %v2480_v11 = vmul.f32 %v5753_v20, %v5753_v20 }
 0x34c   :  { %v2546_v17 = vadd.f32 %v2545_v23, %v2531_v0  ;;  %v2509_v8 = vadd.f32 %v2508_v25, %v5729_v24  ;;  %v5749_v19 = vadd.f32 %v2388_v59, %v2228_v54  ;;  %v2243_v55 = vadd.f32 %v3821_v33, %v5617_v13 }
 0x34d   :  { %v2237_v37 = vpop.f32.mrf.mxu0  ;;  %v2398_v28 = vpop.f32.mrf.mxu1  ;;  %v2534_v5 = vmul.f32 %v5747_v38, %v5747_v38  ;;  %v2458_v47 = vrot.slane %v2457_v45, 4  ;;  %v2495_v54 = vadd.f32 %v2494_v31, %v2480_v11 }
 0x34e   :  { %v2547_v43 = vadd.f32 %v2546_v17, %v2532_v15  ;;  %v2238_v6 = vadd.f32 %v2237_v37, %v5622_v62  ;;  %v2510_v29 = vadd.f32 %v2509_v8, %v5749_v19  ;;  %v2533_v9 = vmul.f32 %v5749_v19, %v5749_v19 }
 0x34f   :  { %v3824_v44 = vpop.f32.mrf.mxu0  ;;  %v3880_v7 = vpop.f32.mrf.mxu1  ;;  %v5765_v62 = vadd.f32 %v3877_v46, %v2243_v55 }
 0x350   :  { %v5761_v10 = vadd.f32 %v2398_v28, %v2238_v6  ;;  %v2548_v32 = vadd.f32 %v2547_v43, %v2533_v9  ;;  %v2511_v12 = vadd.f32 %v2510_v29, %v5747_v38  ;;  %v2253_v53 = vadd.f32 %v3824_v44, %v5631_v21 }
 0x351   :  { %6263 = vst [vmem:[#allocation3_spill] sm:$0xff] %v5765_v62  ;;  %v2247_v3 = vpop.f32.mrf.mxu0  ;;  %v2408_v0 = vpop.f32.mrf.mxu1  ;;  %v2536_v15 = vmul.f32 %v5765_v62, %v5765_v62  ;;  %v2496_v9 = vrot.slane %v2495_v54, 4  ;;  %v2459_v44 = vadd.f32 %v2458_v47, %v2457_v45 }
 0x352   :  { %6262 = vst [vmem:[#allocation15_spill] sm:$0xff] %v5761_v10  ;;  %v2535_v13 = vmul.f32 %v5761_v10, %v5761_v10  ;;  %v2248_v25 = vadd.f32 %v2247_v3, %v5638_v58  ;;  %v2512_v23 = vadd.f32 %v2511_v12, %v5761_v10  ;;  %v2549_v59 = vadd.f32 %v2548_v32, %v2534_v5 }
 0x353   :  { %v3827_v42 = vpop.f32.mrf.mxu0  ;;  %v3883_v52 = vpop.f32.mrf.mxu1  ;;  %v5779_v8 = vadd.f32 %v3880_v7, %v2253_v53  ;;  %v2460_v11 = vrot.slane %v2459_v44, 2 }
 0x354   :  { %v5775_v33 = vadd.f32 %v2408_v0, %v2248_v25  ;;  %v2550_v17 = vadd.f32 %v2549_v59, %v2535_v13  ;;  %v2513_v58 = vadd.f32 %v2512_v23, %v5765_v62  ;;  %v2263_v29 = vadd.f32 %v3827_v42, %v5647_v57 }
 0x355   :  { %6265 = vst [vmem:[#allocation5_spill] sm:$0xff] %v5779_v8  ;;  %v2257_v46 = vpop.f32.mrf.mxu0  ;;  %v2418_v43 = vpop.f32.mrf.mxu1  ;;  %v2538_v31 = vmul.f32 %v5779_v8, %v5779_v8  ;;  %v2497_v25 = vadd.f32 %v2496_v9, %v2495_v54  ;;  %v2461_v53 = vadd.f32 %v2460_v11, %v2459_v44 }
 0x356   :  { %6264 = vst [vmem:[#allocation4_spill] sm:$0xff] %v5775_v33  ;;  %v2537_v37 = vmul.f32 %v5775_v33, %v5775_v33  ;;  %v2258_v21 = vadd.f32 %v2257_v46, %v5654_v61  ;;  %v2514_v6 = vadd.f32 %v2513_v58, %v5775_v33  ;;  %v2551_v28 = vadd.f32 %v2550_v17, %v2536_v15 }
 0x357   :  { %v5791_v5 = vadd.f32 %v3883_v52, %v2263_v29  ;;  %v2498_v47 = vrot.slane %v2497_v25, 2  ;;  %v2462_v17 = vrot.slane %v2461_v53, 1 }
 0x358   :  { %v5787_v55 = vadd.f32 %v2418_v43, %v2258_v21  ;;  %v2552_v7 = vadd.f32 %v2551_v28, %v2537_v37  ;;  %v2515_v32 = vadd.f32 %v2514_v6, %v5779_v8 }
 0x359   :  { %6267 = vst [vmem:[#allocation7_spill] sm:$0xff] %v5791_v5  ;;  %v2540_v57 = vmul.f32 %v5791_v5, %v5791_v5  ;;  %v2499_v46 = vadd.f32 %v2498_v47, %v2497_v25  ;;  %v2463_v6 = vadd.f32 %v2462_v17, %v2461_v53 }
 0x35a   :  { %6266 = vst [vmem:[#allocation6_spill] sm:$0xff] %v5787_v55  ;;  %v2539_v61 = vmul.f32 %v5787_v55, %v5787_v55  ;;  %v2516_v12 = vadd.f32 %v2515_v32, %v5787_v55  ;;  %v2553_v3 = vadd.f32 %v2552_v7, %v2538_v31 }
 0x35b   :  { %v2500_v29 = vrot.slane %v2499_v46, 1 }
 0x35c   :  { %v2517_v45 = vadd.f32 %v2516_v12, %v5791_v5  ;;  %v2554_v13 = vadd.f32 %v2553_v3, %v2539_v61 }
 0x35d   :  { %v2501_v9 = vadd.f32 %v2500_v29, %v2499_v46  ;;  %v2627_v29 = vld [vmem:[%s6145_s0 + $0x60] sm:$0xff] }
 0x35e   :  { %v2518_v0 = vrot.slane %v2517_v45, 4  ;;  %v2555_v23 = vadd.f32 %v2554_v13, %v2540_v57 }
 0x360   :  { %v2556_v59 = vrot.slane %v2555_v23, 4  ;;  %v2519_v42 = vadd.f32 %v2518_v0, %v2517_v45 }
 0x362   :  { %v2520_v52 = vrot.slane %v2519_v42, 2  ;;  %v2557_v15 = vadd.f32 %v2556_v59, %v2555_v23 }
 0x364   :  { %v2521_v58 = vadd.f32 %v2520_v52, %v2519_v42  ;;  %v2558_v37 = vrot.slane %v2557_v15, 2 }
 0x366   :  { %v2522_v21 = vrot.slane %v2521_v58, 1  ;;  %v2559_v43 = vadd.f32 %v2558_v37, %v2557_v15 }
 0x368   :  { %v2523_v28 = vadd.f32 %v2522_v21, %v2521_v58  ;;  %v2560_v31 = vrot.slane %v2559_v43, 1  ;;  %v2630_v21 = vld [vmem:[%s6145_s0 + $0x78] sm:$0xff] }
 0x36a   :  { %v2524_v7 = vadd.f32 %v2523_v28, %v2463_v6  ;;  %v2561_v54 = vadd.f32 %v2560_v31, %v2559_v43  ;;  %v2626_v31 = vld [vmem:[%s6145_s0 + $0x58] sm:$0xff]  ;;  %v2628_v28 = vld [vmem:[%s6145_s0 + $0x68] sm:$0xff]  ;;  %v2629_v43 = vld [vmem:[%s6145_s0 + $0x70] sm:$0xff] }
 0x36c   :  { %2563 = vrot.lane.b32.xlu1 %v2524_v7, %s3891_s1  ;;  %v2562_v44 = vadd.f32 %v2561_v54, %v2501_v9  ;;  %v2615_v54 = vld [vmem:[%s6145_s0] sm:$0xff]  ;;  %v2617_v9 = vld [vmem:[%s6145_s0 + $0x10] sm:$0xff] }
 0x370   :  { %2567 = vrot.lane.b32.xlu1 %v2562_v44, %s3891_s1 }
 0x3de   :  { %v2564_v32 = vpop.permute.xlu1 %2563 }
 0x3df   :  { %v2565_v61 = vadd.f32 %v2564_v32, %v2524_v7  ;;  %v2625_v7 = vld [vmem:[%s6145_s0 + $0x50] sm:$0xff] }
 0x3e1   :  { %v2566_v3 = vmul.f32 0.001953125, %v2565_v61 }
 0x3e2   :  { %v2568_v12 = vpop.permute.xlu1 %2567 }
 0x3e3   :  { %v2569_v11 = vadd.f32 %v2568_v12, %v2562_v44  ;;  %v2571_v57 = vmul.f32 %v2566_v3, %v2566_v3  ;;  %v5803_v0 = vrot.slane %v2566_v3, %v5068_v41  ;;  %v2618_v44 = vld [vmem:[%s6145_s0 + $0x18] sm:$0xff] }
 0x3e5   :  { %v2570_v45 = vmul.f32 0.001953125, %v2569_v11  ;;  %v2579_v23 = vsub.f32 %v5579_v35, %v5803_v0  ;;  %v2580_v59 = vsub.f32 %v5583_v22, %v5803_v0  ;;  %v2581_v53 = vsub.f32 %v5585_v34, %v5803_v0  ;;  %v2619_v11 = vld [vmem:[%s6145_s0 + $0x20] sm:$0xff] }
 0x3e6   :  { %v2582_v42 = vsub.f32 %v5600_v30, %v5803_v0  ;;  %v2583_v47 = vsub.f32 %v5602_v56, %v5803_v0  ;;  %v2584_v52 = vsub.f32 %v5615_v63, %v5803_v0  ;;  %v2585_v15 = vsub.f32 %v5619_v26, %v5803_v0 }
 0x3e7   :  { %v2572_v13 = vsub.f32 %v2570_v45, %v2571_v57  ;;  %v2586_v35 = vsub.f32 %v5636_v16, %v5803_v0  ;;  %v2587_v22 = vsub.f32 %v5640_v18, %v5803_v0  ;;  %v2588_v34 = vsub.f32 %v5659_v51, %v5803_v0  ;;  %v2620_v57 = vld [vmem:[%s6145_s0 + $0x28] sm:$0xff]  ;;  %v2621_v45 = vld [vmem:[%s6145_s0 + $0x30] sm:$0xff] }
 0x3e8   :  { %v2589_v30 = vsub.f32 %v5661_v60, %v5803_v0  ;;  %v2590_v56 = vsub.f32 %v5678_v1, %v5803_v0  ;;  %v2591_v63 = vsub.f32 %v5684_v2, %v5803_v0  ;;  %v2592_v26 = vsub.f32 %v5716_v14, %v5803_v0 }
 0x3e9   :  { %v2573_v25 = vadd.f32 1e-05, %v2572_v13  ;;  %v2593_v16 = vsub.f32 %v5724_v39, %v5803_v0  ;;  %v2594_v18 = vsub.f32 %v5753_v20, %v5803_v0 }
 0x3eb   :  { %3888 = vrsqrt.f32 %v2573_v25 }
 0x3f8   :  { %v3889_v17 = vpop.eup %3888 }
 0x3f9   :  { %v5862_v6 = vrot.slane %v3889_v17, %v5068_v41  ;;  %v2616_v41 = vld [vmem:[%s6145_s0 + $0x8] sm:$0xff] }
 0x3fa   :  { %v2624_v17 = vld [vmem:[%s6145_s0 + $0x48] sm:$0xff] }
 0x3fb   :  { %v2599_v32 = vmul.f32 %v5862_v6, %v2579_v23  ;;  %v2600_v61 = vmul.f32 %v5862_v6, %v2580_v59  ;;  %v2601_v12 = vmul.f32 %v5862_v6, %v2581_v53  ;;  %v2602_v3 = vmul.f32 %v5862_v6, %v2582_v42  ;;  %v2622_v53 = vld [vmem:[%s6145_s0 + $0x38] sm:$0xff]  ;;  %v2623_v42 = vld [vmem:[%s6145_s0 + $0x40] sm:$0xff] }
 0x3fc   :  { %v2603_v13 = vmul.f32 %v5862_v6, %v2583_v47  ;;  %v2604_v25 = vmul.f32 %v5862_v6, %v2584_v52  ;;  %v2605_v23 = vmul.f32 %v5862_v6, %v2585_v15  ;;  %v2606_v59 = vmul.f32 %v5862_v6, %v2586_v35 }
 0x3fd   :  { %v2607_v47 = vmul.f32 %v5862_v6, %v2587_v22  ;;  %v2608_v52 = vmul.f32 %v5862_v6, %v2588_v34  ;;  %v2609_v15 = vmul.f32 %v5862_v6, %v2589_v30  ;;  %v2610_v35 = vmul.f32 %v5862_v6, %v2590_v56 }
 0x3fe   :  { %v2611_v22 = vmul.f32 %v5862_v6, %v2591_v63  ;;  %v2612_v34 = vmul.f32 %v5862_v6, %v2592_v26  ;;  %v2613_v30 = vmul.f32 %v5862_v6, %v2593_v16  ;;  %v2614_v56 = vmul.f32 %v5862_v6, %v2594_v18 }
 0x3ff   :  { %v2631_v37 = vadd.f32 %v2615_v54, %v2599_v32  ;;  %v2632_v63 = vadd.f32 %v2616_v41, %v2600_v61  ;;  %v2633_v46 = vadd.f32 %v2617_v9, %v2601_v12  ;;  %v2634_v26 = vadd.f32 %v2618_v44, %v2602_v3 }
 0x400   :  { %v2635_v58 = vadd.f32 %v2619_v11, %v2603_v13  ;;  %v2636_v16 = vadd.f32 %v2620_v57, %v2604_v25  ;;  %v2637_v20 = vadd.f32 %v2621_v45, %v2605_v23  ;;  %v2638_v18 = vadd.f32 %v2622_v53, %v2606_v59  ;;  %v6278_v25 = vld [vmem:[#allocation15_spill] sm:$0xff] }
 0x401   :  { %v2639_v39 = vadd.f32 %v2623_v42, %v2607_v47  ;;  %v2640_v14 = vadd.f32 %v2624_v17, %v2608_v52  ;;  %v2641_v2 = vadd.f32 %v2625_v7, %v2609_v15  ;;  %v2642_v1 = vadd.f32 %v2626_v31, %v2610_v35  ;;  %v6280_v53 = vld [vmem:[#allocation3_spill] sm:$0xff]  ;;  %v6282_v52 = vld [vmem:[#allocation4_spill] sm:$0xff] }
 0x402   :  { %v2643_v60 = vadd.f32 %v2627_v29, %v2611_v22  ;;  %v2644_v51 = vadd.f32 %v2628_v28, %v2612_v34  ;;  %v2645_v5 = vadd.f32 %v2629_v43, %v2613_v30  ;;  %v2646_v55 = vadd.f32 %v2630_v21, %v2614_v56  ;;  %v6284_v22 = vld [vmem:[#allocation5_spill] sm:$0xff]  ;;  %v6286_v56 = vld [vmem:[#allocation6_spill] sm:$0xff] }
 0x403   :  { %v2647_v8 = vmax.f32 %v2631_v37, 0.0  ;;  %v2648_v33 = vmax.f32 %v2632_v63, 0.0  ;;  %v2649_v62 = vmax.f32 %v2633_v46, 0.0  ;;  %v2650_v10 = vmax.f32 %v2634_v26, 0.0 }
 0x404   :  { %v2651_v54 = vmax.f32 %v2635_v58, 0.0  ;;  %v2652_v41 = vmax.f32 %v2636_v16, 0.0  ;;  %v2653_v9 = vmax.f32 %v2637_v20, 0.0  ;;  %v2654_v44 = vmax.f32 %v2638_v18, 0.0  ;;  %v6288_v16 = vld [vmem:[#allocation7_spill] sm:$0xff] }
 0x405   :  { %v2655_v32 = vmax.f32 %v2639_v39, 0.0  ;;  %v2656_v61 = vmax.f32 %v2640_v14, 0.0  ;;  %v2657_v12 = vmax.f32 %v2641_v2, 0.0  ;;  %v2658_v3 = vmax.f32 %v2642_v1, 0.0  ;;  %2663 = vst [vmem:[%s6147_s3] sm:$0xff] %v2647_v8  ;;  %2664 = vst [vmem:[%s6147_s3 + $0x8] sm:$0xff] %v2648_v33 }
 0x406   :  { %2665 = vst [vmem:[%s6147_s3 + $0x10] sm:$0xff] %v2649_v62  ;;  %2666 = vst [vmem:[%s6147_s3 + $0x18] sm:$0xff] %v2650_v10  ;;  %v2659_v2 = vmax.f32 %v2643_v60, 0.0  ;;  %v2660_v14 = vmax.f32 %v2644_v51, 0.0  ;;  %v2661_v39 = vmax.f32 %v2645_v5, 0.0  ;;  %v2662_v8 = vmax.f32 %v2646_v55, 0.0 }
 0x407   :  { %v6268_v55 = vsub.f32 %v5673_v48, %v5803_v0  ;;  %v6269_v51 = vsub.f32 %v5671_v27, %v5803_v0  ;;  %v6270_v20 = vsub.f32 %v5693_v40, %v5803_v0  ;;  %v6271_v46 = vsub.f32 %v5691_v4, %v5803_v0 }
 0x408   :  { %v6272_v4 = vsub.f32 %v5709_v50, %v5803_v0  ;;  %v6273_v43 = vsub.f32 %v5705_v36, %v5803_v0  ;;  %v6274_v29 = vsub.f32 %v5731_v49, %v5803_v0  ;;  %v6275_v7 = vsub.f32 %v5729_v24, %v5803_v0 }
 0x409   :  { %v2695_v5 = vmul.f32 %v6268_v55, %v5862_v6  ;;  %v2696_v60 = vmul.f32 %v6269_v51, %v5862_v6  ;;  %v2697_v58 = vmul.f32 %v6270_v20, %v5862_v6  ;;  %v2698_v37 = vmul.f32 %v6271_v46, %v5862_v6 }
 0x40a   :  { %v2699_v40 = vmul.f32 %v6272_v4, %v5862_v6  ;;  %v2700_v28 = vmul.f32 %v6273_v43, %v5862_v6  ;;  %v2701_v31 = vmul.f32 %v6274_v29, %v5862_v6  ;;  %v2702_v11 = vmul.f32 %v6275_v7, %v5862_v6 }
 0x40b   :  { %v6276_v49 = vsub.f32 %v5749_v19, %v5803_v0  ;;  %v6277_v24 = vsub.f32 %v5747_v38, %v5803_v0  ;;  %v6279_v23 = vsub.f32 %v6278_v25, %v5803_v0  ;;  %v6281_v42 = vsub.f32 %v6280_v53, %v5803_v0 }
 0x40c   :  { %v6283_v15 = vsub.f32 %v6282_v52, %v5803_v0  ;;  %v6285_v34 = vsub.f32 %v6284_v22, %v5803_v0  ;;  %v6287_v63 = vsub.f32 %v6286_v56, %v5803_v0  ;;  %v6289_v18 = vsub.f32 %v6288_v16, %v5803_v0 }
 0x40d   :  { %v2796_v1 = vld [vmem:[%s6145_s0 + $0x80] sm:$0xff]  ;;  %v2703_v45 = vmul.f32 %v6276_v49, %v5862_v6  ;;  %v2704_v13 = vmul.f32 %v6277_v24, %v5862_v6  ;;  %v2705_v59 = vmul.f32 %v6279_v23, %v5862_v6  ;;  %v2706_v17 = vmul.f32 %v6281_v42, %v5862_v6 }
 0x40e   :  { %2667 = vst [vmem:[%s6147_s3 + $0x20] sm:$0xff] %v2651_v54  ;;  %2668 = vst [vmem:[%s6147_s3 + $0x28] sm:$0xff] %v2652_v41  ;;  %v2707_v35 = vmul.f32 %v6283_v15, %v5862_v6  ;;  %v2708_v30 = vmul.f32 %v6285_v34, %v5862_v6  ;;  %v2709_v26 = vmul.f32 %v6287_v63, %v5862_v6 }
 0x40f   :  { %2669 = vst [vmem:[%s6147_s3 + $0x30] sm:$0xff] %v2653_v9  ;;  %2670 = vst [vmem:[%s6147_s3 + $0x38] sm:$0xff] %v2654_v44  ;;  %v2710_v54 = vmul.f32 %v6289_v18, %v5862_v6 }
 0x416   :  { %v2797_v10 = vld [vmem:[%s6145_s0 + $0x88] sm:$0xff]  ;;  %v2798_v62 = vld [vmem:[%s6145_s0 + $0x90] sm:$0xff]  ;;  %v2799_v33 = vld [vmem:[%s6145_s0 + $0x98] sm:$0xff] }
 0x417   :  { %2671 = vst [vmem:[%s6147_s3 + $0x40] sm:$0xff] %v2655_v32  ;;  %2672 = vst [vmem:[%s6147_s3 + $0x48] sm:$0xff] %v2656_v61  ;;  %v2727_v32 = vadd.f32 %v2796_v1, %v2695_v5  ;;  %v2728_v61 = vadd.f32 %v2797_v10, %v2696_v60 }
 0x418   :  { %2673 = vst [vmem:[%s6147_s3 + $0x50] sm:$0xff] %v2657_v12  ;;  %2674 = vst [vmem:[%s6147_s3 + $0x58] sm:$0xff] %v2658_v3  ;;  %v2729_v12 = vadd.f32 %v2798_v62, %v2697_v58  ;;  %v2730_v3 = vadd.f32 %v2799_v33, %v2698_v37 }
 0x419   :  { %v2743_v29 = vmax.f32 %v2727_v32, 0.0  ;;  %v2744_v7 = vmax.f32 %v2728_v61, 0.0 }
 0x41a   :  { %v2745_v49 = vmax.f32 %v2729_v12, 0.0  ;;  %v2746_v24 = vmax.f32 %v2730_v3, 0.0 }
 0x41f   :  { %v2800_v48 = vld [vmem:[%s6145_s0 + $0xa0] sm:$0xff]  ;;  %v2801_v21 = vld [vmem:[%s6145_s0 + $0xa8] sm:$0xff]  ;;  %v2802_v27 = vld [vmem:[%s6145_s0 + $0xb0] sm:$0xff] }
 0x420   :  { %2675 = vst [vmem:[%s6147_s3 + $0x60] sm:$0xff] %v2659_v2  ;;  %2676 = vst [vmem:[%s6147_s3 + $0x68] sm:$0xff] %v2660_v14  ;;  %v2731_v2 = vadd.f32 %v2800_v48, %v2699_v40  ;;  %v2732_v14 = vadd.f32 %v2801_v21, %v2700_v28  ;;  %v2733_v0 = vadd.f32 %v2802_v27, %v2701_v31 }
 0x421   :  { %2677 = vst [vmem:[%s6147_s3 + $0x70] sm:$0xff] %v2661_v39  ;;  %2678 = vst [vmem:[%s6147_s3 + $0x78] sm:$0xff] %v2662_v8 }
 0x422   :  { %v2747_v1 = vmax.f32 %v2731_v2, 0.0  ;;  %v2748_v10 = vmax.f32 %v2732_v14, 0.0  ;;  %v2749_v62 = vmax.f32 %v2733_v0, 0.0 }
 0x428   :  { %v2803_v50 = vld [vmem:[%s6145_s0 + $0xb8] sm:$0xff]  ;;  %v2804_v57 = vld [vmem:[%s6145_s0 + $0xc0] sm:$0xff]  ;;  %v2805_v36 = vld [vmem:[%s6145_s0 + $0xc8] sm:$0xff] }
 0x429   :  { %v2806_v19 = vld [vmem:[%s6145_s0 + $0xd0] sm:$0xff]  ;;  %v2807_v47 = vld [vmem:[%s6145_s0 + $0xd8] sm:$0xff]  ;;  %v2808_v38 = vld [vmem:[%s6145_s0 + $0xe0] sm:$0xff]  ;;  %v2734_v6 = vadd.f32 %v2803_v50, %v2702_v11  ;;  %v2735_v39 = vadd.f32 %v2804_v57, %v2703_v45  ;;  %v2736_v8 = vadd.f32 %v2805_v36, %v2704_v13 }
 0x42a   :  { %v2809_v41 = vld [vmem:[%s6145_s0 + $0xe8] sm:$0xff]  ;;  %v2810_v9 = vld [vmem:[%s6145_s0 + $0xf0] sm:$0xff]  ;;  %v2811_v44 = vld [vmem:[%s6145_s0 + $0xf8] sm:$0xff]  ;;  %v2737_v55 = vadd.f32 %v2806_v19, %v2705_v59  ;;  %v2738_v51 = vadd.f32 %v2807_v47, %v2706_v17  ;;  %v2739_v20 = vadd.f32 %v2808_v38, %v2707_v35 }
 0x42b   :  { %v2740_v46 = vadd.f32 %v2809_v41, %v2708_v30  ;;  %v2741_v4 = vadd.f32 %v2810_v9, %v2709_v26  ;;  %v2742_v43 = vadd.f32 %v2811_v44, %v2710_v54  ;;  %v2750_v33 = vmax.f32 %v2734_v6, 0.0  ;;  %2812 = vst [vmem:[%s6147_s3 + $0x80] sm:$0xff] %v2743_v29  ;;  %2813 = vst [vmem:[%s6147_s3 + $0x88] sm:$0xff] %v2744_v7 }
 0x42c   :  { %v2751_v5 = vmax.f32 %v2735_v39, 0.0  ;;  %v2752_v60 = vmax.f32 %v2736_v8, 0.0  ;;  %v2753_v58 = vmax.f32 %v2737_v55, 0.0  ;;  %v2754_v37 = vmax.f32 %v2738_v51, 0.0  ;;  %2814 = vst [vmem:[%s6147_s3 + $0x90] sm:$0xff] %v2745_v49  ;;  %2815 = vst [vmem:[%s6147_s3 + $0x98] sm:$0xff] %v2746_v24 }
 0x42d   :  { %v2755_v48 = vmax.f32 %v2739_v20, 0.0  ;;  %v2756_v21 = vmax.f32 %v2740_v46, 0.0  ;;  %v2757_v27 = vmax.f32 %v2741_v4, 0.0  ;;  %v2758_v40 = vmax.f32 %v2742_v43, 0.0  ;;  %2816 = vst [vmem:[%s6147_s3 + $0xa0] sm:$0xff] %v2747_v1  ;;  %2817 = vst [vmem:[%s6147_s3 + $0xa8] sm:$0xff] %v2748_v10 }
 0x42e   :  { %2818 = vst [vmem:[%s6147_s3 + $0xb0] sm:$0xff] %v2749_v62  ;;  %2819 = vst [vmem:[%s6147_s3 + $0xb8] sm:$0xff] %v2750_v33 }
 0x42f   :  { %2820 = vst [vmem:[%s6147_s3 + $0xc0] sm:$0xff] %v2751_v5  ;;  %2821 = vst [vmem:[%s6147_s3 + $0xc8] sm:$0xff] %v2752_v60 }
 0x430   :  { %2822 = vst [vmem:[%s6147_s3 + $0xd0] sm:$0xff] %v2753_v58  ;;  %2823 = vst [vmem:[%s6147_s3 + $0xd8] sm:$0xff] %v2754_v37 }
 0x431   :  { %2824 = vst [vmem:[%s6147_s3 + $0xe0] sm:$0xff] %v2755_v48  ;;  %2825 = vst [vmem:[%s6147_s3 + $0xe8] sm:$0xff] %v2756_v21 }
 0x432   :  { %2826 = vst [vmem:[%s6147_s3 + $0xf0] sm:$0xff] %v2757_v27  ;;  %2827 = vst [vmem:[%s6147_s3 + $0xf8] sm:$0xff] %v2758_v40 }

</bundles_post_ra>
